<compile_context>
chip_gen: v7x
topology: tpu7x:2x2x1
jax: 0.10.0
libtpu: 0.0.40
codegen_flags: <defaults>
</compile_context>

<pallas_src>
import functools

import jax
import jax.numpy as jnp
from jax import lax
from jax.experimental import pallas as pl
from jax.experimental.pallas import tpu as pltpu

NEG_SLOPE = 0.01
F32 = jnp.float32
LANE = 128
SUB = 8


def _round_up(v, m):
    return (v + m - 1) // m * m


# ----------------------------- in-kernel helpers -----------------------------

def _mm_t(a, b):
    """a @ b.T without materializing a transpose (contract dim 1 of both)."""
    return lax.dot_general(a, b, (((1,), (1,)), ((), ())),
                           preferred_element_type=jnp.float32)


def _leaky_relu(x, slope=NEG_SLOPE):
    return jnp.where(x >= 0, x, slope * x)


def _elu(x):
    return jnp.where(x > 0, x, jnp.exp(jnp.minimum(x, 0.0)) - 1.0)


def _masked_softmax(logits, mask):
    """Row-wise softmax over entries where mask==1; fully-masked rows -> 0."""
    am = jnp.where(mask > 0, logits, jnp.full_like(logits, -1e30))
    m = jnp.max(am, axis=-1, keepdims=True)
    p = jnp.exp(am - m) * mask
    denom = jnp.sum(p, axis=-1, keepdims=True)
    # EUP reciprocal instead of a VPU divide sequence.
    return p * pl.reciprocal(jnp.maximum(denom, 1e-16), approx=True)


def _gru(inp, hid, wih, whh, bih, bhh, H):
    """torch.nn.GRUCell(inp, hid) with fused trailing ReLU.

    H is the padded hidden size (multiple of 128) and the GRU weights are padded
    per gate block, so the slices below are lane-tile-aligned free views.
    """
    gi = _mm_t(inp, wih) + bih                     # [*, 3H]
    gh = _mm_t(hid, whh) + bhh
    r = jax.nn.sigmoid(gi[:, :H] + gh[:, :H])
    z = jax.nn.sigmoid(gi[:, H:2 * H] + gh[:, H:2 * H])
    n = jnp.tanh(gi[:, 2 * H:] + r * gh[:, 2 * H:])
    return jnp.maximum((1.0 - z) * n + z * hid, 0.0)   # .relu_() fused


def _gat_attend(hs, hd, mask, asrc, adst, b):
    """PyG GATConv (heads=1, add_self_loops=False, neg_slope=0.01) + fused ELU.

    hs/hd are the already lin-transformed source/destination features.
    mask is [Nd, Ns] adjacency (dst, src).
    """
    a_s = _mm_t(asrc, hs)                          # [1, Ns]
    a_d = _mm_t(hd, adst)                          # [Nd, 1]
    e = _leaky_relu(a_d + a_s)                     # [Nd, Ns]
    soft = _masked_softmax(e, mask)
    return _elu(jnp.dot(soft, hs, preferred_element_type=jnp.float32) + b)


# ------------------------------ fused kernel ----------------------------------

def attentive_fp2_kernel(
        # graph structure / features
        x_ref, adj_ref, src1h_ref, dst1ht_ref, ea_ref, bmask_ref,
        # lin1
        lin1_w_ref, lin1_b_ref,
        # GATEConv
        gc_w1x_ref, gc_w1e_ref, gc_attl_ref, gc_attr_ref, gc_w2_ref, gc_b_ref,
        # first GRU
        gru_wih_ref, gru_whh_ref, gru_bih_ref, gru_bhh_ref,
        # stacked atom GAT + GRU layers  [L, ...]
        at_w_ref, at_asrc_ref, at_adst_ref, at_b_ref,
        at_wih_ref, at_whh_ref, at_bih_ref, at_bhh_ref,
        # molecule-level GAT + GRU
        mol_w_ref, mol_asrc_ref, mol_adst_ref, mol_b_ref,
        mol_wih_ref, mol_whh_ref, mol_bih_ref, mol_bhh_ref,
        # output heads
        mu_w_ref, mu_b_ref, var_w_ref, var_b_ref,
        # outputs
        mu_ref, var_ref,
        *, hid, num_atom_layers, num_timesteps):
    H = hid
    adj = adj_ref[...]                                        # [N, N]  (dst, src)
    bmask = bmask_ref[...]                                    # [G, N]

    # x = leaky_relu(lin1(x))
    x = _leaky_relu(_mm_t(x_ref[...], lin1_w_ref[...]) + lin1_b_ref[...])

    # ---------------- GATEConv (edge-list attention, dense masked softmax) ----
    src1h = src1h_ref[...]                                    # [E, N] one-hot(src)
    xw = _mm_t(x, gc_w1x_ref[...])                            # [N, H]  lin1 x-part (per source)
    eaw = _mm_t(ea_ref[...], gc_w1e_ref[...])                 # [E, H]  lin1 edge-part (per edge)
    xw_e = jnp.dot(src1h, xw, preferred_element_type=jnp.float32)   # gather x_j per edge
    z = _leaky_relu(xw_e + eaw)                               # [E, H]
    al_e = _mm_t(z, gc_attl_ref[...])                         # [E, 1]  (MXU, no cross-lane reduce)
    # scatter per-edge logits into dense [N_dst, N_src] via one-hot matmul
    al = jnp.dot(dst1ht_ref[...], al_e * src1h,
                 preferred_element_type=jnp.float32)          # [N, N]
    ar = _mm_t(x, gc_attr_ref[...])                           # [N, 1]  per destination
    alpha = _leaky_relu(al + ar)
    soft = _masked_softmax(alpha, adj)
    msg = _mm_t(x, gc_w2_ref[...])                            # lin2(x_j)
    h = _elu(jnp.dot(soft, msg, preferred_element_type=jnp.float32) + gc_b_ref[...])

    # x = relu(gru(h, x))   (dropout p=0 is identity)
    x = _gru(h, x, gru_wih_ref[...], gru_whh_ref[...],
             gru_bih_ref[...], gru_bhh_ref[...], H)

    # ---------------- atom-level GAT + GRU layers (fused, weights stacked) ----
    for l in range(num_atom_layers):
        hw = _mm_t(x, at_w_ref[l])                            # shared src/dst transform
        h = _gat_attend(hw, hw, adj, at_asrc_ref[l], at_adst_ref[l], at_b_ref[l])
        x = _gru(h, x, at_wih_ref[l], at_whh_ref[l], at_bih_ref[l], at_bhh_ref[l], H)

    # ---------------- global_add_pool + relu ----------------------------------
    out = jnp.maximum(jnp.dot(bmask, x, preferred_element_type=jnp.float32), 0.0)

    # ---------------- molecule-level readout timesteps -------------------------
    mw = mol_w_ref[...]
    hs_nodes = _mm_t(x, mw)                                   # loop-invariant, hoisted
    a_s = _mm_t(mol_asrc_ref[...], hs_nodes)                  # [1, N], loop-invariant
    mdw = _mm_t(mol_adst_ref[...], mw)                        # att_dst @ W, loop-invariant
    mb = mol_b_ref[...]
    mwih = mol_wih_ref[...]
    mwhh = mol_whh_ref[...]
    mbih = mol_bih_ref[...]
    mbhh = mol_bhh_ref[...]
    for _ in range(num_timesteps):
        a_d = _mm_t(out, mdw)                                 # [G, 1]
        e = _leaky_relu(a_d + a_s)                            # [G, N]
        soft_m = _masked_softmax(e, bmask)
        hm = _elu(jnp.dot(soft_m, hs_nodes, preferred_element_type=jnp.float32) + mb)
        out = _gru(hm, out, mwih, mwhh, mbih, mbhh, H)

    # ---------------- output heads (lane-dense padded outputs) -----------------
    mu_ref[...] = _mm_t(out, mu_w_ref[...]) + mu_b_ref[...]
    var_ref[...] = _mm_t(out, var_w_ref[...]) + var_b_ref[...]


# ------------------------- parameter init & padding ---------------------------

def init_params(key, in_ch, hid, out_ch, edge_dim, num_layers):
    keys = iter(jax.random.split(key, 128))

    def rnd(shape, scale=0.1):
        return scale * jax.random.normal(next(keys), shape, F32)

    def gru_params():
        return {"wih": rnd((3 * hid, hid)), "whh": rnd((3 * hid, hid)),
                "bih": rnd((1, 3 * hid)), "bhh": rnd((1, 3 * hid))}

    p = {
        "lin1_w": rnd((hid, in_ch)), "lin1_b": rnd((1, hid)),
        # GATEConv: lin1 weight [H, H+E] split into x-part / edge-part
        "gc_w1x": rnd((hid, hid)), "gc_w1e": rnd((hid, edge_dim)),
        "gc_attl": rnd((1, hid)), "gc_attr": rnd((1, hid)),
        "gc_w2": rnd((hid, hid)), "gc_b": rnd((1, hid)),
        "gru": gru_params(),
        "atom": [],
        "mol_w": rnd((hid, hid)), "mol_asrc": rnd((1, hid)),
        "mol_adst": rnd((1, hid)), "mol_b": rnd((1, hid)),
        "mol_gru": gru_params(),
        "lin_mu_w": rnd((out_ch, hid)), "lin_mu_b": rnd((1, out_ch)),
        "lin_var_w": rnd((out_ch, hid)), "lin_var_b": rnd((1, out_ch)),
    }
    for _ in range(num_layers - 1):
        p["atom"].append({"w": rnd((hid, hid)), "asrc": rnd((1, hid)),
                          "adst": rnd((1, hid)), "b": rnd((1, hid)),
                          "gru": gru_params()})
    return p


def _pad2(w, rows, cols):
    w = jnp.asarray(w, F32)
    return jnp.zeros((rows, cols), F32).at[:w.shape[0], :w.shape[1]].set(w)


def _pad_gru_w(w, h_real, hp):
    # torch GRUCell weight [3h, h] with (r, z, n) row blocks -> [3*hp, hp],
    # padding each gate block independently so in-kernel 128-lane slices stay
    # aligned with the gate boundaries.
    return jnp.concatenate(
        [_pad2(w[g * h_real:(g + 1) * h_real, :], hp, hp) for g in range(3)], axis=0)


def _pad_gru_b(b, h_real, hp):
    return jnp.concatenate(
        [_pad2(b[:, g * h_real:(g + 1) * h_real], 1, hp) for g in range(3)], axis=1)


# --------------------------------- wrapper -------------------------------------

def attentive_fp2_forward(params, x, edge_index, edge_attr, batch,
                          num_graphs, num_timesteps, hid):
    N, in_ch = x.shape
    E = edge_index.shape[1]
    edge_dim = edge_attr.shape[1]
    out_ch = params["lin_mu_w"].shape[0]
    atom = params["atom"]
    n_atom = len(atom)

    # Padded sizes: last (lane) dims -> multiples of 128, row dims -> multiples of 8.
    HP = _round_up(hid, LANE)
    INP = _round_up(in_ch, LANE)
    EDP = _round_up(edge_dim, LANE)
    OUTP = _round_up(out_ch, LANE)
    NP_ = _round_up(N, SUB)
    GP = _round_up(num_graphs, SUB)
    EP = _round_up(E, SUB)

    src, dst = edge_index[0], edge_index[1]

    # ---- sparse-structure glue (densification / one-hot scatter), wrapper-side ----
    adj = jnp.zeros((NP_, NP_), F32).at[dst, src].set(1.0)          # adj[dst, src]
    src1h = jnp.zeros((EP, NP_), F32).at[jnp.arange(E), src].set(1.0)
    dst1ht = jnp.zeros((NP_, EP), F32).at[dst, jnp.arange(E)].set(1.0)
    batch_full = jnp.concatenate(
        [batch.astype(jnp.int32), jnp.full((NP_ - N,), -1, jnp.int32)])
    bmask = (batch_full[None, :] == jnp.arange(GP)[:, None]).astype(F32)  # [G, N]

    x_p = _pad2(x, NP_, INP)
    ea_p = _pad2(edge_attr, EP, EDP)

    # ---- zero-pad parameters to lane/sublane-aligned shapes, stack atom layers ----
    g = params["gru"]
    mg = params["mol_gru"]

    def stack_or_dummy(mk, shape):
        if n_atom == 0:
            return jnp.zeros((1,) + shape, F32)
        return jnp.stack([mk(lp) for lp in atom])

    at_w = stack_or_dummy(lambda lp: _pad2(lp["w"], HP, HP), (HP, HP))
    at_asrc = stack_or_dummy(lambda lp: _pad2(lp["asrc"], 1, HP), (1, HP))
    at_adst = stack_or_dummy(lambda lp: _pad2(lp["adst"], 1, HP), (1, HP))
    at_b = stack_or_dummy(lambda lp: _pad2(lp["b"], 1, HP), (1, HP))
    at_wih = stack_or_dummy(lambda lp: _pad_gru_w(lp["gru"]["wih"], hid, HP), (3 * HP, HP))
    at_whh = stack_or_dummy(lambda lp: _pad_gru_w(lp["gru"]["whh"], hid, HP), (3 * HP, HP))
    at_bih = stack_or_dummy(lambda lp: _pad_gru_b(lp["gru"]["bih"], hid, HP), (1, 3 * HP))
    at_bhh = stack_or_dummy(lambda lp: _pad_gru_b(lp["gru"]["bhh"], hid, HP), (1, 3 * HP))

    args = (
        x_p, adj, src1h, dst1ht, ea_p, bmask,
        _pad2(params["lin1_w"], HP, INP), _pad2(params["lin1_b"], 1, HP),
        _pad2(params["gc_w1x"], HP, HP), _pad2(params["gc_w1e"], HP, EDP),
        _pad2(params["gc_attl"], 1, HP), _pad2(params["gc_attr"], 1, HP),
        _pad2(params["gc_w2"], HP, HP), _pad2(params["gc_b"], 1, HP),
        _pad_gru_w(g["wih"], hid, HP), _pad_gru_w(g["whh"], hid, HP),
        _pad_gru_b(g["bih"], hid, HP), _pad_gru_b(g["bhh"], hid, HP),
        at_w, at_asrc, at_adst, at_b, at_wih, at_whh, at_bih, at_bhh,
        _pad2(params["mol_w"], HP, HP), _pad2(params["mol_asrc"], 1, HP),
        _pad2(params["mol_adst"], 1, HP), _pad2(params["mol_b"], 1, HP),
        _pad_gru_w(mg["wih"], hid, HP), _pad_gru_w(mg["whh"], hid, HP),
        _pad_gru_b(mg["bih"], hid, HP), _pad_gru_b(mg["bhh"], hid, HP),
        _pad2(params["lin_mu_w"], OUTP, HP), _pad2(params["lin_mu_b"], 1, OUTP),
        _pad2(params["lin_var_w"], OUTP, HP), _pad2(params["lin_var_b"], 1, OUTP),
    )

    def full_spec(shape):
        nd = len(shape)
        return pl.BlockSpec(shape, lambda i, _nd=nd: (0,) * _nd)

    out_shapes = (jax.ShapeDtypeStruct((GP, OUTP), F32),
                  jax.ShapeDtypeStruct((GP, OUTP), F32))

    kernel = functools.partial(attentive_fp2_kernel, hid=HP,
                               num_atom_layers=n_atom,
                               num_timesteps=num_timesteps)

    # TODO(synk): for production-scale graphs (N >> 1k) add a dst-row grid axis
    # ("parallel") with an online-softmax accumulator so the [N, N] attention
    # tiles stream through VMEM instead of living whole-array.
    mu_p, var_p = pl.pallas_call(
        kernel,
        out_shape=out_shapes,
        grid=(1,),
        in_specs=[full_spec(a.shape) for a in args],
        out_specs=[full_spec(s.shape) for s in out_shapes],
        compiler_params=pltpu.CompilerParams(
            dimension_semantics=("arbitrary",),
            vmem_limit_bytes=64 * 1024 * 1024),
    )(*args)

    return mu_p[:num_graphs, :out_ch], var_p[:num_graphs, :out_ch]


# ---------------------------------- main ---------------------------------------

if __name__ == "__main__":
    IN_CH, HID, OUT_CH, EDGE_DIM = 16, 32, 8, 4
    NUM_LAYERS, NUM_TIMESTEPS = 2, 2
    N, G = 8, 2  # 2 graphs, 4 nodes each

    key = jax.random.PRNGKey(0)
    kx, ke, kp = jax.random.split(key, 3)

    x = jax.random.normal(kx, (N, IN_CH), F32)

    # bidirectional ring per graph -> every node has incoming edges
    src, dst = [], []
    for gidx in range(G):
        base = gidx * 4
        for a in range(4):
            b = (a + 1) % 4
            src += [base + a, base + b]
            dst += [base + b, base + a]
    edge_index = jnp.array([src, dst], jnp.int32)           # [2, E]
    E = edge_index.shape[1]
    edge_attr = jax.random.normal(ke, (E, EDGE_DIM), F32)    # [E, edge_dim]
    batch = jnp.array([0, 0, 0, 0, 1, 1, 1, 1], jnp.int32)   # [N]

    params = init_params(kp, IN_CH, HID, OUT_CH, EDGE_DIM, NUM_LAYERS)

    mu, var = attentive_fp2_forward(params, x, edge_index, edge_attr, batch,
                                    G, NUM_TIMESTEPS, HID)
    jax.block_until_ready((mu, var))
    assert mu.shape == (G, OUT_CH) and var.shape == (G, OUT_CH)
    assert bool(jnp.all(jnp.isfinite(mu))) and bool(jnp.all(jnp.isfinite(var)))
    print("KERNEL_OK")
</pallas_src>

<mosaic_0001>
module attributes {stable_mosaic.version = 11 : i64} {
  func.func @attentive_fp2_kernel(%arg0: i32, %arg1: memref<8x128xf32, #tpu.memory_space<vmem>>, %arg2: memref<8x8xf32, #tpu.memory_space<vmem>>, %arg3: memref<16x8xf32, #tpu.memory_space<vmem>>, %arg4: memref<8x16xf32, #tpu.memory_space<vmem>>, %arg5: memref<16x128xf32, #tpu.memory_space<vmem>>, %arg6: memref<8x8xf32, #tpu.memory_space<vmem>>, %arg7: memref<128x128xf32, #tpu.memory_space<vmem>>, %arg8: memref<1x128xf32, #tpu.memory_space<vmem>>, %arg9: memref<128x128xf32, #tpu.memory_space<vmem>>, %arg10: memref<128x128xf32, #tpu.memory_space<vmem>>, %arg11: memref<1x128xf32, #tpu.memory_space<vmem>>, %arg12: memref<1x128xf32, #tpu.memory_space<vmem>>, %arg13: memref<128x128xf32, #tpu.memory_space<vmem>>, %arg14: memref<1x128xf32, #tpu.memory_space<vmem>>, %arg15: memref<384x128xf32, #tpu.memory_space<vmem>>, %arg16: memref<384x128xf32, #tpu.memory_space<vmem>>, %arg17: memref<1x384xf32, #tpu.memory_space<vmem>>, %arg18: memref<1x384xf32, #tpu.memory_space<vmem>>, %arg19: memref<1x128x128xf32, #tpu.memory_space<vmem>>, %arg20: memref<1x1x128xf32, #tpu.memory_space<vmem>>, %arg21: memref<1x1x128xf32, #tpu.memory_space<vmem>>, %arg22: memref<1x1x128xf32, #tpu.memory_space<vmem>>, %arg23: memref<1x384x128xf32, #tpu.memory_space<vmem>>, %arg24: memref<1x384x128xf32, #tpu.memory_space<vmem>>, %arg25: memref<1x1x384xf32, #tpu.memory_space<vmem>>, %arg26: memref<1x1x384xf32, #tpu.memory_space<vmem>>, %arg27: memref<128x128xf32, #tpu.memory_space<vmem>>, %arg28: memref<1x128xf32, #tpu.memory_space<vmem>>, %arg29: memref<1x128xf32, #tpu.memory_space<vmem>>, %arg30: memref<1x128xf32, #tpu.memory_space<vmem>>, %arg31: memref<384x128xf32, #tpu.memory_space<vmem>>, %arg32: memref<384x128xf32, #tpu.memory_space<vmem>>, %arg33: memref<1x384xf32, #tpu.memory_space<vmem>>, %arg34: memref<1x384xf32, #tpu.memory_space<vmem>>, %arg35: memref<128x128xf32, #tpu.memory_space<vmem>>, %arg36: memref<1x128xf32, #tpu.memory_space<vmem>>, %arg37: memref<128x128xf32, #tpu.memory_space<vmem>>, %arg38: memref<1x128xf32, #tpu.memory_space<vmem>>, %arg39: memref<8x128xf32, #tpu.memory_space<vmem>>, %arg40: memref<8x128xf32, #tpu.memory_space<vmem>>) attributes {dimension_semantics = [#tpu.dimension_semantics<arbitrary>], iteration_bounds = array<i64: 1>, scalar_prefetch = 0 : i64, scratch_operands = 0 : i64, tpu.core_type = #tpu.core_type<tc>, window_params = [{pipeline_mode = #tpu.pipeline_mode<synchronous>, transform_indices = @transform_0, window_bounds = array<i64: 8, 128>}, {pipeline_mode = #tpu.pipeline_mode<synchronous>, transform_indices = @transform_1, window_bounds = array<i64: 8, 8>}, {pipeline_mode = #tpu.pipeline_mode<synchronous>, transform_indices = @transform_2, window_bounds = array<i64: 16, 8>}, {pipeline_mode = #tpu.pipeline_mode<synchronous>, transform_indices = @transform_3, window_bounds = array<i64: 8, 16>}, {pipeline_mode = #tpu.pipeline_mode<synchronous>, transform_indices = @transform_4, window_bounds = array<i64: 16, 128>}, {pipeline_mode = #tpu.pipeline_mode<synchronous>, transform_indices = @transform_5, window_bounds = array<i64: 8, 8>}, {pipeline_mode = #tpu.pipeline_mode<synchronous>, transform_indices = @transform_6, window_bounds = array<i64: 128, 128>}, {pipeline_mode = #tpu.pipeline_mode<synchronous>, transform_indices = @transform_7, window_bounds = array<i64: 1, 128>}, {pipeline_mode = #tpu.pipeline_mode<synchronous>, transform_indices = @transform_8, window_bounds = array<i64: 128, 128>}, {pipeline_mode = #tpu.pipeline_mode<synchronous>, transform_indices = @transform_9, window_bounds = array<i64: 128, 128>}, {pipeline_mode = #tpu.pipeline_mode<synchronous>, transform_indices = @transform_10, window_bounds = array<i64: 1, 128>}, {pipeline_mode = #tpu.pipeline_mode<synchronous>, transform_indices = @transform_11, window_bounds = array<i64: 1, 128>}, {pipeline_mode = #tpu.pipeline_mode<synchronous>, transform_indices = @transform_12, window_bounds = array<i64: 128, 128>}, {pipeline_mode = #tpu.pipeline_mode<synchronous>, transform_indices = @transform_13, window_bounds = array<i64: 1, 128>}, {pipeline_mode = #tpu.pipeline_mode<synchronous>, transform_indices = @transform_14, window_bounds = array<i64: 384, 128>}, {pipeline_mode = #tpu.pipeline_mode<synchronous>, transform_indices = @transform_15, window_bounds = array<i64: 384, 128>}, {pipeline_mode = #tpu.pipeline_mode<synchronous>, transform_indices = @transform_16, window_bounds = array<i64: 1, 384>}, {pipeline_mode = #tpu.pipeline_mode<synchronous>, transform_indices = @transform_17, window_bounds = array<i64: 1, 384>}, {pipeline_mode = #tpu.pipeline_mode<synchronous>, transform_indices = @transform_18, window_bounds = array<i64: 1, 128, 128>}, {pipeline_mode = #tpu.pipeline_mode<synchronous>, transform_indices = @transform_19, window_bounds = array<i64: 1, 1, 128>}, {pipeline_mode = #tpu.pipeline_mode<synchronous>, transform_indices = @transform_20, window_bounds = array<i64: 1, 1, 128>}, {pipeline_mode = #tpu.pipeline_mode<synchronous>, transform_indices = @transform_21, window_bounds = array<i64: 1, 1, 128>}, {pipeline_mode = #tpu.pipeline_mode<synchronous>, transform_indices = @transform_22, window_bounds = array<i64: 1, 384, 128>}, {pipeline_mode = #tpu.pipeline_mode<synchronous>, transform_indices = @transform_23, window_bounds = array<i64: 1, 384, 128>}, {pipeline_mode = #tpu.pipeline_mode<synchronous>, transform_indices = @transform_24, window_bounds = array<i64: 1, 1, 384>}, {pipeline_mode = #tpu.pipeline_mode<synchronous>, transform_indices = @transform_25, window_bounds = array<i64: 1, 1, 384>}, {pipeline_mode = #tpu.pipeline_mode<synchronous>, transform_indices = @transform_26, window_bounds = array<i64: 128, 128>}, {pipeline_mode = #tpu.pipeline_mode<synchronous>, transform_indices = @transform_27, window_bounds = array<i64: 1, 128>}, {pipeline_mode = #tpu.pipeline_mode<synchronous>, transform_indices = @transform_28, window_bounds = array<i64: 1, 128>}, {pipeline_mode = #tpu.pipeline_mode<synchronous>, transform_indices = @transform_29, window_bounds = array<i64: 1, 128>}, {pipeline_mode = #tpu.pipeline_mode<synchronous>, transform_indices = @transform_30, window_bounds = array<i64: 384, 128>}, {pipeline_mode = #tpu.pipeline_mode<synchronous>, transform_indices = @transform_31, window_bounds = array<i64: 384, 128>}, {pipeline_mode = #tpu.pipeline_mode<synchronous>, transform_indices = @transform_32, window_bounds = array<i64: 1, 384>}, {pipeline_mode = #tpu.pipeline_mode<synchronous>, transform_indices = @transform_33, window_bounds = array<i64: 1, 384>}, {pipeline_mode = #tpu.pipeline_mode<synchronous>, transform_indices = @transform_34, window_bounds = array<i64: 128, 128>}, {pipeline_mode = #tpu.pipeline_mode<synchronous>, transform_indices = @transform_35, window_bounds = array<i64: 1, 128>}, {pipeline_mode = #tpu.pipeline_mode<synchronous>, transform_indices = @transform_36, window_bounds = array<i64: 128, 128>}, {pipeline_mode = #tpu.pipeline_mode<synchronous>, transform_indices = @transform_37, window_bounds = array<i64: 1, 128>}, {pipeline_mode = #tpu.pipeline_mode<synchronous>, transform_indices = @transform_38, window_bounds = array<i64: 8, 128>}, {pipeline_mode = #tpu.pipeline_mode<synchronous>, transform_indices = @transform_39, window_bounds = array<i64: 8, 128>}]} {
    %c0 = arith.constant 0 : index
    %c0_0 = arith.constant 0 : index
    %0 = vector.load %arg2[%c0, %c0_0] : memref<8x8xf32, #tpu.memory_space<vmem>>, vector<8x8xf32>
    %c0_1 = arith.constant 0 : index
    %c0_2 = arith.constant 0 : index
    %1 = vector.load %arg6[%c0_1, %c0_2] : memref<8x8xf32, #tpu.memory_space<vmem>>, vector<8x8xf32>
    %c0_3 = arith.constant 0 : index
    %c0_4 = arith.constant 0 : index
    %2 = vector.load %arg1[%c0_3, %c0_4] : memref<8x128xf32, #tpu.memory_space<vmem>>, vector<8x128xf32>
    %c0_5 = arith.constant 0 : index
    %c0_6 = arith.constant 0 : index
    %3 = vector.load %arg7[%c0_5, %c0_6] : memref<128x128xf32, #tpu.memory_space<vmem>>, vector<128x128xf32>
    %cst = arith.constant dense<0.000000e+00> : vector<8x128xf32>
    %4 = tpu.matmul %2, %3, %cst {dimension_numbers = #tpu.dot_dimension_numbers<[1], [1], [0], [0], [0, 0, 1, 0], [], []>} : vector<8x128xf32>, vector<128x128xf32>, vector<8x128xf32> -> vector<8x128xf32>
    %c0_7 = arith.constant 0 : index
    %c0_8 = arith.constant 0 : index
    %5 = vector.load %arg8[%c0_7, %c0_8] : memref<1x128xf32, #tpu.memory_space<vmem>>, vector<1x128xf32>
    %6 = vector.broadcast %5 : vector<1x128xf32> to vector<8x128xf32>
    %7 = arith.addf %4, %6 : vector<8x128xf32>
    %cst_9 = arith.constant 0.000000e+00 : f32
    %8 = vector.broadcast %cst_9 : f32 to vector<8x128xf32>
    %9 = arith.cmpf oge, %7, %8 : vector<8x128xf32>
    %cst_10 = arith.constant 0.00999999977 : f32
    %10 = vector.broadcast %cst_10 : f32 to vector<8x128xf32>
    %11 = arith.mulf %10, %7 : vector<8x128xf32>
    %12 = arith.select %9, %7, %11 : vector<8x128xi1>, vector<8x128xf32>
    %c0_11 = arith.constant 0 : index
    %c0_12 = arith.constant 0 : index
    %13 = vector.load %arg3[%c0_11, %c0_12] : memref<16x8xf32, #tpu.memory_space<vmem>>, vector<16x8xf32>
    %c0_13 = arith.constant 0 : index
    %c0_14 = arith.constant 0 : index
    %14 = vector.load %arg9[%c0_13, %c0_14] : memref<128x128xf32, #tpu.memory_space<vmem>>, vector<128x128xf32>
    %cst_15 = arith.constant dense<0.000000e+00> : vector<8x128xf32>
    %15 = tpu.matmul %12, %14, %cst_15 {dimension_numbers = #tpu.dot_dimension_numbers<[1], [1], [0], [0], [0, 0, 1, 0], [], []>} : vector<8x128xf32>, vector<128x128xf32>, vector<8x128xf32> -> vector<8x128xf32>
    %c0_16 = arith.constant 0 : index
    %c0_17 = arith.constant 0 : index
    %16 = vector.load %arg5[%c0_16, %c0_17] : memref<16x128xf32, #tpu.memory_space<vmem>>, vector<16x128xf32>
    %c0_18 = arith.constant 0 : index
    %c0_19 = arith.constant 0 : index
    %17 = vector.load %arg10[%c0_18, %c0_19] : memref<128x128xf32, #tpu.memory_space<vmem>>, vector<128x128xf32>
    %cst_20 = arith.constant dense<0.000000e+00> : vector<16x128xf32>
    %18 = tpu.matmul %16, %17, %cst_20 {dimension_numbers = #tpu.dot_dimension_numbers<[1], [1], [0], [0], [0, 0, 1, 0], [], []>} : vector<16x128xf32>, vector<128x128xf32>, vector<16x128xf32> -> vector<16x128xf32>
    %cst_21 = arith.constant dense<0.000000e+00> : vector<16x128xf32>
    %19 = tpu.matmul %13, %15, %cst_21 {dimension_numbers = #tpu.dot_dimension_numbers<[1], [0], [0], [1], [0, 0, 1, 1], [], []>} : vector<16x8xf32>, vector<8x128xf32>, vector<16x128xf32> -> vector<16x128xf32>
    %20 = arith.addf %19, %18 : vector<16x128xf32>
    %cst_22 = arith.constant 0.000000e+00 : f32
    %21 = vector.broadcast %cst_22 : f32 to vector<16x128xf32>
    %22 = arith.cmpf oge, %20, %21 : vector<16x128xf32>
    %cst_23 = arith.constant 0.00999999977 : f32
    %23 = vector.broadcast %cst_23 : f32 to vector<16x128xf32>
    %24 = arith.mulf %23, %20 : vector<16x128xf32>
    %25 = arith.select %22, %20, %24 : vector<16x128xi1>, vector<16x128xf32>
    %c0_24 = arith.constant 0 : index
    %c0_25 = arith.constant 0 : index
    %26 = vector.load %arg11[%c0_24, %c0_25] : memref<1x128xf32, #tpu.memory_space<vmem>>, vector<1x128xf32>
    %cst_26 = arith.constant dense<0.000000e+00> : vector<16x1xf32>
    %27 = tpu.matmul %25, %26, %cst_26 {dimension_numbers = #tpu.dot_dimension_numbers<[1], [1], [0], [0], [0, 0, 1, 0], [], []>} : vector<16x128xf32>, vector<1x128xf32>, vector<16x1xf32> -> vector<16x1xf32>
    %c0_27 = arith.constant 0 : index
    %c0_28 = arith.constant 0 : index
    %28 = vector.load %arg4[%c0_27, %c0_28] : memref<8x16xf32, #tpu.memory_space<vmem>>, vector<8x16xf32>
    %29 = vector.broadcast %27 : vector<16x1xf32> to vector<16x8xf32>
    %30 = arith.mulf %29, %13 : vector<16x8xf32>
    %cst_29 = arith.constant dense<0.000000e+00> : vector<8x8xf32>
    %31 = tpu.matmul %28, %30, %cst_29 {dimension_numbers = #tpu.dot_dimension_numbers<[1], [0], [0], [1], [0, 0, 1, 1], [], []>} : vector<8x16xf32>, vector<16x8xf32>, vector<8x8xf32> -> vector<8x8xf32>
    %c0_30 = arith.constant 0 : index
    %c0_31 = arith.constant 0 : index
    %32 = vector.load %arg12[%c0_30, %c0_31] : memref<1x128xf32, #tpu.memory_space<vmem>>, vector<1x128xf32>
    %cst_32 = arith.constant dense<0.000000e+00> : vector<8x1xf32>
    %33 = tpu.matmul %12, %32, %cst_32 {dimension_numbers = #tpu.dot_dimension_numbers<[1], [1], [0], [0], [0, 0, 1, 0], [], []>} : vector<8x128xf32>, vector<1x128xf32>, vector<8x1xf32> -> vector<8x1xf32>
    %34 = vector.broadcast %33 : vector<8x1xf32> to vector<8x8xf32>
    %35 = arith.addf %31, %34 : vector<8x8xf32>
    %cst_33 = arith.constant 0.000000e+00 : f32
    %36 = vector.broadcast %cst_33 : f32 to vector<8x8xf32>
    %37 = arith.cmpf oge, %35, %36 : vector<8x8xf32>
    %cst_34 = arith.constant 0.00999999977 : f32
    %38 = vector.broadcast %cst_34 : f32 to vector<8x8xf32>
    %39 = arith.mulf %38, %35 : vector<8x8xf32>
    %40 = arith.select %37, %35, %39 : vector<8x8xi1>, vector<8x8xf32>
    %cst_35 = arith.constant 0.000000e+00 : f32
    %41 = vector.broadcast %cst_35 : f32 to vector<8x8xf32>
    %42 = arith.cmpf ogt, %0, %41 : vector<8x8xf32>
    %cst_36 = arith.constant -1.000000e+30 : f32
    %43 = vector.broadcast %cst_36 : f32 to vector<8x8xf32>
    %44 = arith.select %42, %40, %43 : vector<8x8xi1>, vector<8x8xf32>
    %cst_37 = arith.constant dense<0xFF800000> : vector<8xf32>
    %45 = vector.multi_reduction <maximumf>, %44, %cst_37 [1] : vector<8x8xf32> to vector<8xf32>
    %46 = vector.shape_cast %45 : vector<8xf32> to vector<8x1xf32>
    %47 = vector.broadcast %46 : vector<8x1xf32> to vector<8x8xf32>
    %48 = arith.subf %44, %47 : vector<8x8xf32>
    %49 = math.exp %48 : vector<8x8xf32>
    %50 = arith.mulf %49, %0 : vector<8x8xf32>
    %cst_38 = arith.constant dense<0.000000e+00> : vector<8xf32>
    %51 = vector.multi_reduction <add>, %50, %cst_38 [1] : vector<8x8xf32> to vector<8xf32>
    %52 = vector.shape_cast %51 : vector<8xf32> to vector<8x1xf32>
    %cst_39 = arith.constant 1.000000e-16 : f32
    %53 = vector.broadcast %cst_39 : f32 to vector<8x1xf32>
    %54 = arith.maximumf %52, %53 : vector<8x1xf32>
    %55 = tpu.reciprocal %54 {approx = true} : vector<8x1xf32> -> vector<8x1xf32>
    %56 = vector.broadcast %55 : vector<8x1xf32> to vector<8x8xf32>
    %57 = arith.mulf %50, %56 : vector<8x8xf32>
    %c0_40 = arith.constant 0 : index
    %c0_41 = arith.constant 0 : index
    %58 = vector.load %arg13[%c0_40, %c0_41] : memref<128x128xf32, #tpu.memory_space<vmem>>, vector<128x128xf32>
    %cst_42 = arith.constant dense<0.000000e+00> : vector<8x128xf32>
    %59 = tpu.matmul %12, %58, %cst_42 {dimension_numbers = #tpu.dot_dimension_numbers<[1], [1], [0], [0], [0, 0, 1, 0], [], []>} : vector<8x128xf32>, vector<128x128xf32>, vector<8x128xf32> -> vector<8x128xf32>
    %cst_43 = arith.constant dense<0.000000e+00> : vector<8x128xf32>
    %60 = tpu.matmul %57, %59, %cst_43 {dimension_numbers = #tpu.dot_dimension_numbers<[1], [0], [0], [1], [0, 0, 1, 1], [], []>} : vector<8x8xf32>, vector<8x128xf32>, vector<8x128xf32> -> vector<8x128xf32>
    %c0_44 = arith.constant 0 : index
    %c0_45 = arith.constant 0 : index
    %61 = vector.load %arg14[%c0_44, %c0_45] : memref<1x128xf32, #tpu.memory_space<vmem>>, vector<1x128xf32>
    %62 = vector.broadcast %61 : vector<1x128xf32> to vector<8x128xf32>
    %63 = arith.addf %60, %62 : vector<8x128xf32>
    %cst_46 = arith.constant 0.000000e+00 : f32
    %64 = vector.broadcast %cst_46 : f32 to vector<8x128xf32>
    %65 = arith.cmpf ogt, %63, %64 : vector<8x128xf32>
    %cst_47 = arith.constant 0.000000e+00 : f32
    %66 = vector.broadcast %cst_47 : f32 to vector<8x128xf32>
    %67 = arith.minimumf %63, %66 : vector<8x128xf32>
    %68 = math.exp %67 : vector<8x128xf32>
    %cst_48 = arith.constant 1.000000e+00 : f32
    %69 = vector.broadcast %cst_48 : f32 to vector<8x128xf32>
    %70 = arith.subf %68, %69 : vector<8x128xf32>
    %71 = arith.select %65, %63, %70 : vector<8x128xi1>, vector<8x128xf32>
    %c0_49 = arith.constant 0 : index
    %c0_50 = arith.constant 0 : index
    %72 = vector.load %arg15[%c0_49, %c0_50] : memref<384x128xf32, #tpu.memory_space<vmem>>, vector<384x128xf32>
    %c0_51 = arith.constant 0 : index
    %c0_52 = arith.constant 0 : index
    %73 = vector.load %arg16[%c0_51, %c0_52] : memref<384x128xf32, #tpu.memory_space<vmem>>, vector<384x128xf32>
    %c0_53 = arith.constant 0 : index
    %c0_54 = arith.constant 0 : index
    %74 = vector.load %arg17[%c0_53, %c0_54] : memref<1x384xf32, #tpu.memory_space<vmem>>, vector<1x384xf32>
    %c0_55 = arith.constant 0 : index
    %c0_56 = arith.constant 0 : index
    %75 = vector.load %arg18[%c0_55, %c0_56] : memref<1x384xf32, #tpu.memory_space<vmem>>, vector<1x384xf32>
    %cst_57 = arith.constant dense<0.000000e+00> : vector<8x384xf32>
    %76 = tpu.matmul %71, %72, %cst_57 {dimension_numbers = #tpu.dot_dimension_numbers<[1], [1], [0], [0], [0, 0, 1, 0], [], []>} : vector<8x128xf32>, vector<384x128xf32>, vector<8x384xf32> -> vector<8x384xf32>
    %77 = vector.broadcast %74 : vector<1x384xf32> to vector<8x384xf32>
    %78 = arith.addf %76, %77 : vector<8x384xf32>
    %cst_58 = arith.constant dense<0.000000e+00> : vector<8x384xf32>
    %79 = tpu.matmul %12, %73, %cst_58 {dimension_numbers = #tpu.dot_dimension_numbers<[1], [1], [0], [0], [0, 0, 1, 0], [], []>} : vector<8x128xf32>, vector<384x128xf32>, vector<8x384xf32> -> vector<8x384xf32>
    %80 = vector.broadcast %75 : vector<1x384xf32> to vector<8x384xf32>
    %81 = arith.addf %79, %80 : vector<8x384xf32>
    %82 = vector.extract_strided_slice %78 {offsets = [0, 0], sizes = [8, 128], strides = [1, 1]} : vector<8x384xf32> to vector<8x128xf32>
    %83 = vector.extract_strided_slice %81 {offsets = [0, 0], sizes = [8, 128], strides = [1, 1]} : vector<8x384xf32> to vector<8x128xf32>
    %84 = arith.addf %82, %83 : vector<8x128xf32>
    %85 = arith.negf %84 : vector<8x128xf32>
    %86 = math.exp %85 : vector<8x128xf32>
    %cst_59 = arith.constant 1.000000e+00 : f32
    %87 = vector.broadcast %cst_59 : f32 to vector<8x128xf32>
    %88 = arith.addf %87, %86 : vector<8x128xf32>
    %89 = arith.divf %87, %88 : vector<8x128xf32>
    %90 = vector.extract_strided_slice %78 {offsets = [0, 128], sizes = [8, 128], strides = [1, 1]} : vector<8x384xf32> to vector<8x128xf32>
    %91 = vector.extract_strided_slice %81 {offsets = [0, 128], sizes = [8, 128], strides = [1, 1]} : vector<8x384xf32> to vector<8x128xf32>
    %92 = arith.addf %90, %91 : vector<8x128xf32>
    %93 = arith.negf %92 : vector<8x128xf32>
    %94 = math.exp %93 : vector<8x128xf32>
    %cst_60 = arith.constant 1.000000e+00 : f32
    %95 = vector.broadcast %cst_60 : f32 to vector<8x128xf32>
    %96 = arith.addf %95, %94 : vector<8x128xf32>
    %97 = arith.divf %95, %96 : vector<8x128xf32>
    %98 = vector.extract_strided_slice %78 {offsets = [0, 256], sizes = [8, 128], strides = [1, 1]} : vector<8x384xf32> to vector<8x128xf32>
    %99 = vector.extract_strided_slice %81 {offsets = [0, 256], sizes = [8, 128], strides = [1, 1]} : vector<8x384xf32> to vector<8x128xf32>
    %100 = arith.mulf %89, %99 : vector<8x128xf32>
    %101 = arith.addf %98, %100 : vector<8x128xf32>
    %102 = math.tanh %101 : vector<8x128xf32>
    %cst_61 = arith.constant 1.000000e+00 : f32
    %103 = vector.broadcast %cst_61 : f32 to vector<8x128xf32>
    %104 = arith.subf %103, %97 : vector<8x128xf32>
    %105 = arith.mulf %104, %102 : vector<8x128xf32>
    %106 = arith.mulf %97, %12 : vector<8x128xf32>
    %107 = arith.addf %105, %106 : vector<8x128xf32>
    %cst_62 = arith.constant 0.000000e+00 : f32
    %108 = vector.broadcast %cst_62 : f32 to vector<8x128xf32>
    %109 = arith.maximumf %107, %108 : vector<8x128xf32>
    %c0_63 = arith.constant 0 : index
    %c0_64 = arith.constant 0 : index
    %c0_65 = arith.constant 0 : index
    %110 = vector.load %arg19[%c0_63, %c0_64, %c0_65] : memref<1x128x128xf32, #tpu.memory_space<vmem>>, vector<1x128x128xf32>
    %111 = vector.shape_cast %110 : vector<1x128x128xf32> to vector<128x128xf32>
    %cst_66 = arith.constant dense<0.000000e+00> : vector<8x128xf32>
    %112 = tpu.matmul %109, %111, %cst_66 {dimension_numbers = #tpu.dot_dimension_numbers<[1], [1], [0], [0], [0, 0, 1, 0], [], []>} : vector<8x128xf32>, vector<128x128xf32>, vector<8x128xf32> -> vector<8x128xf32>
    %c0_67 = arith.constant 0 : index
    %c0_68 = arith.constant 0 : index
    %c0_69 = arith.constant 0 : index
    %113 = vector.load %arg20[%c0_67, %c0_68, %c0_69] : memref<1x1x128xf32, #tpu.memory_space<vmem>>, vector<1x1x128xf32>
    %114 = vector.shape_cast %113 : vector<1x1x128xf32> to vector<1x128xf32>
    %c0_70 = arith.constant 0 : index
    %c0_71 = arith.constant 0 : index
    %c0_72 = arith.constant 0 : index
    %115 = vector.load %arg21[%c0_70, %c0_71, %c0_72] : memref<1x1x128xf32, #tpu.memory_space<vmem>>, vector<1x1x128xf32>
    %116 = vector.shape_cast %115 : vector<1x1x128xf32> to vector<1x128xf32>
    %c0_73 = arith.constant 0 : index
    %c0_74 = arith.constant 0 : index
    %c0_75 = arith.constant 0 : index
    %117 = vector.load %arg22[%c0_73, %c0_74, %c0_75] : memref<1x1x128xf32, #tpu.memory_space<vmem>>, vector<1x1x128xf32>
    %118 = vector.shape_cast %117 : vector<1x1x128xf32> to vector<1x128xf32>
    %cst_76 = arith.constant dense<0.000000e+00> : vector<1x8xf32>
    %119 = tpu.matmul %114, %112, %cst_76 {dimension_numbers = #tpu.dot_dimension_numbers<[1], [1], [0], [0], [0, 0, 1, 0], [], []>} : vector<1x128xf32>, vector<8x128xf32>, vector<1x8xf32> -> vector<1x8xf32>
    %cst_77 = arith.constant dense<0.000000e+00> : vector<8x1xf32>
    %120 = tpu.matmul %112, %116, %cst_77 {dimension_numbers = #tpu.dot_dimension_numbers<[1], [1], [0], [0], [0, 0, 1, 0], [], []>} : vector<8x128xf32>, vector<1x128xf32>, vector<8x1xf32> -> vector<8x1xf32>
    %121 = vector.broadcast %120 : vector<8x1xf32> to vector<8x8xf32>
    %122 = vector.broadcast %119 : vector<1x8xf32> to vector<8x8xf32>
    %123 = arith.addf %121, %122 : vector<8x8xf32>
    %cst_78 = arith.constant 0.000000e+00 : f32
    %124 = vector.broadcast %cst_78 : f32 to vector<8x8xf32>
    %125 = arith.cmpf oge, %123, %124 : vector<8x8xf32>
    %cst_79 = arith.constant 0.00999999977 : f32
    %126 = vector.broadcast %cst_79 : f32 to vector<8x8xf32>
    %127 = arith.mulf %126, %123 : vector<8x8xf32>
    %128 = arith.select %125, %123, %127 : vector<8x8xi1>, vector<8x8xf32>
    %cst_80 = arith.constant 0.000000e+00 : f32
    %129 = vector.broadcast %cst_80 : f32 to vector<8x8xf32>
    %130 = arith.cmpf ogt, %0, %129 : vector<8x8xf32>
    %cst_81 = arith.constant -1.000000e+30 : f32
    %131 = vector.broadcast %cst_81 : f32 to vector<8x8xf32>
    %132 = arith.select %130, %128, %131 : vector<8x8xi1>, vector<8x8xf32>
    %cst_82 = arith.constant dense<0xFF800000> : vector<8xf32>
    %133 = vector.multi_reduction <maximumf>, %132, %cst_82 [1] : vector<8x8xf32> to vector<8xf32>
    %134 = vector.shape_cast %133 : vector<8xf32> to vector<8x1xf32>
    %135 = vector.broadcast %134 : vector<8x1xf32> to vector<8x8xf32>
    %136 = arith.subf %132, %135 : vector<8x8xf32>
    %137 = math.exp %136 : vector<8x8xf32>
    %138 = arith.mulf %137, %0 : vector<8x8xf32>
    %cst_83 = arith.constant dense<0.000000e+00> : vector<8xf32>
    %139 = vector.multi_reduction <add>, %138, %cst_83 [1] : vector<8x8xf32> to vector<8xf32>
    %140 = vector.shape_cast %139 : vector<8xf32> to vector<8x1xf32>
    %cst_84 = arith.constant 1.000000e-16 : f32
    %141 = vector.broadcast %cst_84 : f32 to vector<8x1xf32>
    %142 = arith.maximumf %140, %141 : vector<8x1xf32>
    %143 = tpu.reciprocal %142 {approx = true} : vector<8x1xf32> -> vector<8x1xf32>
    %144 = vector.broadcast %143 : vector<8x1xf32> to vector<8x8xf32>
    %145 = arith.mulf %138, %144 : vector<8x8xf32>
    %cst_85 = arith.constant dense<0.000000e+00> : vector<8x128xf32>
    %146 = tpu.matmul %145, %112, %cst_85 {dimension_numbers = #tpu.dot_dimension_numbers<[1], [0], [0], [1], [0, 0, 1, 1], [], []>} : vector<8x8xf32>, vector<8x128xf32>, vector<8x128xf32> -> vector<8x128xf32>
    %147 = vector.broadcast %118 : vector<1x128xf32> to vector<8x128xf32>
    %148 = arith.addf %146, %147 : vector<8x128xf32>
    %cst_86 = arith.constant 0.000000e+00 : f32
    %149 = vector.broadcast %cst_86 : f32 to vector<8x128xf32>
    %150 = arith.cmpf ogt, %148, %149 : vector<8x128xf32>
    %cst_87 = arith.constant 0.000000e+00 : f32
    %151 = vector.broadcast %cst_87 : f32 to vector<8x128xf32>
    %152 = arith.minimumf %148, %151 : vector<8x128xf32>
    %153 = math.exp %152 : vector<8x128xf32>
    %cst_88 = arith.constant 1.000000e+00 : f32
    %154 = vector.broadcast %cst_88 : f32 to vector<8x128xf32>
    %155 = arith.subf %153, %154 : vector<8x128xf32>
    %156 = arith.select %150, %148, %155 : vector<8x128xi1>, vector<8x128xf32>
    %c0_89 = arith.constant 0 : index
    %c0_90 = arith.constant 0 : index
    %c0_91 = arith.constant 0 : index
    %157 = vector.load %arg23[%c0_89, %c0_90, %c0_91] : memref<1x384x128xf32, #tpu.memory_space<vmem>>, vector<1x384x128xf32>
    %158 = vector.shape_cast %157 : vector<1x384x128xf32> to vector<384x128xf32>
    %c0_92 = arith.constant 0 : index
    %c0_93 = arith.constant 0 : index
    %c0_94 = arith.constant 0 : index
    %159 = vector.load %arg24[%c0_92, %c0_93, %c0_94] : memref<1x384x128xf32, #tpu.memory_space<vmem>>, vector<1x384x128xf32>
    %160 = vector.shape_cast %159 : vector<1x384x128xf32> to vector<384x128xf32>
    %c0_95 = arith.constant 0 : index
    %c0_96 = arith.constant 0 : index
    %c0_97 = arith.constant 0 : index
    %161 = vector.load %arg25[%c0_95, %c0_96, %c0_97] : memref<1x1x384xf32, #tpu.memory_space<vmem>>, vector<1x1x384xf32>
    %162 = vector.shape_cast %161 : vector<1x1x384xf32> to vector<1x384xf32>
    %c0_98 = arith.constant 0 : index
    %c0_99 = arith.constant 0 : index
    %c0_100 = arith.constant 0 : index
    %163 = vector.load %arg26[%c0_98, %c0_99, %c0_100] : memref<1x1x384xf32, #tpu.memory_space<vmem>>, vector<1x1x384xf32>
    %164 = vector.shape_cast %163 : vector<1x1x384xf32> to vector<1x384xf32>
    %cst_101 = arith.constant dense<0.000000e+00> : vector<8x384xf32>
    %165 = tpu.matmul %156, %158, %cst_101 {dimension_numbers = #tpu.dot_dimension_numbers<[1], [1], [0], [0], [0, 0, 1, 0], [], []>} : vector<8x128xf32>, vector<384x128xf32>, vector<8x384xf32> -> vector<8x384xf32>
    %166 = vector.broadcast %162 : vector<1x384xf32> to vector<8x384xf32>
    %167 = arith.addf %165, %166 : vector<8x384xf32>
    %cst_102 = arith.constant dense<0.000000e+00> : vector<8x384xf32>
    %168 = tpu.matmul %109, %160, %cst_102 {dimension_numbers = #tpu.dot_dimension_numbers<[1], [1], [0], [0], [0, 0, 1, 0], [], []>} : vector<8x128xf32>, vector<384x128xf32>, vector<8x384xf32> -> vector<8x384xf32>
    %169 = vector.broadcast %164 : vector<1x384xf32> to vector<8x384xf32>
    %170 = arith.addf %168, %169 : vector<8x384xf32>
    %171 = vector.extract_strided_slice %167 {offsets = [0, 0], sizes = [8, 128], strides = [1, 1]} : vector<8x384xf32> to vector<8x128xf32>
    %172 = vector.extract_strided_slice %170 {offsets = [0, 0], sizes = [8, 128], strides = [1, 1]} : vector<8x384xf32> to vector<8x128xf32>
    %173 = arith.addf %171, %172 : vector<8x128xf32>
    %174 = arith.negf %173 : vector<8x128xf32>
    %175 = math.exp %174 : vector<8x128xf32>
    %cst_103 = arith.constant 1.000000e+00 : f32
    %176 = vector.broadcast %cst_103 : f32 to vector<8x128xf32>
    %177 = arith.addf %176, %175 : vector<8x128xf32>
    %178 = arith.divf %176, %177 : vector<8x128xf32>
    %179 = vector.extract_strided_slice %167 {offsets = [0, 128], sizes = [8, 128], strides = [1, 1]} : vector<8x384xf32> to vector<8x128xf32>
    %180 = vector.extract_strided_slice %170 {offsets = [0, 128], sizes = [8, 128], strides = [1, 1]} : vector<8x384xf32> to vector<8x128xf32>
    %181 = arith.addf %179, %180 : vector<8x128xf32>
    %182 = arith.negf %181 : vector<8x128xf32>
    %183 = math.exp %182 : vector<8x128xf32>
    %cst_104 = arith.constant 1.000000e+00 : f32
    %184 = vector.broadcast %cst_104 : f32 to vector<8x128xf32>
    %185 = arith.addf %184, %183 : vector<8x128xf32>
    %186 = arith.divf %184, %185 : vector<8x128xf32>
    %187 = vector.extract_strided_slice %167 {offsets = [0, 256], sizes = [8, 128], strides = [1, 1]} : vector<8x384xf32> to vector<8x128xf32>
    %188 = vector.extract_strided_slice %170 {offsets = [0, 256], sizes = [8, 128], strides = [1, 1]} : vector<8x384xf32> to vector<8x128xf32>
    %189 = arith.mulf %178, %188 : vector<8x128xf32>
    %190 = arith.addf %187, %189 : vector<8x128xf32>
    %191 = math.tanh %190 : vector<8x128xf32>
    %cst_105 = arith.constant 1.000000e+00 : f32
    %192 = vector.broadcast %cst_105 : f32 to vector<8x128xf32>
    %193 = arith.subf %192, %186 : vector<8x128xf32>
    %194 = arith.mulf %193, %191 : vector<8x128xf32>
    %195 = arith.mulf %186, %109 : vector<8x128xf32>
    %196 = arith.addf %194, %195 : vector<8x128xf32>
    %cst_106 = arith.constant 0.000000e+00 : f32
    %197 = vector.broadcast %cst_106 : f32 to vector<8x128xf32>
    %198 = arith.maximumf %196, %197 : vector<8x128xf32>
    %cst_107 = arith.constant dense<0.000000e+00> : vector<8x128xf32>
    %199 = tpu.matmul %1, %198, %cst_107 {dimension_numbers = #tpu.dot_dimension_numbers<[1], [0], [0], [1], [0, 0, 1, 1], [], []>} : vector<8x8xf32>, vector<8x128xf32>, vector<8x128xf32> -> vector<8x128xf32>
    %cst_108 = arith.constant 0.000000e+00 : f32
    %200 = vector.broadcast %cst_108 : f32 to vector<8x128xf32>
    %201 = arith.maximumf %199, %200 : vector<8x128xf32>
    %c0_109 = arith.constant 0 : index
    %c0_110 = arith.constant 0 : index
    %202 = vector.load %arg27[%c0_109, %c0_110] : memref<128x128xf32, #tpu.memory_space<vmem>>, vector<128x128xf32>
    %cst_111 = arith.constant dense<0.000000e+00> : vector<8x128xf32>
    %203 = tpu.matmul %198, %202, %cst_111 {dimension_numbers = #tpu.dot_dimension_numbers<[1], [1], [0], [0], [0, 0, 1, 0], [], []>} : vector<8x128xf32>, vector<128x128xf32>, vector<8x128xf32> -> vector<8x128xf32>
    %c0_112 = arith.constant 0 : index
    %c0_113 = arith.constant 0 : index
    %204 = vector.load %arg28[%c0_112, %c0_113] : memref<1x128xf32, #tpu.memory_space<vmem>>, vector<1x128xf32>
    %cst_114 = arith.constant dense<0.000000e+00> : vector<1x8xf32>
    %205 = tpu.matmul %204, %203, %cst_114 {dimension_numbers = #tpu.dot_dimension_numbers<[1], [1], [0], [0], [0, 0, 1, 0], [], []>} : vector<1x128xf32>, vector<8x128xf32>, vector<1x8xf32> -> vector<1x8xf32>
    %c0_115 = arith.constant 0 : index
    %c0_116 = arith.constant 0 : index
    %206 = vector.load %arg29[%c0_115, %c0_116] : memref<1x128xf32, #tpu.memory_space<vmem>>, vector<1x128xf32>
    %cst_117 = arith.constant dense<0.000000e+00> : vector<1x128xf32>
    %207 = tpu.matmul %206, %202, %cst_117 {dimension_numbers = #tpu.dot_dimension_numbers<[1], [1], [0], [0], [0, 0, 1, 0], [], []>} : vector<1x128xf32>, vector<128x128xf32>, vector<1x128xf32> -> vector<1x128xf32>
    %c0_118 = arith.constant 0 : index
    %c0_119 = arith.constant 0 : index
    %208 = vector.load %arg30[%c0_118, %c0_119] : memref<1x128xf32, #tpu.memory_space<vmem>>, vector<1x128xf32>
    %c0_120 = arith.constant 0 : index
    %c0_121 = arith.constant 0 : index
    %209 = vector.load %arg31[%c0_120, %c0_121] : memref<384x128xf32, #tpu.memory_space<vmem>>, vector<384x128xf32>
    %c0_122 = arith.constant 0 : index
    %c0_123 = arith.constant 0 : index
    %210 = vector.load %arg32[%c0_122, %c0_123] : memref<384x128xf32, #tpu.memory_space<vmem>>, vector<384x128xf32>
    %c0_124 = arith.constant 0 : index
    %c0_125 = arith.constant 0 : index
    %211 = vector.load %arg33[%c0_124, %c0_125] : memref<1x384xf32, #tpu.memory_space<vmem>>, vector<1x384xf32>
    %c0_126 = arith.constant 0 : index
    %c0_127 = arith.constant 0 : index
    %212 = vector.load %arg34[%c0_126, %c0_127] : memref<1x384xf32, #tpu.memory_space<vmem>>, vector<1x384xf32>
    %cst_128 = arith.constant dense<0.000000e+00> : vector<8x1xf32>
    %213 = tpu.matmul %201, %207, %cst_128 {dimension_numbers = #tpu.dot_dimension_numbers<[1], [1], [0], [0], [0, 0, 1, 0], [], []>} : vector<8x128xf32>, vector<1x128xf32>, vector<8x1xf32> -> vector<8x1xf32>
    %214 = vector.broadcast %213 : vector<8x1xf32> to vector<8x8xf32>
    %215 = vector.broadcast %205 : vector<1x8xf32> to vector<8x8xf32>
    %216 = arith.addf %214, %215 : vector<8x8xf32>
    %cst_129 = arith.constant 0.000000e+00 : f32
    %217 = vector.broadcast %cst_129 : f32 to vector<8x8xf32>
    %218 = arith.cmpf oge, %216, %217 : vector<8x8xf32>
    %cst_130 = arith.constant 0.00999999977 : f32
    %219 = vector.broadcast %cst_130 : f32 to vector<8x8xf32>
    %220 = arith.mulf %219, %216 : vector<8x8xf32>
    %221 = arith.select %218, %216, %220 : vector<8x8xi1>, vector<8x8xf32>
    %cst_131 = arith.constant 0.000000e+00 : f32
    %222 = vector.broadcast %cst_131 : f32 to vector<8x8xf32>
    %223 = arith.cmpf ogt, %1, %222 : vector<8x8xf32>
    %cst_132 = arith.constant -1.000000e+30 : f32
    %224 = vector.broadcast %cst_132 : f32 to vector<8x8xf32>
    %225 = arith.select %223, %221, %224 : vector<8x8xi1>, vector<8x8xf32>
    %cst_133 = arith.constant dense<0xFF800000> : vector<8xf32>
    %226 = vector.multi_reduction <maximumf>, %225, %cst_133 [1] : vector<8x8xf32> to vector<8xf32>
    %227 = vector.shape_cast %226 : vector<8xf32> to vector<8x1xf32>
    %228 = vector.broadcast %227 : vector<8x1xf32> to vector<8x8xf32>
    %229 = arith.subf %225, %228 : vector<8x8xf32>
    %230 = math.exp %229 : vector<8x8xf32>
    %231 = arith.mulf %230, %1 : vector<8x8xf32>
    %cst_134 = arith.constant dense<0.000000e+00> : vector<8xf32>
    %232 = vector.multi_reduction <add>, %231, %cst_134 [1] : vector<8x8xf32> to vector<8xf32>
    %233 = vector.shape_cast %232 : vector<8xf32> to vector<8x1xf32>
    %cst_135 = arith.constant 1.000000e-16 : f32
    %234 = vector.broadcast %cst_135 : f32 to vector<8x1xf32>
    %235 = arith.maximumf %233, %234 : vector<8x1xf32>
    %236 = tpu.reciprocal %235 {approx = true} : vector<8x1xf32> -> vector<8x1xf32>
    %237 = vector.broadcast %236 : vector<8x1xf32> to vector<8x8xf32>
    %238 = arith.mulf %231, %237 : vector<8x8xf32>
    %cst_136 = arith.constant dense<0.000000e+00> : vector<8x128xf32>
    %239 = tpu.matmul %238, %203, %cst_136 {dimension_numbers = #tpu.dot_dimension_numbers<[1], [0], [0], [1], [0, 0, 1, 1], [], []>} : vector<8x8xf32>, vector<8x128xf32>, vector<8x128xf32> -> vector<8x128xf32>
    %240 = vector.broadcast %208 : vector<1x128xf32> to vector<8x128xf32>
    %241 = arith.addf %239, %240 : vector<8x128xf32>
    %cst_137 = arith.constant 0.000000e+00 : f32
    %242 = vector.broadcast %cst_137 : f32 to vector<8x128xf32>
    %243 = arith.cmpf ogt, %241, %242 : vector<8x128xf32>
    %cst_138 = arith.constant 0.000000e+00 : f32
    %244 = vector.broadcast %cst_138 : f32 to vector<8x128xf32>
    %245 = arith.minimumf %241, %244 : vector<8x128xf32>
    %246 = math.exp %245 : vector<8x128xf32>
    %cst_139 = arith.constant 1.000000e+00 : f32
    %247 = vector.broadcast %cst_139 : f32 to vector<8x128xf32>
    %248 = arith.subf %246, %247 : vector<8x128xf32>
    %249 = arith.select %243, %241, %248 : vector<8x128xi1>, vector<8x128xf32>
    %cst_140 = arith.constant dense<0.000000e+00> : vector<8x384xf32>
    %250 = tpu.matmul %249, %209, %cst_140 {dimension_numbers = #tpu.dot_dimension_numbers<[1], [1], [0], [0], [0, 0, 1, 0], [], []>} : vector<8x128xf32>, vector<384x128xf32>, vector<8x384xf32> -> vector<8x384xf32>
    %251 = vector.broadcast %211 : vector<1x384xf32> to vector<8x384xf32>
    %252 = arith.addf %250, %251 : vector<8x384xf32>
    %cst_141 = arith.constant dense<0.000000e+00> : vector<8x384xf32>
    %253 = tpu.matmul %201, %210, %cst_141 {dimension_numbers = #tpu.dot_dimension_numbers<[1], [1], [0], [0], [0, 0, 1, 0], [], []>} : vector<8x128xf32>, vector<384x128xf32>, vector<8x384xf32> -> vector<8x384xf32>
    %254 = vector.broadcast %212 : vector<1x384xf32> to vector<8x384xf32>
    %255 = arith.addf %253, %254 : vector<8x384xf32>
    %256 = vector.extract_strided_slice %252 {offsets = [0, 0], sizes = [8, 128], strides = [1, 1]} : vector<8x384xf32> to vector<8x128xf32>
    %257 = vector.extract_strided_slice %255 {offsets = [0, 0], sizes = [8, 128], strides = [1, 1]} : vector<8x384xf32> to vector<8x128xf32>
    %258 = arith.addf %256, %257 : vector<8x128xf32>
    %259 = arith.negf %258 : vector<8x128xf32>
    %260 = math.exp %259 : vector<8x128xf32>
    %cst_142 = arith.constant 1.000000e+00 : f32
    %261 = vector.broadcast %cst_142 : f32 to vector<8x128xf32>
    %262 = arith.addf %261, %260 : vector<8x128xf32>
    %263 = arith.divf %261, %262 : vector<8x128xf32>
    %264 = vector.extract_strided_slice %252 {offsets = [0, 128], sizes = [8, 128], strides = [1, 1]} : vector<8x384xf32> to vector<8x128xf32>
    %265 = vector.extract_strided_slice %255 {offsets = [0, 128], sizes = [8, 128], strides = [1, 1]} : vector<8x384xf32> to vector<8x128xf32>
    %266 = arith.addf %264, %265 : vector<8x128xf32>
    %267 = arith.negf %266 : vector<8x128xf32>
    %268 = math.exp %267 : vector<8x128xf32>
    %cst_143 = arith.constant 1.000000e+00 : f32
    %269 = vector.broadcast %cst_143 : f32 to vector<8x128xf32>
    %270 = arith.addf %269, %268 : vector<8x128xf32>
    %271 = arith.divf %269, %270 : vector<8x128xf32>
    %272 = vector.extract_strided_slice %252 {offsets = [0, 256], sizes = [8, 128], strides = [1, 1]} : vector<8x384xf32> to vector<8x128xf32>
    %273 = vector.extract_strided_slice %255 {offsets = [0, 256], sizes = [8, 128], strides = [1, 1]} : vector<8x384xf32> to vector<8x128xf32>
    %274 = arith.mulf %263, %273 : vector<8x128xf32>
    %275 = arith.addf %272, %274 : vector<8x128xf32>
    %276 = math.tanh %275 : vector<8x128xf32>
    %cst_144 = arith.constant 1.000000e+00 : f32
    %277 = vector.broadcast %cst_144 : f32 to vector<8x128xf32>
    %278 = arith.subf %277, %271 : vector<8x128xf32>
    %279 = arith.mulf %278, %276 : vector<8x128xf32>
    %280 = arith.mulf %271, %201 : vector<8x128xf32>
    %281 = arith.addf %279, %280 : vector<8x128xf32>
    %cst_145 = arith.constant 0.000000e+00 : f32
    %282 = vector.broadcast %cst_145 : f32 to vector<8x128xf32>
    %283 = arith.maximumf %281, %282 : vector<8x128xf32>
    %cst_146 = arith.constant dense<0.000000e+00> : vector<8x1xf32>
    %284 = tpu.matmul %283, %207, %cst_146 {dimension_numbers = #tpu.dot_dimension_numbers<[1], [1], [0], [0], [0, 0, 1, 0], [], []>} : vector<8x128xf32>, vector<1x128xf32>, vector<8x1xf32> -> vector<8x1xf32>
    %285 = vector.broadcast %284 : vector<8x1xf32> to vector<8x8xf32>
    %286 = vector.broadcast %205 : vector<1x8xf32> to vector<8x8xf32>
    %287 = arith.addf %285, %286 : vector<8x8xf32>
    %cst_147 = arith.constant 0.000000e+00 : f32
    %288 = vector.broadcast %cst_147 : f32 to vector<8x8xf32>
    %289 = arith.cmpf oge, %287, %288 : vector<8x8xf32>
    %cst_148 = arith.constant 0.00999999977 : f32
    %290 = vector.broadcast %cst_148 : f32 to vector<8x8xf32>
    %291 = arith.mulf %290, %287 : vector<8x8xf32>
    %292 = arith.select %289, %287, %291 : vector<8x8xi1>, vector<8x8xf32>
    %cst_149 = arith.constant 0.000000e+00 : f32
    %293 = vector.broadcast %cst_149 : f32 to vector<8x8xf32>
    %294 = arith.cmpf ogt, %1, %293 : vector<8x8xf32>
    %cst_150 = arith.constant -1.000000e+30 : f32
    %295 = vector.broadcast %cst_150 : f32 to vector<8x8xf32>
    %296 = arith.select %294, %292, %295 : vector<8x8xi1>, vector<8x8xf32>
    %cst_151 = arith.constant dense<0xFF800000> : vector<8xf32>
    %297 = vector.multi_reduction <maximumf>, %296, %cst_151 [1] : vector<8x8xf32> to vector<8xf32>
    %298 = vector.shape_cast %297 : vector<8xf32> to vector<8x1xf32>
    %299 = vector.broadcast %298 : vector<8x1xf32> to vector<8x8xf32>
    %300 = arith.subf %296, %299 : vector<8x8xf32>
    %301 = math.exp %300 : vector<8x8xf32>
    %302 = arith.mulf %301, %1 : vector<8x8xf32>
    %cst_152 = arith.constant dense<0.000000e+00> : vector<8xf32>
    %303 = vector.multi_reduction <add>, %302, %cst_152 [1] : vector<8x8xf32> to vector<8xf32>
    %304 = vector.shape_cast %303 : vector<8xf32> to vector<8x1xf32>
    %cst_153 = arith.constant 1.000000e-16 : f32
    %305 = vector.broadcast %cst_153 : f32 to vector<8x1xf32>
    %306 = arith.maximumf %304, %305 : vector<8x1xf32>
    %307 = tpu.reciprocal %306 {approx = true} : vector<8x1xf32> -> vector<8x1xf32>
    %308 = vector.broadcast %307 : vector<8x1xf32> to vector<8x8xf32>
    %309 = arith.mulf %302, %308 : vector<8x8xf32>
    %cst_154 = arith.constant dense<0.000000e+00> : vector<8x128xf32>
    %310 = tpu.matmul %309, %203, %cst_154 {dimension_numbers = #tpu.dot_dimension_numbers<[1], [0], [0], [1], [0, 0, 1, 1], [], []>} : vector<8x8xf32>, vector<8x128xf32>, vector<8x128xf32> -> vector<8x128xf32>
    %311 = vector.broadcast %208 : vector<1x128xf32> to vector<8x128xf32>
    %312 = arith.addf %310, %311 : vector<8x128xf32>
    %cst_155 = arith.constant 0.000000e+00 : f32
    %313 = vector.broadcast %cst_155 : f32 to vector<8x128xf32>
    %314 = arith.cmpf ogt, %312, %313 : vector<8x128xf32>
    %cst_156 = arith.constant 0.000000e+00 : f32
    %315 = vector.broadcast %cst_156 : f32 to vector<8x128xf32>
    %316 = arith.minimumf %312, %315 : vector<8x128xf32>
    %317 = math.exp %316 : vector<8x128xf32>
    %cst_157 = arith.constant 1.000000e+00 : f32
    %318 = vector.broadcast %cst_157 : f32 to vector<8x128xf32>
    %319 = arith.subf %317, %318 : vector<8x128xf32>
    %320 = arith.select %314, %312, %319 : vector<8x128xi1>, vector<8x128xf32>
    %cst_158 = arith.constant dense<0.000000e+00> : vector<8x384xf32>
    %321 = tpu.matmul %320, %209, %cst_158 {dimension_numbers = #tpu.dot_dimension_numbers<[1], [1], [0], [0], [0, 0, 1, 0], [], []>} : vector<8x128xf32>, vector<384x128xf32>, vector<8x384xf32> -> vector<8x384xf32>
    %322 = vector.broadcast %211 : vector<1x384xf32> to vector<8x384xf32>
    %323 = arith.addf %321, %322 : vector<8x384xf32>
    %cst_159 = arith.constant dense<0.000000e+00> : vector<8x384xf32>
    %324 = tpu.matmul %283, %210, %cst_159 {dimension_numbers = #tpu.dot_dimension_numbers<[1], [1], [0], [0], [0, 0, 1, 0], [], []>} : vector<8x128xf32>, vector<384x128xf32>, vector<8x384xf32> -> vector<8x384xf32>
    %325 = vector.broadcast %212 : vector<1x384xf32> to vector<8x384xf32>
    %326 = arith.addf %324, %325 : vector<8x384xf32>
    %327 = vector.extract_strided_slice %323 {offsets = [0, 0], sizes = [8, 128], strides = [1, 1]} : vector<8x384xf32> to vector<8x128xf32>
    %328 = vector.extract_strided_slice %326 {offsets = [0, 0], sizes = [8, 128], strides = [1, 1]} : vector<8x384xf32> to vector<8x128xf32>
    %329 = arith.addf %327, %328 : vector<8x128xf32>
    %330 = arith.negf %329 : vector<8x128xf32>
    %331 = math.exp %330 : vector<8x128xf32>
    %cst_160 = arith.constant 1.000000e+00 : f32
    %332 = vector.broadcast %cst_160 : f32 to vector<8x128xf32>
    %333 = arith.addf %332, %331 : vector<8x128xf32>
    %334 = arith.divf %332, %333 : vector<8x128xf32>
    %335 = vector.extract_strided_slice %323 {offsets = [0, 128], sizes = [8, 128], strides = [1, 1]} : vector<8x384xf32> to vector<8x128xf32>
    %336 = vector.extract_strided_slice %326 {offsets = [0, 128], sizes = [8, 128], strides = [1, 1]} : vector<8x384xf32> to vector<8x128xf32>
    %337 = arith.addf %335, %336 : vector<8x128xf32>
    %338 = arith.negf %337 : vector<8x128xf32>
    %339 = math.exp %338 : vector<8x128xf32>
    %cst_161 = arith.constant 1.000000e+00 : f32
    %340 = vector.broadcast %cst_161 : f32 to vector<8x128xf32>
    %341 = arith.addf %340, %339 : vector<8x128xf32>
    %342 = arith.divf %340, %341 : vector<8x128xf32>
    %343 = vector.extract_strided_slice %323 {offsets = [0, 256], sizes = [8, 128], strides = [1, 1]} : vector<8x384xf32> to vector<8x128xf32>
    %344 = vector.extract_strided_slice %326 {offsets = [0, 256], sizes = [8, 128], strides = [1, 1]} : vector<8x384xf32> to vector<8x128xf32>
    %345 = arith.mulf %334, %344 : vector<8x128xf32>
    %346 = arith.addf %343, %345 : vector<8x128xf32>
    %347 = math.tanh %346 : vector<8x128xf32>
    %cst_162 = arith.constant 1.000000e+00 : f32
    %348 = vector.broadcast %cst_162 : f32 to vector<8x128xf32>
    %349 = arith.subf %348, %342 : vector<8x128xf32>
    %350 = arith.mulf %349, %347 : vector<8x128xf32>
    %351 = arith.mulf %342, %283 : vector<8x128xf32>
    %352 = arith.addf %350, %351 : vector<8x128xf32>
    %cst_163 = arith.constant 0.000000e+00 : f32
    %353 = vector.broadcast %cst_163 : f32 to vector<8x128xf32>
    %354 = arith.maximumf %352, %353 : vector<8x128xf32>
    %c0_164 = arith.constant 0 : index
    %c0_165 = arith.constant 0 : index
    %355 = vector.load %arg35[%c0_164, %c0_165] : memref<128x128xf32, #tpu.memory_space<vmem>>, vector<128x128xf32>
    %cst_166 = arith.constant dense<0.000000e+00> : vector<8x128xf32>
    %356 = tpu.matmul %354, %355, %cst_166 {dimension_numbers = #tpu.dot_dimension_numbers<[1], [1], [0], [0], [0, 0, 1, 0], [], []>} : vector<8x128xf32>, vector<128x128xf32>, vector<8x128xf32> -> vector<8x128xf32>
    %c0_167 = arith.constant 0 : index
    %c0_168 = arith.constant 0 : index
    %357 = vector.load %arg36[%c0_167, %c0_168] : memref<1x128xf32, #tpu.memory_space<vmem>>, vector<1x128xf32>
    %358 = vector.broadcast %357 : vector<1x128xf32> to vector<8x128xf32>
    %359 = arith.addf %356, %358 : vector<8x128xf32>
    %c0_169 = arith.constant 0 : index
    %c0_170 = arith.constant 0 : index
    %360 = vector.load %arg39[%c0_169, %c0_170] : memref<8x128xf32, #tpu.memory_space<vmem>>, vector<8x128xf32>
    tpu.vector_store %arg39[%c0_169, %c0_170], %359 {strides = array<i32>} : memref<8x128xf32, #tpu.memory_space<vmem>>, vector<8x128xf32>,
    %c0_171 = arith.constant 0 : index
    %c0_172 = arith.constant 0 : index
    %361 = vector.load %arg37[%c0_171, %c0_172] : memref<128x128xf32, #tpu.memory_space<vmem>>, vector<128x128xf32>
    %cst_173 = arith.constant dense<0.000000e+00> : vector<8x128xf32>
    %362 = tpu.matmul %354, %361, %cst_173 {dimension_numbers = #tpu.dot_dimension_numbers<[1], [1], [0], [0], [0, 0, 1, 0], [], []>} : vector<8x128xf32>, vector<128x128xf32>, vector<8x128xf32> -> vector<8x128xf32>
    %c0_174 = arith.constant 0 : index
    %c0_175 = arith.constant 0 : index
    %363 = vector.load %arg38[%c0_174, %c0_175] : memref<1x128xf32, #tpu.memory_space<vmem>>, vector<1x128xf32>
    %364 = vector.broadcast %363 : vector<1x128xf32> to vector<8x128xf32>
    %365 = arith.addf %362, %364 : vector<8x128xf32>
    %c0_176 = arith.constant 0 : index
    %c0_177 = arith.constant 0 : index
    %366 = vector.load %arg40[%c0_176, %c0_177] : memref<8x128xf32, #tpu.memory_space<vmem>>, vector<8x128xf32>
    tpu.vector_store %arg40[%c0_176, %c0_177], %365 {strides = array<i32>} : memref<8x128xf32, #tpu.memory_space<vmem>>, vector<8x128xf32>,
    return
  }
  func.func @transform_0(%arg0: i32) -> (i32, i32) {
    %c0_i32 = arith.constant 0 : i32
    %c0_i32_0 = arith.constant 0 : i32
    %c0_i32_1 = arith.constant 0 : i32
    return %c0_i32, %c0_i32_0 : i32, i32
  }
  func.func @transform_1(%arg0: i32) -> (i32, i32) {
    %c0_i32 = arith.constant 0 : i32
    %c0_i32_0 = arith.constant 0 : i32
    %c0_i32_1 = arith.constant 0 : i32
    return %c0_i32, %c0_i32_0 : i32, i32
  }
  func.func @transform_2(%arg0: i32) -> (i32, i32) {
    %c0_i32 = arith.constant 0 : i32
    %c0_i32_0 = arith.constant 0 : i32
    %c0_i32_1 = arith.constant 0 : i32
    return %c0_i32, %c0_i32_0 : i32, i32
  }
  func.func @transform_3(%arg0: i32) -> (i32, i32) {
    %c0_i32 = arith.constant 0 : i32
    %c0_i32_0 = arith.constant 0 : i32
    %c0_i32_1 = arith.constant 0 : i32
    return %c0_i32, %c0_i32_0 : i32, i32
  }
  func.func @transform_4(%arg0: i32) -> (i32, i32) {
    %c0_i32 = arith.constant 0 : i32
    %c0_i32_0 = arith.constant 0 : i32
    %c0_i32_1 = arith.constant 0 : i32
    return %c0_i32, %c0_i32_0 : i32, i32
  }
  func.func @transform_5(%arg0: i32) -> (i32, i32) {
    %c0_i32 = arith.constant 0 : i32
    %c0_i32_0 = arith.constant 0 : i32
    %c0_i32_1 = arith.constant 0 : i32
    return %c0_i32, %c0_i32_0 : i32, i32
  }
  func.func @transform_6(%arg0: i32) -> (i32, i32) {
    %c0_i32 = arith.constant 0 : i32
    %c0_i32_0 = arith.constant 0 : i32
    %c0_i32_1 = arith.constant 0 : i32
    return %c0_i32, %c0_i32_0 : i32, i32
  }
  func.func @transform_7(%arg0: i32) -> (i32, i32) {
    %c0_i32 = arith.constant 0 : i32
    %c0_i32_0 = arith.constant 0 : i32
    %c0_i32_1 = arith.constant 0 : i32
    return %c0_i32, %c0_i32_0 : i32, i32
  }
  func.func @transform_8(%arg0: i32) -> (i32, i32) {
    %c0_i32 = arith.constant 0 : i32
    %c0_i32_0 = arith.constant 0 : i32
    %c0_i32_1 = arith.constant 0 : i32
    return %c0_i32, %c0_i32_0 : i32, i32
  }
  func.func @transform_9(%arg0: i32) -> (i32, i32) {
    %c0_i32 = arith.constant 0 : i32
    %c0_i32_0 = arith.constant 0 : i32
    %c0_i32_1 = arith.constant 0 : i32
    return %c0_i32, %c0_i32_0 : i32, i32
  }
  func.func @transform_10(%arg0: i32) -> (i32, i32) {
    %c0_i32 = arith.constant 0 : i32
    %c0_i32_0 = arith.constant 0 : i32
    %c0_i32_1 = arith.constant 0 : i32
    return %c0_i32, %c0_i32_0 : i32, i32
  }
  func.func @transform_11(%arg0: i32) -> (i32, i32) {
    %c0_i32 = arith.constant 0 : i32
    %c0_i32_0 = arith.constant 0 : i32
    %c0_i32_1 = arith.constant 0 : i32
    return %c0_i32, %c0_i32_0 : i32, i32
  }
  func.func @transform_12(%arg0: i32) -> (i32, i32) {
    %c0_i32 = arith.constant 0 : i32
    %c0_i32_0 = arith.constant 0 : i32
    %c0_i32_1 = arith.constant 0 : i32
    return %c0_i32, %c0_i32_0 : i32, i32
  }
  func.func @transform_13(%arg0: i32) -> (i32, i32) {
    %c0_i32 = arith.constant 0 : i32
    %c0_i32_0 = arith.constant 0 : i32
    %c0_i32_1 = arith.constant 0 : i32
    return %c0_i32, %c0_i32_0 : i32, i32
  }
  func.func @transform_14(%arg0: i32) -> (i32, i32) {
    %c0_i32 = arith.constant 0 : i32
    %c0_i32_0 = arith.constant 0 : i32
    %c0_i32_1 = arith.constant 0 : i32
    return %c0_i32, %c0_i32_0 : i32, i32
  }
  func.func @transform_15(%arg0: i32) -> (i32, i32) {
    %c0_i32 = arith.constant 0 : i32
    %c0_i32_0 = arith.constant 0 : i32
    %c0_i32_1 = arith.constant 0 : i32
    return %c0_i32, %c0_i32_0 : i32, i32
  }
  func.func @transform_16(%arg0: i32) -> (i32, i32) {
    %c0_i32 = arith.constant 0 : i32
    %c0_i32_0 = arith.constant 0 : i32
    %c0_i32_1 = arith.constant 0 : i32
    return %c0_i32, %c0_i32_0 : i32, i32
  }
  func.func @transform_17(%arg0: i32) -> (i32, i32) {
    %c0_i32 = arith.constant 0 : i32
    %c0_i32_0 = arith.constant 0 : i32
    %c0_i32_1 = arith.constant 0 : i32
    return %c0_i32, %c0_i32_0 : i32, i32
  }
  func.func @transform_18(%arg0: i32) -> (i32, i32, i32) {
    %c0_i32 = arith.constant 0 : i32
    %c0_i32_0 = arith.constant 0 : i32
    %c0_i32_1 = arith.constant 0 : i32
    %c0_i32_2 = arith.constant 0 : i32
    return %c0_i32, %c0_i32_0, %c0_i32_1 : i32, i32, i32
  }
  func.func @transform_19(%arg0: i32) -> (i32, i32, i32) {
    %c0_i32 = arith.constant 0 : i32
    %c0_i32_0 = arith.constant 0 : i32
    %c0_i32_1 = arith.constant 0 : i32
    %c0_i32_2 = arith.constant 0 : i32
    return %c0_i32, %c0_i32_0, %c0_i32_1 : i32, i32, i32
  }
  func.func @transform_20(%arg0: i32) -> (i32, i32, i32) {
    %c0_i32 = arith.constant 0 : i32
    %c0_i32_0 = arith.constant 0 : i32
    %c0_i32_1 = arith.constant 0 : i32
    %c0_i32_2 = arith.constant 0 : i32
    return %c0_i32, %c0_i32_0, %c0_i32_1 : i32, i32, i32
  }
  func.func @transform_21(%arg0: i32) -> (i32, i32, i32) {
    %c0_i32 = arith.constant 0 : i32
    %c0_i32_0 = arith.constant 0 : i32
    %c0_i32_1 = arith.constant 0 : i32
    %c0_i32_2 = arith.constant 0 : i32
    return %c0_i32, %c0_i32_0, %c0_i32_1 : i32, i32, i32
  }
  func.func @transform_22(%arg0: i32) -> (i32, i32, i32) {
    %c0_i32 = arith.constant 0 : i32
    %c0_i32_0 = arith.constant 0 : i32
    %c0_i32_1 = arith.constant 0 : i32
    %c0_i32_2 = arith.constant 0 : i32
    return %c0_i32, %c0_i32_0, %c0_i32_1 : i32, i32, i32
  }
  func.func @transform_23(%arg0: i32) -> (i32, i32, i32) {
    %c0_i32 = arith.constant 0 : i32
    %c0_i32_0 = arith.constant 0 : i32
    %c0_i32_1 = arith.constant 0 : i32
    %c0_i32_2 = arith.constant 0 : i32
    return %c0_i32, %c0_i32_0, %c0_i32_1 : i32, i32, i32
  }
  func.func @transform_24(%arg0: i32) -> (i32, i32, i32) {
    %c0_i32 = arith.constant 0 : i32
    %c0_i32_0 = arith.constant 0 : i32
    %c0_i32_1 = arith.constant 0 : i32
    %c0_i32_2 = arith.constant 0 : i32
    return %c0_i32, %c0_i32_0, %c0_i32_1 : i32, i32, i32
  }
  func.func @transform_25(%arg0: i32) -> (i32, i32, i32) {
    %c0_i32 = arith.constant 0 : i32
    %c0_i32_0 = arith.constant 0 : i32
    %c0_i32_1 = arith.constant 0 : i32
    %c0_i32_2 = arith.constant 0 : i32
    return %c0_i32, %c0_i32_0, %c0_i32_1 : i32, i32, i32
  }
  func.func @transform_26(%arg0: i32) -> (i32, i32) {
    %c0_i32 = arith.constant 0 : i32
    %c0_i32_0 = arith.constant 0 : i32
    %c0_i32_1 = arith.constant 0 : i32
    return %c0_i32, %c0_i32_0 : i32, i32
  }
  func.func @transform_27(%arg0: i32) -> (i32, i32) {
    %c0_i32 = arith.constant 0 : i32
    %c0_i32_0 = arith.constant 0 : i32
    %c0_i32_1 = arith.constant 0 : i32
    return %c0_i32, %c0_i32_0 : i32, i32
  }
  func.func @transform_28(%arg0: i32) -> (i32, i32) {
    %c0_i32 = arith.constant 0 : i32
    %c0_i32_0 = arith.constant 0 : i32
    %c0_i32_1 = arith.constant 0 : i32
    return %c0_i32, %c0_i32_0 : i32, i32
  }
  func.func @transform_29(%arg0: i32) -> (i32, i32) {
    %c0_i32 = arith.constant 0 : i32
    %c0_i32_0 = arith.constant 0 : i32
    %c0_i32_1 = arith.constant 0 : i32
    return %c0_i32, %c0_i32_0 : i32, i32
  }
  func.func @transform_30(%arg0: i32) -> (i32, i32) {
    %c0_i32 = arith.constant 0 : i32
    %c0_i32_0 = arith.constant 0 : i32
    %c0_i32_1 = arith.constant 0 : i32
    return %c0_i32, %c0_i32_0 : i32, i32
  }
  func.func @transform_31(%arg0: i32) -> (i32, i32) {
    %c0_i32 = arith.constant 0 : i32
    %c0_i32_0 = arith.constant 0 : i32
    %c0_i32_1 = arith.constant 0 : i32
    return %c0_i32, %c0_i32_0 : i32, i32
  }
  func.func @transform_32(%arg0: i32) -> (i32, i32) {
    %c0_i32 = arith.constant 0 : i32
    %c0_i32_0 = arith.constant 0 : i32
    %c0_i32_1 = arith.constant 0 : i32
    return %c0_i32, %c0_i32_0 : i32, i32
  }
  func.func @transform_33(%arg0: i32) -> (i32, i32) {
    %c0_i32 = arith.constant 0 : i32
    %c0_i32_0 = arith.constant 0 : i32
    %c0_i32_1 = arith.constant 0 : i32
    return %c0_i32, %c0_i32_0 : i32, i32
  }
  func.func @transform_34(%arg0: i32) -> (i32, i32) {
    %c0_i32 = arith.constant 0 : i32
    %c0_i32_0 = arith.constant 0 : i32
    %c0_i32_1 = arith.constant 0 : i32
    return %c0_i32, %c0_i32_0 : i32, i32
  }
  func.func @transform_35(%arg0: i32) -> (i32, i32) {
    %c0_i32 = arith.constant 0 : i32
    %c0_i32_0 = arith.constant 0 : i32
    %c0_i32_1 = arith.constant 0 : i32
    return %c0_i32, %c0_i32_0 : i32, i32
  }
  func.func @transform_36(%arg0: i32) -> (i32, i32) {
    %c0_i32 = arith.constant 0 : i32
    %c0_i32_0 = arith.constant 0 : i32
    %c0_i32_1 = arith.constant 0 : i32
    return %c0_i32, %c0_i32_0 : i32, i32
  }
  func.func @transform_37(%arg0: i32) -> (i32, i32) {
    %c0_i32 = arith.constant 0 : i32
    %c0_i32_0 = arith.constant 0 : i32
    %c0_i32_1 = arith.constant 0 : i32
    return %c0_i32, %c0_i32_0 : i32, i32
  }
  func.func @transform_38(%arg0: i32) -> (i32, i32) {
    %c0_i32 = arith.constant 0 : i32
    %c0_i32_0 = arith.constant 0 : i32
    %c0_i32_1 = arith.constant 0 : i32
    return %c0_i32, %c0_i32_0 : i32, i32
  }
  func.func @transform_39(%arg0: i32) -> (i32, i32) {
    %c0_i32 = arith.constant 0 : i32
    %c0_i32_0 = arith.constant 0 : i32
    %c0_i32_1 = arith.constant 0 : i32
    return %c0_i32, %c0_i32_0 : i32, i32
  }
}

</mosaic_0001>

<bundles_post_ra>
// kernel: tpu_custom_call.1
= control target key start
LH: loop header
LB: loop body
LE: loop exit
PB: predicated region body
PF: predicated region fallthrough
CT: control target
= control target key end

     0   :  { %s6991_s6 = smov 1   ;;  %s6992_s10 = smov 2   ;;  %s8105_s0 = inlined_call_operand.smem [shape: u32[40], index: -1, kind: input, shape index: {}] }
   0x1   :  { %s7083_s5 = sld [smem:[%s8105_s0]]   ;;  %s6993_s14 = smov 3  }
   0x2   :  { %s7088_s9 = sld [smem:[%s8105_s0 + %s6991_s6]]   ;;  %s6994_s18 = smov 4  }
   0x3   :  { %s7093_s13 = sld [smem:[%s8105_s0 + %s6992_s10]]   ;;  %s6995_s22 = smov 5  }
   0x4   :  { %s7098_s17 = sld [smem:[%s8105_s0 + %s6993_s14]]   ;;  %s6996_s26 = smov 6  }
   0x5   :  { %s7103_s21 = sld [smem:[%s8105_s0 + %s6994_s18]]   ;;  %s6997_s30 = smov 7  }
   0x6   :  { %s7108_s25 = sld [smem:[%s8105_s0 + %s6995_s22]]   ;;  %s6998_s4 = smov 8  }
   0x7   :  { %8135 = sst [smem:[#allocation86_spill]] %s7083_s5  ;;  %s6999_s10 = smov 9  }
   0x8   :  { %s7113_s29 = sld [smem:[%s8105_s0 + %s6996_s26]]   ;;  %s7000_s15 = smov 10  }
   0x9   :  { %8136 = sst [smem:[#allocation87_spill]] %s7093_s13  ;;  %s7001_s20 = smov 11  }
   0xa   :  { %s7118_s3 = sld [smem:[%s8105_s0 + %s6997_s30]]   ;;  %s7002_s26 = smov 12  }
   0xb   :  { %8137 = sst [smem:[#allocation88_spill]] %s7103_s21  ;;  %s7003_s1 = smov 13  }
   0xc   :  { %s7123_s8 = sld [smem:[%s8105_s0 + %s6998_s4]]   ;;  %s7004_s7 = smov 14  }
   0xd   :  { %s7128_s14 = sld [smem:[%s8105_s0 + %s6999_s10]]   ;;  %s7006_s22 = smov 16  }
   0xe   :  { %8138 = sst [smem:[#allocation89_spill]] %s7113_s29  ;;  %s7007_s28 = smov 17  }
   0xf   :  { %s7133_s19 = sld [smem:[%s8105_s0 + %s7000_s15]]   ;;  %s7005_s15 = smov 15  }
  0x10   :  { %s7138_s24 = sld [smem:[%s8105_s0 + %s7001_s20]]  }
  0x11   :  { %s7143_s30 = sld [smem:[%s8105_s0 + %s7002_s26]]  }
  0x12   :  { %8139 = sst [smem:[#allocation90_spill]] %s7123_s8 }
  0x13   :  { %s7148_s6 = sld [smem:[%s8105_s0 + %s7003_s1]]  }
  0x14   :  { %s7153_s12 = sld [smem:[%s8105_s0 + %s7004_s7]]   ;;  %s7008_s7 = smov 18  }
  0x15   :  { %8140 = sst [smem:[#allocation91_spill]] %s7133_s19 }
  0x16   :  { %s7158_s20 = sld [smem:[%s8105_s0 + %s7005_s15]]   ;;  %s7009_s15 = smov 19  }
  0x17   :  { %8141 = sst [smem:[#allocation92_spill]] %s7143_s30 }
  0x18   :  { %s7163_s27 = sld [smem:[%s8105_s0 + %s7006_s22]]   ;;  %s7010_s22 = smov 20  }
  0x19   :  { %s7168_s4 = sld [smem:[%s8105_s0 + %s7007_s28]]   ;;  %s7011_s28 = smov 21  }
  0x1a   :  { %8142 = sst [smem:[#allocation93_spill]] %s7153_s12 }
  0x1b   :  { %s7173_s12 = sld [smem:[%s8105_s0 + %s7008_s7]]   ;;  %s7012_s7 = smov 22  }
  0x1c   :  { %s7178_s30 = sld [smem:[%s8105_s0 + %s7009_s15]]   ;;  %s7013_s15 = smov 23  }
  0x1d   :  { %s7188_s19 = sld [smem:[%s8105_s0 + %s7011_s28]]   ;;  %s7015_s28 = smov 25  }
  0x1e   :  { %8143 = sst [smem:[#allocation94_spill]] %s7163_s27 }
  0x1f   :  { %s7183_s27 = sld [smem:[%s8105_s0 + %s7010_s22]]   ;;  %s7014_s22 = smov 24  }
  0x20   :  { %s7198_s8 = sld [smem:[%s8105_s0 + %s7013_s15]]   ;;  %s7017_s15 = smov 27  }
  0x21   :  { %8144 = sst [smem:[#allocation95_spill]] %s7173_s12 }
  0x22   :  { %s7193_s12 = sld [smem:[%s8105_s0 + %s7012_s7]]   ;;  %s7016_s7 = smov 26  }
  0x23   :  { %s7208_s29 = sld [smem:[%s8105_s0 + %s7015_s28]]   ;;  %s7019_s28 = smov 29  }
  0x24   :  { %s7218_s21 = sld [smem:[%s8105_s0 + %s7017_s15]]   ;;  %s7021_s15 = smov 31  }
  0x25   :  { %8145 = sst [smem:[#allocation96_spill]] %s7183_s27 }
  0x26   :  { %s7203_s27 = sld [smem:[%s8105_s0 + %s7014_s22]]   ;;  %s7018_s22 = smov 28  }
  0x27   :  { %s7228_s13 = sld [smem:[%s8105_s0 + %s7019_s28]]   ;;  %s7023_s28 = smov 33  }
  0x28   :  { %8146 = sst [smem:[#allocation97_spill]] %s7193_s12 }
  0x29   :  { %s7213_s12 = sld [smem:[%s8105_s0 + %s7016_s7]]   ;;  %s7020_s7 = smov 30  }
  0x2a   :  { %s7238_s5 = sld [smem:[%s8105_s0 + %s7021_s15]]   ;;  %s7025_s15 = smov 35  }
  0x2c   :  { %8147 = sst [smem:[#allocation98_spill]] %s7203_s27 }
  0x2d   :  { %s7223_s27 = sld [smem:[%s8105_s0 + %s7018_s22]]   ;;  %s7022_s22 = smov 32  }
  0x2e   :  { %8150 = sst [smem:[#allocation101_spill]] %s7228_s13 }
  0x2f   :  { %8148 = sst [smem:[#allocation99_spill]] %s7213_s12 }
  0x30   :  { %s7233_s12 = sld [smem:[%s8105_s0 + %s7020_s7]]   ;;  %s7024_s7 = smov 34  }
  0x31   :  { %8152 = sst [smem:[#allocation103_spill]] %s7238_s5 }
  0x32   :  { %s7248_s13 = sld [smem:[%s8105_s0 + %s7023_s28]]   ;;  %s7027_s28 = smov 37  }
  0x33   :  { %8149 = sst [smem:[#allocation100_spill]] %s7223_s27 }
  0x34   :  { %s7243_s27 = sld [smem:[%s8105_s0 + %s7022_s22]]   ;;  %s7026_s22 = smov 36  }
  0x35   :  { %s7258_s5 = sld [smem:[%s8105_s0 + %s7025_s15]]   ;;  %s7029_s15 = smov 39  }
  0x36   :  { %8151 = sst [smem:[#allocation102_spill]] %s7233_s12 }
  0x37   :  { %s7253_s12 = sld [smem:[%s8105_s0 + %s7024_s7]]   ;;  %s7028_s7 = smov 38  }
  0x38   :  { %8154 = sst [smem:[#allocation105_spill]] %s7248_s13 }
  0x39   :  { %s7268_s13 = sld [smem:[%s8105_s0 + %s7027_s28]]  }
  0x3a   :  { %8153 = sst [smem:[#allocation104_spill]] %s7243_s27 }
  0x3b   :  { %8156 = sst [smem:[#allocation107_spill]] %s7258_s5 }
  0x3c   :  { %s7263_s27 = sld [smem:[%s8105_s0 + %s7026_s22]]  }
  0x3d   :  { %8155 = sst [smem:[#allocation106_spill]] %s7253_s12 }
  0x3e   :  { %s7273_s12 = sld [smem:[%s8105_s0 + %s7028_s7]]  }
  0x3f   :  { %s7278_s5 = sld [smem:[%s8105_s0 + %s7029_s15]]  }
  0x40   :  { %85 = vsyncpa [#allocation3], 0 }
  0x41   :  { %86 = vsyncpa [#allocation6], 0 }
  0x42   :  { %87 = vsyncpa [#allocation9], 0 }
  0x43   :  { %88 = vsyncpa [#allocation12], 0 }
  0x44   :  { %89 = vsyncpa [#allocation15], 0 }
  0x45   :  { %90 = vsyncpa [#allocation18], 0 }
  0x46   :  { %91 = vsyncpa [#allocation21], 0 }
  0x47   :  { %92 = vsyncpa [#allocation24], 0 }
  0x48   :  { %93 = vsyncpa [#allocation27], 0 }
  0x49   :  { %94 = vsyncpa [#allocation30], 0 }
  0x4a   :  { %95 = vsyncpa [#allocation33], 0 }
  0x4b   :  { %96 = vsyncpa [#allocation36], 0 }
  0x4c   :  { %97 = vsyncpa [#allocation39], 0 }
  0x4d   :  { %98 = vsyncpa [#allocation42], 0 }
  0x4e   :  { %99 = vsyncpa [#allocation45], 0 }
  0x4f   :  { %100 = vsyncpa [#allocation48], 0 }
  0x50   :  { %101 = vsyncpa [#allocation51], 0 }
  0x51   :  { %102 = vsyncpa [#allocation54], 0 }
  0x52   :  { %103 = vsyncpa [#allocation57], 0 }
  0x53   :  { %104 = vsyncpa [#allocation60], 0 }
  0x54   :  { %105 = vsyncpa [#allocation4], 0 }
  0x55   :  { %106 = vsyncpa [#allocation63], 0  ;;  %s7030_s0 = smov [#allocation5]   ;;  %s7031_s23 = smov [#allocation8]  }
  0x56   :  { %s123_s22 = sshll.u32 %s7030_s0, 4  ;;  %s145_s26 = sshll.u32 %s7031_s23, 4  ;;  %s124_s22 = int_to_ptr.vmem [resolvable:$true] %s123_s22  ;;  %s146_s26 = int_to_ptr.vmem [resolvable:$true] %s145_s26 }
  0x57   :  { %s6067_s28 = scalar_lea.hbm %s7088_s9, 128 }
  0x58   :  { %p6068_p0 = scmp.ne.s32.totalorder %s7088_s9, %s6067_s28  ;;  %p6071_p1 = scmp.lt.u32.totalorder %s6067_s28, %s7088_s9 }
  0x5a   :  { %p6073_p2 = pnand %p6071_p1, %p6068_p0 }
  0x5c   :  { %6076 = shalt.err (!%p6073_p2)
}
  0x5d   :  { %s6077_s1 = scalar_lea.vmem %s124_s22, 128  ;;  %p6082_p4 = scmp.lt.s32.totalorder %s124_s22, %s124_s22 }
  0x5e   :  { %p6078_p3 = scmp.ne.s32.totalorder %s124_s22, %s6077_s1  ;;  %p6083_p5 = scmp.lt.s32.totalorder %s6077_s1, %s6077_s1 }
  0x60   :  { %p6084_p6 = por %p6083_p5, %p6082_p4 }
  0x62   :  { %p6085_p7 = pnand %p6084_p6, %p6078_p3 }
  0x64   :  { %6088 = shalt.err (!%p6085_p7)
}
  0x65   :  { %126 = dma.hbm_to_vmem [thread:$0]  %s7088_s9, 128, %s124_s22, [#allocation6]  }
  0x66   :  { %s6089_s2 = scalar_lea.hbm %s7098_s17, 128 }
  0x67   :  { %p6090_p8 = scmp.ne.s32.totalorder %s7098_s17, %s6089_s2  ;;  %p6093_p9 = scmp.lt.u32.totalorder %s6089_s2, %s7098_s17 }
  0x69   :  { %p6095_p10 = pnand %p6093_p9, %p6090_p8 }
  0x6b   :  { %6098 = shalt.err (!%p6095_p10)
}
  0x6c   :  { %s6099_s7 = scalar_lea.vmem %s146_s26, 128  ;;  %p6104_p12 = scmp.lt.s32.totalorder %s146_s26, %s146_s26 }
  0x6d   :  { %p6100_p11 = scmp.ne.s32.totalorder %s146_s26, %s6099_s7  ;;  %p6105_p13 = scmp.lt.s32.totalorder %s6099_s7, %s6099_s7 }
  0x6f   :  { %p6106_p0 = por %p6105_p13, %p6104_p12 }
  0x71   :  { %p6107_p1 = pnand %p6106_p0, %p6100_p11 }
  0x73   :  { %6110 = shalt.err (!%p6107_p1)
}
  0x74   :  { %148 = dma.hbm_to_vmem [thread:$0]  %s7098_s17, 128, %s146_s26, [#allocation9]  }
  0x75   :  { %s7032_s10 = smov [#allocation11]   ;;  %s7033_s9 = smov [#allocation14]  }
  0x76   :  { %s167_s11 = sshll.u32 %s7032_s10, 4  ;;  %s189_s15 = sshll.u32 %s7033_s9, 4  ;;  %s168_s11 = int_to_ptr.vmem [resolvable:$true] %s167_s11  ;;  %s190_s15 = int_to_ptr.vmem [resolvable:$true] %s189_s15 }
  0x77   :  { %s6111_s16 = scalar_lea.hbm %s7108_s25, 128 }
  0x78   :  { %p6112_p2 = scmp.ne.s32.totalorder %s7108_s25, %s6111_s16  ;;  %p6115_p3 = scmp.lt.u32.totalorder %s6111_s16, %s7108_s25 }
  0x7a   :  { %p6117_p4 = pnand %p6115_p3, %p6112_p2 }
  0x7c   :  { %6120 = shalt.err (!%p6117_p4)
}
  0x7d   :  { %s6121_s18 = scalar_lea.vmem %s168_s11, 128  ;;  %p6126_p6 = scmp.lt.s32.totalorder %s168_s11, %s168_s11 }
  0x7e   :  { %p6122_p5 = scmp.ne.s32.totalorder %s168_s11, %s6121_s18  ;;  %p6127_p7 = scmp.lt.s32.totalorder %s6121_s18, %s6121_s18 }
  0x80   :  { %p6128_p8 = por %p6127_p7, %p6126_p6 }
  0x82   :  { %p6129_p9 = pnand %p6128_p8, %p6122_p5 }
  0x84   :  { %6132 = shalt.err (!%p6129_p9)
}
  0x85   :  { %170 = dma.hbm_to_vmem [thread:$0]  %s7108_s25, 128, %s168_s11, [#allocation12]  }
  0x86   :  { %s6133_s17 = scalar_lea.hbm %s7118_s3, 16 }
  0x87   :  { %p6134_p10 = scmp.ne.s32.totalorder %s7118_s3, %s6133_s17  ;;  %p6137_p11 = scmp.lt.u32.totalorder %s6133_s17, %s7118_s3 }
  0x89   :  { %p6139_p12 = pnand %p6137_p11, %p6134_p10 }
  0x8b   :  { %6142 = shalt.err (!%p6139_p12)
}
  0x8c   :  { %s6143_s0 = scalar_lea.vmem %s190_s15, 16  ;;  %s6147_s22 = scalar_lea.vmem %s190_s15, 32 }
  0x8d   :  { %p6144_p13 = scmp.ne.s32.totalorder %s190_s15, %s6143_s0  ;;  %p6148_p0 = scmp.lt.s32.totalorder %s190_s15, %s190_s15 }
  0x8e   :  { %p6149_p1 = scmp.lt.s32.totalorder %s6147_s22, %s6143_s0 }
  0x90   :  { %p6150_p2 = por %p6149_p1, %p6148_p0 }
  0x92   :  { %p6151_p3 = pnand %p6150_p2, %p6144_p13 }
  0x94   :  { %6154 = shalt.err (!%p6151_p3)
}
  0x95   :  { %192 = dma.hbm_to_vmem [thread:$0]  %s7118_s3, 16, %s190_s15, [#allocation15]  }
  0x96   :  { %s7034_s23 = smov [#allocation17]   ;;  %s7035_s26 = smov [#allocation20]  }
  0x97   :  { %s210_s25 = sshll.u32 %s7034_s23, 4  ;;  %s233_s28 = sshll.u32 %s7035_s26, 4  ;;  %s211_s25 = int_to_ptr.vmem [resolvable:$true] %s210_s25  ;;  %s7296_s28 = int_to_ptr.vmem [resolvable:$true] %s233_s28 }
  0x98   :  { %s6155_s1 = scalar_lea.hbm %s7128_s14, 2048 }
  0x99   :  { %p6156_p4 = scmp.ne.s32.totalorder %s7128_s14, %s6155_s1  ;;  %p6159_p5 = scmp.lt.u32.totalorder %s6155_s1, %s7128_s14 }
  0x9b   :  { %p6161_p6 = pnand %p6159_p5, %p6156_p4 }
  0x9d   :  { %6164 = shalt.err (!%p6161_p6)
}
  0x9e   :  { %s6165_s2 = scalar_lea.vmem %s211_s25, 2048  ;;  %p6170_p8 = scmp.lt.s32.totalorder %s211_s25, %s211_s25 }
  0x9f   :  { %p6166_p7 = scmp.ne.s32.totalorder %s211_s25, %s6165_s2  ;;  %p6171_p9 = scmp.lt.s32.totalorder %s6165_s2, %s6165_s2 }
  0xa1   :  { %p6172_p10 = por %p6171_p9, %p6170_p8 }
  0xa3   :  { %p6173_p11 = pnand %p6172_p10, %p6166_p7 }
  0xa5   :  { %6176 = shalt.err (!%p6173_p11)
}
  0xa6   :  { %s7036_s3 = smov 128   ;;  %s7037_s7 = smov 8  }
  0xa7   :  { %216 = dma.hbm_to_vmem [thread:$0]  %s7128_s14, 2048, %s211_s25, [#allocation18], %s7036_s3, %s7036_s3, %s7037_s7  }
  0xa8   :  { %s6177_s10 = scalar_lea.hbm %s7138_s24, 16 }
  0xa9   :  { %p6178_p12 = scmp.ne.s32.totalorder %s7138_s24, %s6177_s10  ;;  %p6181_p13 = scmp.lt.u32.totalorder %s6177_s10, %s7138_s24 }
  0xab   :  { %p6183_p0 = pnand %p6181_p13, %p6178_p12 }
  0xad   :  { %6186 = shalt.err (!%p6183_p0)
}
  0xae   :  { %s6187_s11 = scalar_lea.vmem %s7296_s28, 16  ;;  %s6191_s9 = scalar_lea.vmem %s7296_s28, 32 }
  0xaf   :  { %p6188_p1 = scmp.ne.s32.totalorder %s7296_s28, %s6187_s11  ;;  %p6192_p2 = scmp.lt.s32.totalorder %s7296_s28, %s7296_s28 }
  0xb0   :  { %p6193_p3 = scmp.lt.s32.totalorder %s6191_s9, %s6187_s11 }
  0xb2   :  { %p6194_p4 = por %p6193_p3, %p6192_p2 }
  0xb4   :  { %p6195_p5 = pnand %p6194_p4, %p6188_p1 }
  0xb6   :  { %6198 = shalt.err (!%p6195_p5)
}
  0xb7   :  { %236 = dma.hbm_to_vmem [thread:$0]  %s7138_s24, 16, %s7296_s28, [#allocation21]  }
  0xb8   :  { %s7038_s14 = smov [#allocation23]   ;;  %s7039_s16 = smov [#allocation26]  }
  0xb9   :  { %s255_s15 = sshll.u32 %s7038_s14, 4  ;;  %s276_s18 = sshll.u32 %s7039_s16, 4  ;;  %s256_s15 = int_to_ptr.vmem [resolvable:$true] %s255_s15  ;;  %s7315_s18 = int_to_ptr.vmem [resolvable:$true] %s276_s18 }
  0xba   :  { %s6199_s17 = scalar_lea.hbm %s7148_s6, 16 }
  0xbb   :  { %p6200_p6 = scmp.ne.s32.totalorder %s7148_s6, %s6199_s17  ;;  %p6203_p7 = scmp.lt.u32.totalorder %s6199_s17, %s7148_s6 }
  0xbd   :  { %p6205_p8 = pnand %p6203_p7, %p6200_p6 }
  0xbf   :  { %6208 = shalt.err (!%p6205_p8)
}
  0xc0   :  { %s6209_s0 = scalar_lea.vmem %s256_s15, 16  ;;  %s6213_s22 = scalar_lea.vmem %s256_s15, 32 }
  0xc1   :  { %p6210_p9 = scmp.ne.s32.totalorder %s256_s15, %s6209_s0  ;;  %p6214_p10 = scmp.lt.s32.totalorder %s256_s15, %s256_s15 }
  0xc2   :  { %p6215_p11 = scmp.lt.s32.totalorder %s6213_s22, %s6209_s0 }
  0xc4   :  { %p6216_p12 = por %p6215_p11, %p6214_p10 }
  0xc6   :  { %p6217_p13 = pnand %p6216_p12, %p6210_p9 }
  0xc8   :  { %6220 = shalt.err (!%p6217_p13)
}
  0xc9   :  { %258 = dma.hbm_to_vmem [thread:$0]  %s7148_s6, 16, %s256_s15, [#allocation24]  }
  0xca   :  { %s6221_s24 = scalar_lea.hbm %s7158_s20, 6144 }
  0xcb   :  { %p6222_p0 = scmp.ne.s32.totalorder %s7158_s20, %s6221_s24  ;;  %p6225_p1 = scmp.lt.u32.totalorder %s6221_s24, %s7158_s20 }
  0xcd   :  { %p6227_p2 = pnand %p6225_p1, %p6222_p0 }
  0xcf   :  { %6230 = shalt.err (!%p6227_p2)
}
  0xd0   :  { %s6231_s23 = scalar_lea.vmem %s7315_s18, 6144  ;;  %p6236_p4 = scmp.lt.s32.totalorder %s7315_s18, %s7315_s18 }
  0xd1   :  { %p6232_p3 = scmp.ne.s32.totalorder %s7315_s18, %s6231_s23  ;;  %p6237_p5 = scmp.lt.s32.totalorder %s6231_s23, %s6231_s23 }
  0xd3   :  { %p6238_p6 = por %p6237_p5, %p6236_p4 }
  0xd5   :  { %p6239_p7 = pnand %p6238_p6, %p6232_p3 }
  0xd7   :  { %6242 = shalt.err (!%p6239_p7)
}
  0xd8   :  { %282 = dma.hbm_to_vmem [thread:$0]  %s7158_s20, 6144, %s7315_s18, [#allocation27], %s7036_s3, %s7036_s3, %s7037_s7  }
  0xd9   :  { %s7040_s6 = smov [#allocation29]   ;;  %s7041_s26 = smov [#allocation32]  }
  0xda   :  { %s299_s25 = sshll.u32 %s7040_s6, 4  ;;  %s321_s28 = sshll.u32 %s7041_s26, 4  ;;  %s300_s25 = int_to_ptr.vmem [resolvable:$true] %s299_s25  ;;  %s322_s28 = int_to_ptr.vmem [resolvable:$true] %s321_s28 }
  0xdb   :  { %s6243_s1 = scalar_lea.hbm %s7168_s4, 48 }
  0xdc   :  { %p6244_p8 = scmp.ne.s32.totalorder %s7168_s4, %s6243_s1  ;;  %p6247_p9 = scmp.lt.u32.totalorder %s6243_s1, %s7168_s4 }
  0xde   :  { %p6249_p10 = pnand %p6247_p9, %p6244_p8 }
  0xe0   :  { %6252 = shalt.err (!%p6249_p10)
}
  0xe1   :  { %s6253_s2 = scalar_lea.vmem %s300_s25, 48  ;;  %s6257_s10 = scalar_lea.vmem %s300_s25, 64 }
  0xe2   :  { %p6254_p11 = scmp.ne.s32.totalorder %s300_s25, %s6253_s2  ;;  %p6258_p12 = scmp.lt.s32.totalorder %s300_s25, %s300_s25 }
  0xe3   :  { %p6259_p13 = scmp.lt.s32.totalorder %s6257_s10, %s6253_s2 }
  0xe5   :  { %p6260_p0 = por %p6259_p13, %p6258_p12 }
  0xe7   :  { %p6261_p1 = pnand %p6260_p0, %p6254_p11 }
  0xe9   :  { %6264 = shalt.err (!%p6261_p1)
}
  0xea   :  { %302 = dma.hbm_to_vmem [thread:$0]  %s7168_s4, 48, %s300_s25, [#allocation30]  }
  0xeb   :  { %s6265_s20 = scalar_lea.hbm %s7178_s30, 16 }
  0xec   :  { %p6266_p2 = scmp.ne.s32.totalorder %s7178_s30, %s6265_s20  ;;  %p6269_p3 = scmp.lt.u32.totalorder %s6265_s20, %s7178_s30 }
  0xee   :  { %p6271_p4 = pnand %p6269_p3, %p6266_p2 }
  0xf0   :  { %6274 = shalt.err (!%p6271_p4)
}
  0xf1   :  { %s6275_s11 = scalar_lea.vmem %s322_s28, 16  ;;  %s6279_s9 = scalar_lea.vmem %s322_s28, 32 }
  0xf2   :  { %p6276_p5 = scmp.ne.s32.totalorder %s322_s28, %s6275_s11  ;;  %p6280_p6 = scmp.lt.s32.totalorder %s322_s28, %s322_s28 }
  0xf3   :  { %p6281_p7 = scmp.lt.s32.totalorder %s6279_s9, %s6275_s11 }
  0xf5   :  { %p6282_p8 = por %p6281_p7, %p6280_p6 }
  0xf7   :  { %p6283_p9 = pnand %p6282_p8, %p6276_p5 }
  0xf9   :  { %6286 = shalt.err (!%p6283_p9)
}
  0xfa   :  { %324 = dma.hbm_to_vmem [thread:$0]  %s7178_s30, 16, %s322_s28, [#allocation33]  }
  0xfb   :  { %s7042_s14 = smov [#allocation35]   ;;  %s7043_s15 = smov [#allocation38]  }
  0xfc   :  { %s341_s4 = sshll.u32 %s7042_s14, 4  ;;  %s362_s16 = sshll.u32 %s7043_s15, 4  ;;  %s342_s4 = int_to_ptr.vmem [resolvable:$true] %s341_s4  ;;  %s7341_s16 = int_to_ptr.vmem [resolvable:$true] %s362_s16 }
  0xfd   :  { %s6287_s18 = scalar_lea.hbm %s7188_s19, 16 }
  0xfe   :  { %p6288_p10 = scmp.ne.s32.totalorder %s7188_s19, %s6287_s18  ;;  %p6291_p11 = scmp.lt.u32.totalorder %s6287_s18, %s7188_s19 }
 0x100   :  { %p6293_p12 = pnand %p6291_p11, %p6288_p10 }
 0x102   :  { %6296 = shalt.err (!%p6293_p12)
}
 0x103   :  { %s6297_s17 = scalar_lea.vmem %s342_s4, 16  ;;  %s6301_s0 = scalar_lea.vmem %s342_s4, 32 }
 0x104   :  { %p6298_p13 = scmp.ne.s32.totalorder %s342_s4, %s6297_s17  ;;  %p6302_p0 = scmp.lt.s32.totalorder %s342_s4, %s342_s4 }
 0x105   :  { %p6303_p1 = scmp.lt.s32.totalorder %s6301_s0, %s6297_s17 }
 0x107   :  { %p6304_p2 = por %p6303_p1, %p6302_p0 }
 0x109   :  { %p6305_p3 = pnand %p6304_p2, %p6298_p13 }
 0x10b   :  { %6308 = shalt.err (!%p6305_p3)
}
 0x10c   :  { %344 = dma.hbm_to_vmem [thread:$0]  %s7188_s19, 16, %s342_s4, [#allocation36]  }
 0x10d   :  { %s6309_s30 = scalar_lea.hbm %s7198_s8, 6144 }
 0x10e   :  { %p6310_p4 = scmp.ne.s32.totalorder %s7198_s8, %s6309_s30  ;;  %p6313_p5 = scmp.lt.u32.totalorder %s6309_s30, %s7198_s8 }
 0x110   :  { %p6315_p6 = pnand %p6313_p5, %p6310_p4 }
 0x112   :  { %6318 = shalt.err (!%p6315_p6)
}
 0x113   :  { %s6319_s22 = scalar_lea.vmem %s7341_s16, 6144  ;;  %p6324_p8 = scmp.lt.s32.totalorder %s7341_s16, %s7341_s16 }
 0x114   :  { %p6320_p7 = scmp.ne.s32.totalorder %s7341_s16, %s6319_s22  ;;  %p6325_p9 = scmp.lt.s32.totalorder %s6319_s22, %s6319_s22 }
 0x116   :  { %p6326_p10 = por %p6325_p9, %p6324_p8 }
 0x118   :  { %p6327_p11 = pnand %p6326_p10, %p6320_p7 }
 0x11a   :  { %6330 = shalt.err (!%p6327_p11)
}
 0x11b   :  { %368 = dma.hbm_to_vmem [thread:$0]  %s7198_s8, 6144, %s7341_s16, [#allocation39], %s7036_s3, %s7036_s3, %s7037_s7  }
 0x11c   :  { %s7044_s19 = smov [#allocation41]   ;;  %s7045_s23 = smov [#allocation44]  }
 0x11d   :  { %s385_s24 = sshll.u32 %s7044_s19, 4  ;;  %s407_s6 = sshll.u32 %s7045_s23, 4  ;;  %s386_s24 = int_to_ptr.vmem [resolvable:$true] %s385_s24  ;;  %s408_s6 = int_to_ptr.vmem [resolvable:$true] %s407_s6 }
 0x11e   :  { %s6331_s25 = scalar_lea.hbm %s7208_s29, 48 }
 0x11f   :  { %p6332_p12 = scmp.ne.s32.totalorder %s7208_s29, %s6331_s25  ;;  %p6335_p13 = scmp.lt.u32.totalorder %s6331_s25, %s7208_s29 }
 0x121   :  { %p6337_p0 = pnand %p6335_p13, %p6332_p12 }
 0x123   :  { %6340 = shalt.err (!%p6337_p0)
}
 0x124   :  { %s6341_s26 = scalar_lea.vmem %s386_s24, 48  ;;  %s6345_s28 = scalar_lea.vmem %s386_s24, 64 }
 0x125   :  { %p6342_p1 = scmp.ne.s32.totalorder %s386_s24, %s6341_s26  ;;  %p6346_p2 = scmp.lt.s32.totalorder %s386_s24, %s386_s24 }
 0x126   :  { %p6347_p3 = scmp.lt.s32.totalorder %s6345_s28, %s6341_s26 }
 0x128   :  { %p6348_p4 = por %p6347_p3, %p6346_p2 }
 0x12a   :  { %p6349_p5 = pnand %p6348_p4, %p6342_p1 }
 0x12c   :  { %6352 = shalt.err (!%p6349_p5)
}
 0x12d   :  { %388 = dma.hbm_to_vmem [thread:$0]  %s7208_s29, 48, %s386_s24, [#allocation42]  }
 0x12e   :  { %s6353_s8 = scalar_lea.hbm %s7218_s21, 16 }
 0x12f   :  { %p6354_p6 = scmp.ne.s32.totalorder %s7218_s21, %s6353_s8  ;;  %p6357_p7 = scmp.lt.u32.totalorder %s6353_s8, %s7218_s21 }
 0x131   :  { %p6359_p8 = pnand %p6357_p7, %p6354_p6 }
 0x133   :  { %6362 = shalt.err (!%p6359_p8)
}
 0x134   :  { %s6363_s1 = scalar_lea.vmem %s408_s6, 16  ;;  %s6367_s2 = scalar_lea.vmem %s408_s6, 32 }
 0x135   :  { %p6364_p9 = scmp.ne.s32.totalorder %s408_s6, %s6363_s1  ;;  %p6368_p10 = scmp.lt.s32.totalorder %s408_s6, %s408_s6 }
 0x136   :  { %p6369_p11 = scmp.lt.s32.totalorder %s6367_s2, %s6363_s1 }
 0x138   :  { %p6370_p12 = por %p6369_p11, %p6368_p10 }
 0x13a   :  { %p6371_p13 = pnand %p6370_p12, %p6364_p9 }
 0x13c   :  { %6374 = shalt.err (!%p6371_p13)
}
 0x13d   :  { %s8157_s10 = sld [smem:[#allocation101_spill]]  ;;  %s7046_s20 = smov [#allocation47]  }
 0x13e   :  { %410 = dma.hbm_to_vmem [thread:$0]  %s7218_s21, 16, %s408_s6, [#allocation45]  }
 0x13f   :  { %s427_s29 = sshll.u32 %s7046_s20, 4  ;;  %s7047_s11 = smov [#allocation50]   ;;  %s428_s29 = int_to_ptr.vmem [resolvable:$true] %s427_s29 }
 0x140   :  { %s448_s9 = sshll.u32 %s7047_s11, 4  ;;  %s7367_s9 = int_to_ptr.vmem [resolvable:$true] %s448_s9 }
 0x143   :  { %s6375_s14 = scalar_lea.hbm %s8157_s10, 16 }
 0x144   :  { %p6376_p0 = scmp.ne.s32.totalorder %s8157_s10, %s6375_s14  ;;  %p6379_p1 = scmp.lt.u32.totalorder %s6375_s14, %s8157_s10 }
 0x146   :  { %p6381_p2 = pnand %p6379_p1, %p6376_p0 }
 0x148   :  { %6384 = shalt.err (!%p6381_p2)
}
 0x149   :  { %s6385_s4 = scalar_lea.vmem %s428_s29, 16  ;;  %s6389_s15 = scalar_lea.vmem %s428_s29, 32 }
 0x14a   :  { %p6386_p3 = scmp.ne.s32.totalorder %s428_s29, %s6385_s4  ;;  %p6390_p4 = scmp.lt.s32.totalorder %s428_s29, %s428_s29 }
 0x14b   :  { %p6391_p5 = scmp.lt.s32.totalorder %s6389_s15, %s6385_s4 }
 0x14d   :  { %p6392_p6 = por %p6391_p5, %p6390_p4 }
 0x14f   :  { %p6393_p7 = pnand %p6392_p6, %p6386_p3 }
 0x151   :  { %6396 = shalt.err (!%p6393_p7)
}
 0x152   :  { %s8158_s21 = sld [smem:[#allocation103_spill]] }
 0x153   :  { %430 = dma.hbm_to_vmem [thread:$0]  %s8157_s10, 16, %s428_s29, [#allocation48]  }
 0x158   :  { %s6397_s16 = scalar_lea.hbm %s8158_s21, 6144 }
 0x159   :  { %p6398_p8 = scmp.ne.s32.totalorder %s8158_s21, %s6397_s16  ;;  %p6401_p9 = scmp.lt.u32.totalorder %s6397_s16, %s8158_s21 }
 0x15b   :  { %p6403_p10 = pnand %p6401_p9, %p6398_p8 }
 0x15d   :  { %6406 = shalt.err (!%p6403_p10)
}
 0x15e   :  { %s6407_s18 = scalar_lea.vmem %s7367_s9, 6144  ;;  %p6412_p12 = scmp.lt.s32.totalorder %s7367_s9, %s7367_s9 }
 0x15f   :  { %p6408_p11 = scmp.ne.s32.totalorder %s7367_s9, %s6407_s18  ;;  %p6413_p13 = scmp.lt.s32.totalorder %s6407_s18, %s6407_s18 }
 0x161   :  { %p6414_p0 = por %p6413_p13, %p6412_p12 }
 0x163   :  { %p6415_p1 = pnand %p6414_p0, %p6408_p11 }
 0x165   :  { %6418 = shalt.err (!%p6415_p1)
}
 0x166   :  { %s8159_s17 = sld [smem:[#allocation105_spill]]  ;;  %s7048_s0 = smov [#allocation53]  }
 0x167   :  { %454 = dma.hbm_to_vmem [thread:$0]  %s8158_s21, 6144, %s7367_s9, [#allocation51], %s7036_s3, %s7036_s3, %s7037_s7  }
 0x168   :  { %s471_s30 = sshll.u32 %s7048_s0, 4  ;;  %s7049_s22 = smov [#allocation56]   ;;  %s472_s30 = int_to_ptr.vmem [resolvable:$true] %s471_s30 }
 0x169   :  { %s493_s19 = sshll.u32 %s7049_s22, 4  ;;  %s494_s19 = int_to_ptr.vmem [resolvable:$true] %s493_s19 }
 0x16c   :  { %s6419_s24 = scalar_lea.hbm %s8159_s17, 48 }
 0x16d   :  { %p6420_p2 = scmp.ne.s32.totalorder %s8159_s17, %s6419_s24  ;;  %p6423_p3 = scmp.lt.u32.totalorder %s6419_s24, %s8159_s17 }
 0x16f   :  { %p6425_p4 = pnand %p6423_p3, %p6420_p2 }
 0x171   :  { %6428 = shalt.err (!%p6425_p4)
}
 0x172   :  { %s6429_s23 = scalar_lea.vmem %s472_s30, 48  ;;  %s6433_s6 = scalar_lea.vmem %s472_s30, 64 }
 0x173   :  { %p6430_p5 = scmp.ne.s32.totalorder %s472_s30, %s6429_s23  ;;  %p6434_p6 = scmp.lt.s32.totalorder %s472_s30, %s472_s30 }
 0x174   :  { %p6435_p7 = scmp.lt.s32.totalorder %s6433_s6, %s6429_s23 }
 0x176   :  { %p6436_p8 = por %p6435_p7, %p6434_p6 }
 0x178   :  { %p6437_p9 = pnand %p6436_p8, %p6430_p5 }
 0x17a   :  { %6440 = shalt.err (!%p6437_p9)
}
 0x17b   :  { %s8160_s25 = sld [smem:[#allocation107_spill]] }
 0x17c   :  { %474 = dma.hbm_to_vmem [thread:$0]  %s8159_s17, 48, %s472_s30, [#allocation54]  }
 0x181   :  { %s6441_s26 = scalar_lea.hbm %s8160_s25, 16 }
 0x182   :  { %p6442_p10 = scmp.ne.s32.totalorder %s8160_s25, %s6441_s26  ;;  %p6445_p11 = scmp.lt.u32.totalorder %s6441_s26, %s8160_s25 }
 0x184   :  { %p6447_p12 = pnand %p6445_p11, %p6442_p10 }
 0x186   :  { %6450 = shalt.err (!%p6447_p12)
}
 0x187   :  { %s6451_s28 = scalar_lea.vmem %s494_s19, 16  ;;  %s6455_s8 = scalar_lea.vmem %s494_s19, 32 }
 0x188   :  { %p6452_p13 = scmp.ne.s32.totalorder %s494_s19, %s6451_s28  ;;  %p6456_p0 = scmp.lt.s32.totalorder %s494_s19, %s494_s19 }
 0x189   :  { %p6457_p1 = scmp.lt.s32.totalorder %s6455_s8, %s6451_s28 }
 0x18b   :  { %p6458_p2 = por %p6457_p1, %p6456_p0 }
 0x18d   :  { %p6459_p3 = pnand %p6458_p2, %p6452_p13 }
 0x18f   :  { %6462 = shalt.err (!%p6459_p3)
}
 0x190   :  { %s8161_s1 = sld [smem:[#allocation86_spill]]  ;;  %s7050_s2 = smov [#allocation2]  }
 0x191   :  { %496 = dma.hbm_to_vmem [thread:$0]  %s8160_s25, 16, %s494_s19, [#allocation57]  }
 0x192   :  { %s113_s10 = sshll.u32 %s7050_s2, 4  ;;  %s7051_s20 = smov [#allocation7]   ;;  %s114_s10 = int_to_ptr.vmem [resolvable:$true] %s113_s10 }
 0x193   :  { %s132_s29 = sshll.u32 %s7051_s20, 4  ;;  %s7393_s29 = int_to_ptr.vmem [resolvable:$true] %s132_s29 }
 0x196   :  { %s6463_s11 = scalar_lea.hbm %s8161_s1, 128 }
 0x197   :  { %p6464_p4 = scmp.ne.s32.totalorder %s8161_s1, %s6463_s11  ;;  %p6467_p5 = scmp.lt.u32.totalorder %s6463_s11, %s8161_s1 }
 0x199   :  { %p6469_p6 = pnand %p6467_p5, %p6464_p4 }
 0x19b   :  { %6472 = shalt.err (!%p6469_p6)
}
 0x19c   :  { %s6473_s9 = scalar_lea.vmem %s114_s10, 128  ;;  %p6478_p8 = scmp.lt.s32.totalorder %s114_s10, %s114_s10 }
 0x19d   :  { %p6474_p7 = scmp.ne.s32.totalorder %s114_s10, %s6473_s9  ;;  %p6479_p9 = scmp.lt.s32.totalorder %s6473_s9, %s6473_s9 }
 0x19f   :  { %p6480_p10 = por %p6479_p9, %p6478_p8 }
 0x1a1   :  { %p6481_p11 = pnand %p6480_p10, %p6474_p7 }
 0x1a3   :  { %6484 = shalt.err (!%p6481_p11)
}
 0x1a4   :  { %s8162_s14 = sld [smem:[#allocation87_spill]] }
 0x1a5   :  { %116 = dma.hbm_to_vmem [thread:$0]  %s8161_s1, 128, %s114_s10, [#allocation3]  }
 0x1aa   :  { %s6485_s4 = scalar_lea.hbm %s8162_s14, 256 }
 0x1ab   :  { %p6486_p12 = scmp.ne.s32.totalorder %s8162_s14, %s6485_s4  ;;  %p6489_p13 = scmp.lt.u32.totalorder %s6485_s4, %s8162_s14 }
 0x1ad   :  { %p6491_p0 = pnand %p6489_p13, %p6486_p12 }
 0x1af   :  { %6494 = shalt.err (!%p6491_p0)
}
 0x1b0   :  { %s6495_s15 = scalar_lea.vmem %s7393_s29, 256  ;;  %p6500_p2 = scmp.lt.s32.totalorder %s7393_s29, %s7393_s29 }
 0x1b1   :  { %p6496_p1 = scmp.ne.s32.totalorder %s7393_s29, %s6495_s15  ;;  %p6501_p3 = scmp.lt.s32.totalorder %s6495_s15, %s6495_s15 }
 0x1b3   :  { %p6502_p4 = por %p6501_p3, %p6500_p2 }
 0x1b5   :  { %p6503_p5 = pnand %p6502_p4, %p6496_p1 }
 0x1b7   :  { %6506 = shalt.err (!%p6503_p5)
}
 0x1b8   :  { %s8163_s21 = sld [smem:[#allocation88_spill]]  ;;  %s7052_s16 = smov [#allocation10]  }
 0x1b9   :  { %138 = dma.hbm_to_vmem [thread:$0]  %s8162_s14, 256, %s7393_s29, [#allocation6], %s7036_s3, %s7036_s3, %s7037_s7  }
 0x1ba   :  { %s154_s18 = sshll.u32 %s7052_s16, 4  ;;  %s7053_s17 = smov [#allocation13]   ;;  %s155_s18 = int_to_ptr.vmem [resolvable:$true] %s154_s18 }
 0x1bb   :  { %s176_s0 = sshll.u32 %s7053_s17, 4  ;;  %s7411_s0 = int_to_ptr.vmem [resolvable:$true] %s176_s0 }
 0x1be   :  { %s6507_s30 = scalar_lea.hbm %s8163_s21, 256 }
 0x1bf   :  { %p6508_p6 = scmp.ne.s32.totalorder %s8163_s21, %s6507_s30  ;;  %p6511_p7 = scmp.lt.u32.totalorder %s6507_s30, %s8163_s21 }
 0x1c1   :  { %p6513_p8 = pnand %p6511_p7, %p6508_p6 }
 0x1c3   :  { %6516 = shalt.err (!%p6513_p8)
}
 0x1c4   :  { %s6517_s22 = scalar_lea.vmem %s155_s18, 256  ;;  %p6522_p10 = scmp.lt.s32.totalorder %s155_s18, %s155_s18 }
 0x1c5   :  { %p6518_p9 = scmp.ne.s32.totalorder %s155_s18, %s6517_s22  ;;  %p6523_p11 = scmp.lt.s32.totalorder %s6517_s22, %s6517_s22 }
 0x1c7   :  { %p6524_p12 = por %p6523_p11, %p6522_p10 }
 0x1c9   :  { %p6525_p13 = pnand %p6524_p12, %p6518_p9 }
 0x1cb   :  { %6528 = shalt.err (!%p6525_p13)
}
 0x1cc   :  { %s8164_s19 = sld [smem:[#allocation89_spill]] }
 0x1cd   :  { %160 = dma.hbm_to_vmem [thread:$0]  %s8163_s21, 256, %s155_s18, [#allocation9], %s7036_s3, %s7036_s3, %s7037_s7  }
 0x1d2   :  { %s6529_s24 = scalar_lea.hbm %s8164_s19, 2048 }
 0x1d3   :  { %p6530_p0 = scmp.ne.s32.totalorder %s8164_s19, %s6529_s24  ;;  %p6533_p1 = scmp.lt.u32.totalorder %s6529_s24, %s8164_s19 }
 0x1d5   :  { %p6535_p2 = pnand %p6533_p1, %p6530_p0 }
 0x1d7   :  { %6538 = shalt.err (!%p6535_p2)
}
 0x1d8   :  { %s6539_s23 = scalar_lea.vmem %s7411_s0, 2048  ;;  %p6544_p4 = scmp.lt.s32.totalorder %s7411_s0, %s7411_s0 }
 0x1d9   :  { %p6540_p3 = scmp.ne.s32.totalorder %s7411_s0, %s6539_s23  ;;  %p6545_p5 = scmp.lt.s32.totalorder %s6539_s23, %s6539_s23 }
 0x1db   :  { %p6546_p6 = por %p6545_p5, %p6544_p4 }
 0x1dd   :  { %p6547_p7 = pnand %p6546_p6, %p6540_p3 }
 0x1df   :  { %6550 = shalt.err (!%p6547_p7)
}
 0x1e0   :  { %s8165_s6 = sld [smem:[#allocation90_spill]]  ;;  %s7054_s25 = smov [#allocation16]  }
 0x1e1   :  { %182 = dma.hbm_to_vmem [thread:$0]  %s8164_s19, 2048, %s7411_s0, [#allocation12], %s7036_s3, %s7036_s3, %s7037_s7  }
 0x1e2   :  { %s198_s26 = sshll.u32 %s7054_s25, 4  ;;  %s7055_s28 = smov [#allocation19]   ;;  %s199_s26 = int_to_ptr.vmem [resolvable:$true] %s198_s26 }
 0x1e3   :  { %s223_s8 = sshll.u32 %s7055_s28, 4  ;;  %s224_s8 = int_to_ptr.vmem [resolvable:$true] %s223_s8 }
 0x1e6   :  { %s6551_s1 = scalar_lea.hbm %s8165_s6, 2048 }
 0x1e7   :  { %p6552_p8 = scmp.ne.s32.totalorder %s8165_s6, %s6551_s1  ;;  %p6555_p9 = scmp.lt.u32.totalorder %s6551_s1, %s8165_s6 }
 0x1e9   :  { %p6557_p10 = pnand %p6555_p9, %p6552_p8 }
 0x1eb   :  { %6560 = shalt.err (!%p6557_p10)
}
 0x1ec   :  { %s6561_s2 = scalar_lea.vmem %s199_s26, 2048  ;;  %p6566_p12 = scmp.lt.s32.totalorder %s199_s26, %s199_s26 }
 0x1ed   :  { %p6562_p11 = scmp.ne.s32.totalorder %s199_s26, %s6561_s2  ;;  %p6567_p13 = scmp.lt.s32.totalorder %s6561_s2, %s6561_s2 }
 0x1ef   :  { %p6568_p0 = por %p6567_p13, %p6566_p12 }
 0x1f1   :  { %p6569_p1 = pnand %p6568_p0, %p6562_p11 }
 0x1f3   :  { %6572 = shalt.err (!%p6569_p1)
}
 0x1f4   :  { %s8166_s10 = sld [smem:[#allocation91_spill]] }
 0x1f5   :  { %204 = dma.hbm_to_vmem [thread:$0]  %s8165_s6, 2048, %s199_s26, [#allocation15], %s7036_s3, %s7036_s3, %s7037_s7  }
 0x1fa   :  { %s6573_s20 = scalar_lea.hbm %s8166_s10, 16 }
 0x1fb   :  { %p6574_p2 = scmp.ne.s32.totalorder %s8166_s10, %s6573_s20  ;;  %p6577_p3 = scmp.lt.u32.totalorder %s6573_s20, %s8166_s10 }
 0x1fd   :  { %p6579_p4 = pnand %p6577_p3, %p6574_p2 }
 0x1ff   :  { %6582 = shalt.err (!%p6579_p4)
}
 0x200   :  { %s6583_s29 = scalar_lea.vmem %s224_s8, 16  ;;  %s6587_s11 = scalar_lea.vmem %s224_s8, 32 }
 0x201   :  { %p6584_p5 = scmp.ne.s32.totalorder %s224_s8, %s6583_s29  ;;  %p6588_p6 = scmp.lt.s32.totalorder %s224_s8, %s224_s8 }
 0x202   :  { %p6589_p7 = scmp.lt.s32.totalorder %s6587_s11, %s6583_s29 }
 0x204   :  { %p6590_p8 = por %p6589_p7, %p6588_p6 }
 0x206   :  { %p6591_p9 = pnand %p6590_p8, %p6584_p5 }
 0x208   :  { %6594 = shalt.err (!%p6591_p9)
}
 0x209   :  { %s8167_s9 = sld [smem:[#allocation92_spill]]  ;;  %s7056_s14 = smov [#allocation22]  }
 0x20a   :  { %226 = dma.hbm_to_vmem [thread:$0]  %s8166_s10, 16, %s224_s8, [#allocation18]  }
 0x20b   :  { %s242_s4 = sshll.u32 %s7056_s14, 4  ;;  %s7057_s15 = smov [#allocation25]   ;;  %s243_s4 = int_to_ptr.vmem [resolvable:$true] %s242_s4 }
 0x20c   :  { %s264_s21 = sshll.u32 %s7057_s15, 4  ;;  %s7443_s21 = int_to_ptr.vmem [resolvable:$true] %s264_s21 }
 0x20f   :  { %s6595_s16 = scalar_lea.hbm %s8167_s9, 2048 }
 0x210   :  { %p6596_p10 = scmp.ne.s32.totalorder %s8167_s9, %s6595_s16  ;;  %p6599_p11 = scmp.lt.u32.totalorder %s6595_s16, %s8167_s9 }
 0x212   :  { %p6601_p12 = pnand %p6599_p11, %p6596_p10 }
 0x214   :  { %6604 = shalt.err (!%p6601_p12)
}
 0x215   :  { %s6605_s18 = scalar_lea.vmem %s243_s4, 2048  ;;  %p6610_p0 = scmp.lt.s32.totalorder %s243_s4, %s243_s4 }
 0x216   :  { %p6606_p13 = scmp.ne.s32.totalorder %s243_s4, %s6605_s18  ;;  %p6611_p1 = scmp.lt.s32.totalorder %s6605_s18, %s6605_s18 }
 0x218   :  { %p6612_p2 = por %p6611_p1, %p6610_p0 }
 0x21a   :  { %p6613_p3 = pnand %p6612_p2, %p6606_p13 }
 0x21c   :  { %6616 = shalt.err (!%p6613_p3)
}
 0x21d   :  { %s8168_s17 = sld [smem:[#allocation93_spill]] }
 0x21e   :  { %248 = dma.hbm_to_vmem [thread:$0]  %s8167_s9, 2048, %s243_s4, [#allocation21], %s7036_s3, %s7036_s3, %s7037_s7  }
 0x223   :  { %s6617_s0 = scalar_lea.hbm %s8168_s17, 6144 }
 0x224   :  { %p6618_p4 = scmp.ne.s32.totalorder %s8168_s17, %s6617_s0  ;;  %p6621_p5 = scmp.lt.u32.totalorder %s6617_s0, %s8168_s17 }
 0x226   :  { %p6623_p6 = pnand %p6621_p5, %p6618_p4 }
 0x228   :  { %6626 = shalt.err (!%p6623_p6)
}
 0x229   :  { %s6627_s30 = scalar_lea.vmem %s7443_s21, 6144  ;;  %p6632_p8 = scmp.lt.s32.totalorder %s7443_s21, %s7443_s21 }
 0x22a   :  { %p6628_p7 = scmp.ne.s32.totalorder %s7443_s21, %s6627_s30  ;;  %p6633_p9 = scmp.lt.s32.totalorder %s6627_s30, %s6627_s30 }
 0x22c   :  { %p6634_p10 = por %p6633_p9, %p6632_p8 }
 0x22e   :  { %p6635_p11 = pnand %p6634_p10, %p6628_p7 }
 0x230   :  { %6638 = shalt.err (!%p6635_p11)
}
 0x231   :  { %s8169_s22 = sld [smem:[#allocation94_spill]]  ;;  %s7058_s19 = smov [#allocation28]  }
 0x232   :  { %270 = dma.hbm_to_vmem [thread:$0]  %s8168_s17, 6144, %s7443_s21, [#allocation24], %s7036_s3, %s7036_s3, %s7037_s7  }
 0x233   :  { %s289_s24 = sshll.u32 %s7058_s19, 4  ;;  %s7059_s23 = smov [#allocation31]   ;;  %s290_s24 = int_to_ptr.vmem [resolvable:$true] %s289_s24 }
 0x234   :  { %s308_s6 = sshll.u32 %s7059_s23, 4  ;;  %s7464_s6 = int_to_ptr.vmem [resolvable:$true] %s308_s6 }
 0x237   :  { %s6639_s25 = scalar_lea.hbm %s8169_s22, 48 }
 0x238   :  { %p6640_p12 = scmp.ne.s32.totalorder %s8169_s22, %s6639_s25  ;;  %p6643_p13 = scmp.lt.u32.totalorder %s6639_s25, %s8169_s22 }
 0x23a   :  { %p6645_p0 = pnand %p6643_p13, %p6640_p12 }
 0x23c   :  { %6648 = shalt.err (!%p6645_p0)
}
 0x23d   :  { %s6649_s26 = scalar_lea.vmem %s290_s24, 48  ;;  %s6653_s28 = scalar_lea.vmem %s290_s24, 64 }
 0x23e   :  { %p6650_p1 = scmp.ne.s32.totalorder %s290_s24, %s6649_s26  ;;  %p6654_p2 = scmp.lt.s32.totalorder %s290_s24, %s290_s24 }
 0x23f   :  { %p6655_p3 = scmp.lt.s32.totalorder %s6653_s28, %s6649_s26 }
 0x241   :  { %p6656_p4 = por %p6655_p3, %p6654_p2 }
 0x243   :  { %p6657_p5 = pnand %p6656_p4, %p6650_p1 }
 0x245   :  { %6660 = shalt.err (!%p6657_p5)
}
 0x246   :  { %s8170_s8 = sld [smem:[#allocation95_spill]] }
 0x247   :  { %292 = dma.hbm_to_vmem [thread:$0]  %s8169_s22, 48, %s290_s24, [#allocation27]  }
 0x24c   :  { %s6661_s1 = scalar_lea.hbm %s8170_s8, 2048 }
 0x24d   :  { %p6662_p6 = scmp.ne.s32.totalorder %s8170_s8, %s6661_s1  ;;  %p6665_p7 = scmp.lt.u32.totalorder %s6661_s1, %s8170_s8 }
 0x24f   :  { %p6667_p8 = pnand %p6665_p7, %p6662_p6 }
 0x251   :  { %6670 = shalt.err (!%p6667_p8)
}
 0x252   :  { %s6671_s2 = scalar_lea.vmem %s7464_s6, 2048  ;;  %p6676_p10 = scmp.lt.s32.totalorder %s7464_s6, %s7464_s6 }
 0x253   :  { %p6672_p9 = scmp.ne.s32.totalorder %s7464_s6, %s6671_s2  ;;  %p6677_p11 = scmp.lt.s32.totalorder %s6671_s2, %s6671_s2 }
 0x255   :  { %p6678_p12 = por %p6677_p11, %p6676_p10 }
 0x257   :  { %p6679_p13 = pnand %p6678_p12, %p6672_p9 }
 0x259   :  { %6682 = shalt.err (!%p6679_p13)
}
 0x25a   :  { %s8171_s10 = sld [smem:[#allocation96_spill]]  ;;  %s7060_s20 = smov [#allocation34]  }
 0x25b   :  { %314 = dma.hbm_to_vmem [thread:$0]  %s8170_s8, 2048, %s7464_s6, [#allocation30], %s7036_s3, %s7036_s3, %s7037_s7  }
 0x25c   :  { %s331_s29 = sshll.u32 %s7060_s20, 4  ;;  %s7061_s11 = smov [#allocation37]   ;;  %s332_s29 = int_to_ptr.vmem [resolvable:$true] %s331_s29 }
 0x25d   :  { %s350_s9 = sshll.u32 %s7061_s11, 4  ;;  %s7482_s9 = int_to_ptr.vmem [resolvable:$true] %s350_s9 }
 0x260   :  { %s6683_s14 = scalar_lea.hbm %s8171_s10, 16 }
 0x261   :  { %p6684_p0 = scmp.ne.s32.totalorder %s8171_s10, %s6683_s14  ;;  %p6687_p1 = scmp.lt.u32.totalorder %s6683_s14, %s8171_s10 }
 0x263   :  { %p6689_p2 = pnand %p6687_p1, %p6684_p0 }
 0x265   :  { %6692 = shalt.err (!%p6689_p2)
}
 0x266   :  { %s6693_s4 = scalar_lea.vmem %s332_s29, 16  ;;  %s6697_s15 = scalar_lea.vmem %s332_s29, 32 }
 0x267   :  { %p6694_p3 = scmp.ne.s32.totalorder %s332_s29, %s6693_s4  ;;  %p6698_p4 = scmp.lt.s32.totalorder %s332_s29, %s332_s29 }
 0x268   :  { %p6699_p5 = scmp.lt.s32.totalorder %s6697_s15, %s6693_s4 }
 0x26a   :  { %p6700_p6 = por %p6699_p5, %p6698_p4 }
 0x26c   :  { %p6701_p7 = pnand %p6700_p6, %p6694_p3 }
 0x26e   :  { %6704 = shalt.err (!%p6701_p7)
}
 0x26f   :  { %s8172_s21 = sld [smem:[#allocation97_spill]] }
 0x270   :  { %334 = dma.hbm_to_vmem [thread:$0]  %s8171_s10, 16, %s332_s29, [#allocation33]  }
 0x275   :  { %s6705_s16 = scalar_lea.hbm %s8172_s21, 6144 }
 0x276   :  { %p6706_p8 = scmp.ne.s32.totalorder %s8172_s21, %s6705_s16  ;;  %p6709_p9 = scmp.lt.u32.totalorder %s6705_s16, %s8172_s21 }
 0x278   :  { %p6711_p10 = pnand %p6709_p9, %p6706_p8 }
 0x27a   :  { %6714 = shalt.err (!%p6711_p10)
}
 0x27b   :  { %s6715_s18 = scalar_lea.vmem %s7482_s9, 6144  ;;  %p6720_p12 = scmp.lt.s32.totalorder %s7482_s9, %s7482_s9 }
 0x27c   :  { %p6716_p11 = scmp.ne.s32.totalorder %s7482_s9, %s6715_s18  ;;  %p6721_p13 = scmp.lt.s32.totalorder %s6715_s18, %s6715_s18 }
 0x27e   :  { %p6722_p0 = por %p6721_p13, %p6720_p12 }
 0x280   :  { %p6723_p1 = pnand %p6722_p0, %p6716_p11 }
 0x282   :  { %6726 = shalt.err (!%p6723_p1)
}
 0x283   :  { %s8173_s17 = sld [smem:[#allocation98_spill]]  ;;  %s7062_s0 = smov [#allocation40]  }
 0x284   :  { %356 = dma.hbm_to_vmem [thread:$0]  %s8172_s21, 6144, %s7482_s9, [#allocation36], %s7036_s3, %s7036_s3, %s7037_s7  }
 0x285   :  { %s375_s30 = sshll.u32 %s7062_s0, 4  ;;  %s7063_s22 = smov [#allocation43]   ;;  %s376_s30 = int_to_ptr.vmem [resolvable:$true] %s375_s30 }
 0x286   :  { %s394_s19 = sshll.u32 %s7063_s22, 4  ;;  %s7500_s19 = int_to_ptr.vmem [resolvable:$true] %s394_s19 }
 0x289   :  { %s6727_s24 = scalar_lea.hbm %s8173_s17, 48 }
 0x28a   :  { %p6728_p2 = scmp.ne.s32.totalorder %s8173_s17, %s6727_s24  ;;  %p6731_p3 = scmp.lt.u32.totalorder %s6727_s24, %s8173_s17 }
 0x28c   :  { %p6733_p4 = pnand %p6731_p3, %p6728_p2 }
 0x28e   :  { %6736 = shalt.err (!%p6733_p4)
}
 0x28f   :  { %s6737_s23 = scalar_lea.vmem %s376_s30, 48  ;;  %s6741_s6 = scalar_lea.vmem %s376_s30, 64 }
 0x290   :  { %p6738_p5 = scmp.ne.s32.totalorder %s376_s30, %s6737_s23  ;;  %p6742_p6 = scmp.lt.s32.totalorder %s376_s30, %s376_s30 }
 0x291   :  { %p6743_p7 = scmp.lt.s32.totalorder %s6741_s6, %s6737_s23 }
 0x293   :  { %p6744_p8 = por %p6743_p7, %p6742_p6 }
 0x295   :  { %p6745_p9 = pnand %p6744_p8, %p6738_p5 }
 0x297   :  { %6748 = shalt.err (!%p6745_p9)
}
 0x298   :  { %s8174_s25 = sld [smem:[#allocation99_spill]] }
 0x299   :  { %378 = dma.hbm_to_vmem [thread:$0]  %s8173_s17, 48, %s376_s30, [#allocation39]  }
 0x29e   :  { %s6749_s26 = scalar_lea.hbm %s8174_s25, 2048 }
 0x29f   :  { %p6750_p10 = scmp.ne.s32.totalorder %s8174_s25, %s6749_s26  ;;  %p6753_p11 = scmp.lt.u32.totalorder %s6749_s26, %s8174_s25 }
 0x2a1   :  { %p6755_p12 = pnand %p6753_p11, %p6750_p10 }
 0x2a3   :  { %6758 = shalt.err (!%p6755_p12)
}
 0x2a4   :  { %s6759_s28 = scalar_lea.vmem %s7500_s19, 2048  ;;  %p6764_p0 = scmp.lt.s32.totalorder %s7500_s19, %s7500_s19 }
 0x2a5   :  { %p6760_p13 = scmp.ne.s32.totalorder %s7500_s19, %s6759_s28  ;;  %p6765_p1 = scmp.lt.s32.totalorder %s6759_s28, %s6759_s28 }
 0x2a7   :  { %p6766_p2 = por %p6765_p1, %p6764_p0 }
 0x2a9   :  { %p6767_p3 = pnand %p6766_p2, %p6760_p13 }
 0x2ab   :  { %6770 = shalt.err (!%p6767_p3)
}
 0x2ac   :  { %s8175_s8 = sld [smem:[#allocation100_spill]]  ;;  %s7064_s1 = smov [#allocation46]  }
 0x2ad   :  { %400 = dma.hbm_to_vmem [thread:$0]  %s8174_s25, 2048, %s7500_s19, [#allocation42], %s7036_s3, %s7036_s3, %s7037_s7  }
 0x2ae   :  { %s417_s2 = sshll.u32 %s7064_s1, 4  ;;  %s7065_s10 = smov [#allocation49]   ;;  %s418_s2 = int_to_ptr.vmem [resolvable:$true] %s417_s2 }
 0x2af   :  { %s436_s20 = sshll.u32 %s7065_s10, 4  ;;  %s7518_s20 = int_to_ptr.vmem [resolvable:$true] %s436_s20 }
 0x2b2   :  { %s6771_s29 = scalar_lea.hbm %s8175_s8, 16 }
 0x2b3   :  { %p6772_p4 = scmp.ne.s32.totalorder %s8175_s8, %s6771_s29  ;;  %p6775_p5 = scmp.lt.u32.totalorder %s6771_s29, %s8175_s8 }
 0x2b5   :  { %p6777_p6 = pnand %p6775_p5, %p6772_p4 }
 0x2b7   :  { %6780 = shalt.err (!%p6777_p6)
}
 0x2b8   :  { %s6781_s11 = scalar_lea.vmem %s418_s2, 16  ;;  %s6785_s9 = scalar_lea.vmem %s418_s2, 32 }
 0x2b9   :  { %p6782_p7 = scmp.ne.s32.totalorder %s418_s2, %s6781_s11  ;;  %p6786_p8 = scmp.lt.s32.totalorder %s418_s2, %s418_s2 }
 0x2ba   :  { %p6787_p9 = scmp.lt.s32.totalorder %s6785_s9, %s6781_s11 }
 0x2bc   :  { %p6788_p10 = por %p6787_p9, %p6786_p8 }
 0x2be   :  { %p6789_p11 = pnand %p6788_p10, %p6782_p7 }
 0x2c0   :  { %6792 = shalt.err (!%p6789_p11)
}
 0x2c1   :  { %s8176_s14 = sld [smem:[#allocation102_spill]] }
 0x2c2   :  { %420 = dma.hbm_to_vmem [thread:$0]  %s8175_s8, 16, %s418_s2, [#allocation45]  }
 0x2c7   :  { %s6793_s4 = scalar_lea.hbm %s8176_s14, 6144 }
 0x2c8   :  { %p6794_p12 = scmp.ne.s32.totalorder %s8176_s14, %s6793_s4  ;;  %p6797_p13 = scmp.lt.u32.totalorder %s6793_s4, %s8176_s14 }
 0x2ca   :  { %p6799_p0 = pnand %p6797_p13, %p6794_p12 }
 0x2cc   :  { %6802 = shalt.err (!%p6799_p0)
}
 0x2cd   :  { %s6803_s15 = scalar_lea.vmem %s7518_s20, 6144  ;;  %p6808_p2 = scmp.lt.s32.totalorder %s7518_s20, %s7518_s20 }
 0x2ce   :  { %p6804_p1 = scmp.ne.s32.totalorder %s7518_s20, %s6803_s15  ;;  %p6809_p3 = scmp.lt.s32.totalorder %s6803_s15, %s6803_s15 }
 0x2d0   :  { %p6810_p4 = por %p6809_p3, %p6808_p2 }
 0x2d2   :  { %p6811_p5 = pnand %p6810_p4, %p6804_p1 }
 0x2d4   :  { %6814 = shalt.err (!%p6811_p5)
}
 0x2d5   :  { %s8177_s21 = sld [smem:[#allocation104_spill]]  ;;  %s7066_s16 = smov [#allocation52]  }
 0x2d6   :  { %442 = dma.hbm_to_vmem [thread:$0]  %s8176_s14, 6144, %s7518_s20, [#allocation48], %s7036_s3, %s7036_s3, %s7037_s7  }
 0x2d7   :  { %s461_s18 = sshll.u32 %s7066_s16, 4  ;;  %s7067_s17 = smov [#allocation55]   ;;  %s462_s18 = int_to_ptr.vmem [resolvable:$true] %s461_s18 }
 0x2d8   :  { %s480_s0 = sshll.u32 %s7067_s17, 4  ;;  %s7536_s0 = int_to_ptr.vmem [resolvable:$true] %s480_s0 }
 0x2db   :  { %s6815_s30 = scalar_lea.hbm %s8177_s21, 48 }
 0x2dc   :  { %p6816_p6 = scmp.ne.s32.totalorder %s8177_s21, %s6815_s30  ;;  %p6819_p7 = scmp.lt.u32.totalorder %s6815_s30, %s8177_s21 }
 0x2de   :  { %p6821_p8 = pnand %p6819_p7, %p6816_p6 }
 0x2e0   :  { %6824 = shalt.err (!%p6821_p8)
}
 0x2e1   :  { %s6825_s22 = scalar_lea.vmem %s462_s18, 48  ;;  %s6829_s19 = scalar_lea.vmem %s462_s18, 64 }
 0x2e2   :  { %p6826_p9 = scmp.ne.s32.totalorder %s462_s18, %s6825_s22  ;;  %p6830_p10 = scmp.lt.s32.totalorder %s462_s18, %s462_s18 }
 0x2e3   :  { %p6831_p11 = scmp.lt.s32.totalorder %s6829_s19, %s6825_s22 }
 0x2e5   :  { %p6832_p12 = por %p6831_p11, %p6830_p10 }
 0x2e7   :  { %p6833_p13 = pnand %p6832_p12, %p6826_p9 }
 0x2e9   :  { %6836 = shalt.err (!%p6833_p13)
}
 0x2ea   :  { %s8178_s24 = sld [smem:[#allocation106_spill]] }
 0x2eb   :  { %464 = dma.hbm_to_vmem [thread:$0]  %s8177_s21, 48, %s462_s18, [#allocation51]  }
 0x2f0   :  { %s6837_s23 = scalar_lea.hbm %s8178_s24, 2048 }
 0x2f1   :  { %p6838_p0 = scmp.ne.s32.totalorder %s8178_s24, %s6837_s23  ;;  %p6841_p1 = scmp.lt.u32.totalorder %s6837_s23, %s8178_s24 }
 0x2f3   :  { %p6843_p2 = pnand %p6841_p1, %p6838_p0 }
 0x2f5   :  { %6846 = shalt.err (!%p6843_p2)
}
 0x2f6   :  { %s6847_s6 = scalar_lea.vmem %s7536_s0, 2048  ;;  %p6852_p4 = scmp.lt.s32.totalorder %s7536_s0, %s7536_s0 }
 0x2f7   :  { %p6848_p3 = scmp.ne.s32.totalorder %s7536_s0, %s6847_s6  ;;  %p6853_p5 = scmp.lt.s32.totalorder %s6847_s6, %s6847_s6 }
 0x2f9   :  { %p6854_p6 = por %p6853_p5, %p6852_p4 }
 0x2fb   :  { %p6855_p7 = pnand %p6854_p6, %p6848_p3 }
 0x2fd   :  { %6858 = shalt.err (!%p6855_p7)
}
 0x2fe   :  { %486 = dma.hbm_to_vmem [thread:$0]  %s8178_s24, 2048, %s7536_s0, [#allocation54], %s7036_s3, %s7036_s3, %s7037_s7  }
 0x2ff   :  { %s7068_s25 = smov [#allocation58]   ;;  %s7069_s28 = smov [#allocation59]  }
 0x300   :  { %s502_s26 = sshll.u32 %s7068_s25, 4  ;;  %s515_s8 = sshll.u32 %s7069_s28, 4  ;;  %s503_s26 = int_to_ptr.vmem [resolvable:$true] %s502_s26  ;;  %s516_s8 = int_to_ptr.vmem [resolvable:$true] %s515_s8 }
 0x301   :  { %s6859_s1 = scalar_lea.hbm %s7263_s27, 2048 }
 0x302   :  { %p6860_p8 = scmp.ne.s32.totalorder %s7263_s27, %s6859_s1  ;;  %p6863_p9 = scmp.lt.u32.totalorder %s6859_s1, %s7263_s27 }
 0x304   :  { %p6865_p10 = pnand %p6863_p9, %p6860_p8 }
 0x306   :  { %6868 = shalt.err (!%p6865_p10)
}
 0x307   :  { %s6869_s2 = scalar_lea.vmem %s503_s26, 2048  ;;  %p6874_p12 = scmp.lt.s32.totalorder %s503_s26, %s503_s26 }
 0x308   :  { %p6870_p11 = scmp.ne.s32.totalorder %s503_s26, %s6869_s2  ;;  %p6875_p13 = scmp.lt.s32.totalorder %s6869_s2, %s6869_s2 }
 0x30a   :  { %p6876_p0 = por %p6875_p13, %p6874_p12 }
 0x30c   :  { %p6877_p1 = pnand %p6876_p0, %p6870_p11 }
 0x30e   :  { %6880 = shalt.err (!%p6877_p1)
}
 0x30f   :  { %508 = dma.hbm_to_vmem [thread:$0]  %s7263_s27, 2048, %s503_s26, [#allocation57], %s7036_s3, %s7036_s3, %s7037_s7  }
 0x310   :  { %s6881_s10 = scalar_lea.hbm %s7268_s13, 16 }
 0x311   :  { %p6882_p2 = scmp.ne.s32.totalorder %s7268_s13, %s6881_s10  ;;  %p6885_p3 = scmp.lt.u32.totalorder %s6881_s10, %s7268_s13 }
 0x313   :  { %p6887_p4 = pnand %p6885_p3, %p6882_p2 }
 0x315   :  { %6890 = shalt.err (!%p6887_p4)
}
 0x316   :  { %s6891_s20 = scalar_lea.vmem %s516_s8, 16  ;;  %s6895_s29 = scalar_lea.vmem %s516_s8, 32 }
 0x317   :  { %p6892_p5 = scmp.ne.s32.totalorder %s516_s8, %s6891_s20  ;;  %p6896_p6 = scmp.lt.s32.totalorder %s516_s8, %s516_s8 }
 0x318   :  { %p6897_p7 = scmp.lt.s32.totalorder %s6895_s29, %s6891_s20 }
 0x31a   :  { %p6898_p8 = por %p6897_p7, %p6896_p6 }
 0x31c   :  { %p6899_p9 = pnand %p6898_p8, %p6892_p5 }
 0x31e   :  { %6902 = shalt.err (!%p6899_p9)
}
 0x31f   :  { %518 = dma.hbm_to_vmem [thread:$0]  %s7268_s13, 16, %s516_s8, [#allocation60]  }
 0x320   :  { %6947 = dma.done.wait [#allocation3], 128  }
 0x321   :  { %6948 = vsyncadd [#allocation3], 4294967168 }
 0x322   :  { %6949 = dma.done.wait [#allocation6], 384  }
 0x323   :  { %6950 = vsyncadd [#allocation6], 4294966912 }
 0x324   :  { %6951 = dma.done.wait [#allocation9], 384  }
 0x325   :  { %6952 = vsyncadd [#allocation9], 4294966912 }
 0x326   :  { %6953 = dma.done.wait [#allocation12], 2176  }
 0x327   :  { %6954 = vsyncadd [#allocation12], 4294965120 }
 0x328   :  { %6955 = dma.done.wait [#allocation15], 2064  }
 0x329   :  { %6956 = vsyncadd [#allocation15], 4294965232 }
 0x32a   :  { %6957 = dma.done.wait [#allocation18], 2064  }
 0x32b   :  { %6958 = vsyncadd [#allocation18], 4294965232 }
 0x32c   :  { %6959 = dma.done.wait [#allocation21], 2064  }
 0x32d   :  { %6960 = vsyncadd [#allocation21], 4294965232 }
 0x32e   :  { %6961 = dma.done.wait [#allocation24], 6160  }
 0x32f   :  { %6962 = vsyncadd [#allocation24], 4294961136 }
 0x330   :  { %6963 = dma.done.wait [#allocation27], 6192  }
 0x331   :  { %6964 = vsyncadd [#allocation27], 4294961104 }
 0x332   :  { %6965 = dma.done.wait [#allocation30], 2096  }
 0x333   :  { %6966 = vsyncadd [#allocation30], 4294965200 }
 0x334   :  { %6967 = dma.done.wait [#allocation33], 32  }
 0x335   :  { %6968 = vsyncadd [#allocation33], 4294967264 }
 0x336   :  { %6969 = dma.done.wait [#allocation36], 6160  }
 0x337   :  { %6970 = vsyncadd [#allocation36], 4294961136 }
 0x338   :  { %6971 = dma.done.wait [#allocation39], 6192  }
 0x339   :  { %6972 = vsyncadd [#allocation39], 4294961104 }
 0x33a   :  { %6973 = dma.done.wait [#allocation42], 2096  }
 0x33b   :  { %6974 = vsyncadd [#allocation42], 4294965200 }
 0x33c   :  { %6975 = dma.done.wait [#allocation45], 32  }
 0x33d   :  { %6976 = vsyncadd [#allocation45], 4294967264 }
 0x33e   :  { %6977 = dma.done.wait [#allocation48], 6160  }
 0x33f   :  { %6978 = vsyncadd [#allocation48], 4294961136 }
 0x340   :  { %6979 = dma.done.wait [#allocation51], 6192  }
 0x341   :  { %6980 = vsyncadd [#allocation51], 4294961104 }
 0x342   :  { %6981 = dma.done.wait [#allocation54], 2096  }
 0x343   :  { %6982 = vsyncadd [#allocation54], 4294965200 }
 0x344   :  { %6983 = dma.done.wait [#allocation57], 2064  }
 0x345   :  { %6984 = vsyncadd [#allocation57], 4294965232 }
 0x346   :  { %6985 = dma.done.wait [#allocation60], 16  }
 0x347   :  { %6986 = vsyncadd [#allocation60], 4294967280  ;;  %v8133_v0 = vmov 0.0|0.0   ;;  %vm7071_vm0 = vmmov 0   ;;  %v8128_v1 = vmov 0.0   ;;  %v636_v2 = vld [vmem:[#allocation13] sm:$0xff] }
 0x348   :  { %5218 = vmatprep.subr.bf16.mxu0 %v8133_v0  ;;  %4608 = vmatprep.mubr.msk.f32.mxu0 %vm7071_vm0, %v8128_v1  ;;  %v637_v3 = vld [vmem:[#allocation13 + $0x8] sm:$0xff]  ;;  %v638_v5 = vld [vmem:[#allocation13 + $0x10] sm:$0xff]  ;;  %v639_v6 = vld [vmem:[#allocation13 + $0x18] sm:$0xff]  ;;  %vm913_vm2 = vcmask 64512   ;;  %vm1027_vm5 = vcmask 130048   ;;  %s7073_s13 = smov [#allocation61]  }
 0x349   :  { %5242 = vmatprep.subr.bf16.mxu1 %v8133_v0  ;;  %4643 = vmatprep.mubr.msk.f32.mxu1 %vm7071_vm0, %v8128_v1  ;;  %v5219_v4 = vpack.c.bf16 %v637_v3, %v636_v2  ;;  %v734_v7 = vld [vmem:[#allocation16] sm:$0xff]  ;;  %v735_v8 = vld [vmem:[#allocation16 + $0x8] sm:$0xff]  ;;  %v5222_v9 = vpack.c.bf16 %v639_v6, %v638_v5  ;;  %v736_v11 = vld [vmem:[#allocation16 + $0x10] sm:$0xff]  ;;  %s3884_s27 = sshll.u32 %s7073_s13, 4  ;;  %s7074_s3 = smov [#allocation62]   ;;  %s3885_s27 = int_to_ptr.vmem [resolvable:$true] %s3884_s27 }
 0x34a   :  { %v5243_v10 = vpack.c.bf16 %v735_v8, %v734_v7  ;;  %v737_v12 = vld [vmem:[#allocation16 + $0x18] sm:$0xff]  ;;  %v641_v14 = vld [vmem:[#allocation13 + $0x28] sm:$0xff]  ;;  %v642_v19 = vld [vmem:[#allocation13 + $0x30] sm:$0xff]  ;;  %s3894_s7 = sshll.u32 %s7074_s3, 4  ;;  %s6903_s11 = scalar_lea.vmem %s3885_s27, 128  ;;  %s3895_s7 = int_to_ptr.vmem [resolvable:$true] %s3894_s7 }
 0x34b   :  { %5220 = vmatpush3.bf16.xpose.msra.mxu0 %v5219_v4  ;;  %v640_v13 = vld [vmem:[#allocation13 + $0x20] sm:$0xff]  ;;  %v5246_v15 = vpack.c.bf16 %v737_v12, %v736_v11  ;;  %v739_v18 = vld [vmem:[#allocation16 + $0x28] sm:$0xff]  ;;  %v643_v20 = vld [vmem:[#allocation13 + $0x38] sm:$0xff]  ;;  %p6904_p10 = scmp.ne.s32.totalorder %s3885_s27, %s6903_s11  ;;  %p6908_p11 = scmp.lt.s32.totalorder %s3885_s27, %s3885_s27 }
 0x34c   :  { %5221 = vmatprep.subr.bf16.mxu0 %v8133_v0  ;;  %5244 = vmatpush3.bf16.xpose.msra.mxu1 %v5243_v10  ;;  %v5225_v16 = vpack.c.bf16 %v641_v14, %v640_v13  ;;  %v738_v17 = vld [vmem:[#allocation16 + $0x20] sm:$0xff]  ;;  %v5228_v22 = vpack.c.bf16 %v643_v20, %v642_v19  ;;  %v740_v23 = vld [vmem:[#allocation16 + $0x30] sm:$0xff]  ;;  %v741_v24 = vld [vmem:[#allocation16 + $0x38] sm:$0xff]  ;;  %p6909_p12 = scmp.lt.s32.totalorder %s6903_s11, %s6903_s11 }
 0x34d   :  { %5245 = vmatprep.subr.bf16.mxu1 %v8133_v0  ;;  %v5249_v21 = vpack.c.bf16 %v739_v18, %v738_v17  ;;  %v644_v25 = vld [vmem:[#allocation13 + $0x40] sm:$0xff]  ;;  %v645_v26 = vld [vmem:[#allocation13 + $0x48] sm:$0xff]  ;;  %v5252_v27 = vpack.c.bf16 %v741_v24, %v740_v23  ;;  %v646_v31 = vld [vmem:[#allocation13 + $0x50] sm:$0xff] }
 0x34e   :  { %v5231_v28 = vpack.c.bf16 %v645_v26, %v644_v25  ;;  %v742_v29 = vld [vmem:[#allocation16 + $0x40] sm:$0xff]  ;;  %v743_v30 = vld [vmem:[#allocation16 + $0x48] sm:$0xff]  ;;  %v647_v32 = vld [vmem:[#allocation13 + $0x58] sm:$0xff]  ;;  %p6910_p13 = por %p6909_p12, %p6908_p11 }
 0x34f   :  { %v5255_v33 = vpack.c.bf16 %v743_v30, %v742_v29  ;;  %v5234_v34 = vpack.c.bf16 %v647_v32, %v646_v31  ;;  %v744_v35 = vld [vmem:[#allocation16 + $0x50] sm:$0xff]  ;;  %v745_v36 = vld [vmem:[#allocation16 + $0x58] sm:$0xff]  ;;  %v649_v38 = vld [vmem:[#allocation13 + $0x68] sm:$0xff] }
 0x350   :  { %v648_v37 = vld [vmem:[#allocation13 + $0x60] sm:$0xff]  ;;  %v5258_v39 = vpack.c.bf16 %v745_v36, %v744_v35  ;;  %v747_v42 = vld [vmem:[#allocation16 + $0x68] sm:$0xff]  ;;  %v651_v44 = vld [vmem:[#allocation13 + $0x78] sm:$0xff]  ;;  %p6911_p0 = pnand %p6910_p13, %p6904_p10 }
 0x351   :  { %v5237_v40 = vpack.c.bf16 %v649_v38, %v648_v37  ;;  %v746_v41 = vld [vmem:[#allocation16 + $0x60] sm:$0xff]  ;;  %v650_v43 = vld [vmem:[#allocation13 + $0x70] sm:$0xff]  ;;  %v749_v48 = vld [vmem:[#allocation16 + $0x78] sm:$0xff] }
 0x352   :  { %v5261_v45 = vpack.c.bf16 %v747_v42, %v746_v41  ;;  %v5240_v46 = vpack.c.bf16 %v651_v44, %v650_v43  ;;  %v748_v47 = vld [vmem:[#allocation16 + $0x70] sm:$0xff]  ;;  %v635_v50 = vld [vmem:[#allocation2] sm:$0xff]  ;;  %v823_v52 = vld [vmem:[#allocation17 + $0x8] sm:$0xff] }
 0x353   :  { %5223 = vmatpush3.bf16.xpose.msra.mxu0 %v5222_v9  ;;  %v5264_v49 = vpack.c.bf16 %v749_v48, %v748_v47  ;;  %v822_v51 = vld [vmem:[#allocation17] sm:$0xff]  ;;  %v3965_v54 = vld [vmem:[#allocation14] ss:$0 sm:$0xff]  ;;  %v1120_v57 = vld [vmem:[#allocation22 + $0x8] sm:$0xff] }
 0x354   :  { %5224 = vmatprep.subr.bf16.mxu0 %v8133_v0  ;;  %5247 = vmatpush3.bf16.xpose.msra.mxu1 %v5246_v15  ;;  %v5266_v53 = vpack.c.bf16 %v823_v52, %v822_v51  ;;  %v1119_v56 = vld [vmem:[#allocation22] sm:$0xff]  ;;  %v3969_v62 = vld [vmem:[#allocation20] ss:$0 sm:$0xff]  ;;  %v1121_v3 = vld [vmem:[#allocation22 + $0x10] sm:$0xff] }
 0x355   :  { %5248 = vmatprep.subr.bf16.mxu1 %v8133_v0  ;;  %v5302_v61 = vpack.c.bf16 %v1120_v57, %v1119_v56  ;;  %v1122_v4 = vld [vmem:[#allocation22 + $0x18] sm:$0xff]  ;;  %v1123_v6 = vld [vmem:[#allocation22 + $0x20] sm:$0xff]  ;;  %v1124_v7 = vld [vmem:[#allocation22 + $0x28] sm:$0xff] }
 0x356   :  { %v5305_v5 = vpack.c.bf16 %v1122_v4, %v1121_v3  ;;  %v5308_v8 = vpack.c.bf16 %v1124_v7, %v1123_v6  ;;  %v824_v9 = vld [vmem:[#allocation17 + $0x10] sm:$0xff]  ;;  %v825_v10 = vld [vmem:[#allocation17 + $0x18] sm:$0xff]  ;;  %v826_v11 = vld [vmem:[#allocation17 + $0x20] sm:$0xff] }
 0x357   :  { %v5270_v12 = vpack.c.bf16 %v825_v10, %v824_v9  ;;  %v827_v13 = vld [vmem:[#allocation17 + $0x28] sm:$0xff]  ;;  %v1125_v15 = vld [vmem:[#allocation22 + $0x30] sm:$0xff]  ;;  %v830_v25 = vld [vmem:[#allocation17 + $0x40] sm:$0xff] }
 0x358   :  { %v5274_v14 = vpack.c.bf16 %v827_v13, %v826_v11  ;;  %v820_v17 = vld [vmem:[#allocation10] sm:$0xff]  ;;  %v828_v19 = vld [vmem:[#allocation17 + $0x30] sm:$0xff]  ;;  %v829_v20 = vld [vmem:[#allocation17 + $0x38] sm:$0xff] }
 0x359   :  { %v1128_v23 = vld [vmem:[#allocation22 + $0x48] sm:$0xff]  ;;  %v1130_v29 = vld [vmem:[#allocation22 + $0x58] sm:$0xff] }
 0x35a   :  { %v831_v26 = vld [vmem:[#allocation17 + $0x48] sm:$0xff]  ;;  %v832_v31 = vld [vmem:[#allocation17 + $0x50] sm:$0xff]  ;;  %v833_v32 = vld [vmem:[#allocation17 + $0x58] sm:$0xff] }
 0x35b   :  { %5226 = vmatpush3.bf16.xpose.msra.mxu0 %v5225_v16  ;;  %v1126_v16 = vld [vmem:[#allocation22 + $0x38] sm:$0xff]  ;;  %v1132_v35 = vld [vmem:[#allocation22 + $0x68] sm:$0xff] }
 0x35c   :  { %5227 = vmatprep.subr.bf16.mxu0 %v8133_v0  ;;  %5250 = vmatpush3.bf16.xpose.msra.mxu1 %v5249_v21  ;;  %v5311_v18 = vpack.c.bf16 %v1126_v16, %v1125_v15  ;;  %v5278_v21 = vpack.c.bf16 %v829_v20, %v828_v19  ;;  %v834_v37 = vld [vmem:[#allocation17 + $0x60] sm:$0xff]  ;;  %v835_v38 = vld [vmem:[#allocation17 + $0x68] sm:$0xff]  ;;  %v836_v43 = vld [vmem:[#allocation17 + $0x70] sm:$0xff] }
 0x35d   :  { %5251 = vmatprep.subr.bf16.mxu1 %v8133_v0  ;;  %v1134_v41 = vld [vmem:[#allocation22 + $0x78] sm:$0xff]  ;;  %v732_v47 = vld [vmem:[#allocation7] sm:$0xff]  ;;  %v7609_v9 = vld [vmem:[#allocation5] sm:$0xff] }
 0x35e   :  { %v837_v44 = vld [vmem:[#allocation17 + $0x78] sm:$0xff]  ;;  %vm1104_vm7 = vcmp.gt.f32.partialorder %v7609_v9, 0.0 }
 0x35f   :  { %v1014_v6 = vld [vmem:[#allocation8] sm:$0xff] }
 0x363   :  { %5229 = vmatpush3.bf16.xpose.msra.mxu0 %v5228_v22  ;;  %v1127_v22 = vld [vmem:[#allocation22 + $0x40] sm:$0xff] }
 0x364   :  { %5230 = vmatprep.subr.bf16.mxu0 %v8133_v0  ;;  %5253 = vmatpush3.bf16.xpose.msra.mxu1 %v5252_v27  ;;  %v5314_v24 = vpack.c.bf16 %v1128_v23, %v1127_v22  ;;  %v5282_v27 = vpack.c.bf16 %v831_v26, %v830_v25  ;;  %v1307_v22 = vld [vmem:[#allocation25 + $0x80] sm:$0xff]  ;;  %v1308_v23 = vld [vmem:[#allocation25 + $0x88] sm:$0xff] }
 0x365   :  { %5254 = vmatprep.subr.bf16.mxu1 %v8133_v0  ;;  %v1291_v25 = vld [vmem:[#allocation25] sm:$0xff]  ;;  %v1292_v26 = vld [vmem:[#allocation25 + $0x8] sm:$0xff] }
 0x36b   :  { %5232 = vmatpush3.bf16.xpose.msra.mxu0 %v5231_v28  ;;  %v1129_v28 = vld [vmem:[#allocation22 + $0x50] sm:$0xff] }
 0x36c   :  { %5233 = vmatprep.subr.bf16.mxu0 %v8133_v0  ;;  %5256 = vmatpush3.bf16.xpose.msra.mxu1 %v5255_v33  ;;  %v5317_v30 = vpack.c.bf16 %v1130_v29, %v1129_v28  ;;  %v5286_v33 = vpack.c.bf16 %v833_v32, %v832_v31  ;;  %v1309_v28 = vld [vmem:[#allocation25 + $0x90] sm:$0xff]  ;;  %v1310_v29 = vld [vmem:[#allocation25 + $0x98] sm:$0xff] }
 0x36d   :  { %5257 = vmatprep.subr.bf16.mxu1 %v8133_v0  ;;  %v1293_v31 = vld [vmem:[#allocation25 + $0x10] sm:$0xff]  ;;  %v1294_v32 = vld [vmem:[#allocation25 + $0x18] sm:$0xff] }
 0x373   :  { %5235 = vmatpush3.bf16.xpose.msra.mxu0 %v5234_v34  ;;  %v1131_v34 = vld [vmem:[#allocation22 + $0x60] sm:$0xff] }
 0x374   :  { %5236 = vmatprep.subr.bf16.mxu0 %v8133_v0  ;;  %5259 = vmatpush3.bf16.xpose.msra.mxu1 %v5258_v39  ;;  %v5320_v36 = vpack.c.bf16 %v1132_v35, %v1131_v34  ;;  %v5290_v39 = vpack.c.bf16 %v835_v38, %v834_v37  ;;  %v1311_v34 = vld [vmem:[#allocation25 + $0xa0] sm:$0xff]  ;;  %v1312_v35 = vld [vmem:[#allocation25 + $0xa8] sm:$0xff] }
 0x375   :  { %5260 = vmatprep.subr.bf16.mxu1 %v8133_v0  ;;  %v1295_v37 = vld [vmem:[#allocation25 + $0x20] sm:$0xff]  ;;  %v1296_v38 = vld [vmem:[#allocation25 + $0x28] sm:$0xff] }
 0x37b   :  { %5238 = vmatpush3.bf16.xpose.msra.mxu0 %v5237_v40  ;;  %v1133_v40 = vld [vmem:[#allocation22 + $0x70] sm:$0xff] }
 0x37c   :  { %5239 = vmatprep.subr.bf16.mxu0 %v8133_v0  ;;  %5262 = vmatpush3.bf16.xpose.msra.mxu1 %v5261_v45  ;;  %v5323_v42 = vpack.c.bf16 %v1134_v41, %v1133_v40  ;;  %v5294_v45 = vpack.c.bf16 %v837_v44, %v836_v43  ;;  %v1313_v40 = vld [vmem:[#allocation25 + $0xb0] sm:$0xff]  ;;  %v1314_v41 = vld [vmem:[#allocation25 + $0xb8] sm:$0xff] }
 0x37d   :  { %5263 = vmatprep.subr.bf16.mxu1 %v8133_v0  ;;  %v1297_v43 = vld [vmem:[#allocation25 + $0x30] sm:$0xff]  ;;  %v1298_v44 = vld [vmem:[#allocation25 + $0x38] sm:$0xff] }
 0x383   :  { %5241 = vmatpush3.bf16.xpose.msra.mxu0 %v5240_v46  ;;  %v821_v46 = vld [vmem:[#allocation10 + $0x8] sm:$0xff] }
 0x384   :  { %5265 = vmatpush3.bf16.xpose.msra.mxu1 %v5264_v49  ;;  %5267 = vmatprep.subr.bf16.mxu0 %v5266_v53  ;;  %v733_v49 = vld [vmem:[#allocation7 + $0x8] sm:$0xff] }
 0x385   :  { %5301 = vmatprep.subr.bf16.mxu1 %v8133_v0 }
 0x38a   :  { %4609 = vmatmul.mubr.f32.vlgmr.msra.gmra.mrb[0].mxu0 %v635_v50 }
 0x38b   :  { %5269 = vmatpush3.bf16.xpose.msra.mxu0 %v5266_v53  ;;  %4678 = vmatprep.mubr.f32.mxu0 %v820_v17 }
 0x38c   :  { %5271 = vmatprep.subr.bf16.mxu0 %v5270_v12 }
 0x393   :  { %5273 = vmatpush3.bf16.xpose.msra.mxu0 %v5270_v12 }
 0x394   :  { %5275 = vmatprep.subr.bf16.mxu0 %v5274_v14 }
 0x39b   :  { %5277 = vmatpush3.bf16.xpose.msra.mxu0 %v5274_v14 }
 0x39c   :  { %5279 = vmatprep.subr.bf16.mxu0 %v5278_v21 }
 0x3a3   :  { %5281 = vmatpush3.bf16.xpose.msra.mxu0 %v5278_v21 }
 0x3a4   :  { %5283 = vmatprep.subr.bf16.mxu0 %v5282_v27 }
 0x3ab   :  { %5285 = vmatpush3.bf16.xpose.msra.mxu0 %v5282_v27  ;;  %v5327_v27 = vpack.c.bf16 %v1292_v26, %v1291_v25  ;;  %v1303_v25 = vld [vmem:[#allocation25 + $0x60] sm:$0xff]  ;;  %v1304_v26 = vld [vmem:[#allocation25 + $0x68] sm:$0xff] }
 0x3ac   :  { %5287 = vmatprep.subr.bf16.mxu0 %v5286_v33 }
 0x3b3   :  { %5289 = vmatpush3.bf16.xpose.msra.mxu0 %v5286_v33  ;;  %v5331_v33 = vpack.c.bf16 %v1294_v32, %v1293_v31  ;;  %v1337_v31 = vld [vmem:[#allocation25 + $0x170] sm:$0xff] }
 0x3b4   :  { %5291 = vmatprep.subr.bf16.mxu0 %v5290_v39 }
 0x3bb   :  { %5293 = vmatpush3.bf16.xpose.msra.mxu0 %v5290_v39  ;;  %v5335_v39 = vpack.c.bf16 %v1296_v38, %v1295_v37  ;;  %v1355_v38 = vld [vmem:[#allocation26 + $0x80] sm:$0xff] }
 0x3bc   :  { %5295 = vmatprep.subr.bf16.mxu0 %v5294_v45 }
 0x3c3   :  { %5297 = vmatpush3.bf16.xpose.msra.mxu0 %v5294_v45  ;;  %v5339_v45 = vpack.c.bf16 %v1298_v44, %v1297_v43 }
 0x3ca   :  { %4679 = vmatmul.mubr.f32.vlgmr.msra.gmra.mrb[2].mxu0 %v821_v46  ;;  %v1315_v46 = vld [vmem:[#allocation25 + $0xc0] sm:$0xff] }
 0x3cb   :  { %4683 = vmatprep.mubr.msk.f32.mxu0 %vm913_vm2, %v732_v47 }
 0x45d   :  { %v725_v55 = vpop.f32.mrb[0].mxu0 }
 0x45e   :  { %v726_v58 = vadd.f32 %v3965_v54, %v725_v55  ;;  %v4610_v59 = vpop.f32.mrb[1].mxu0  ;;  %v3968_v55 = vld [vmem:[#allocation19] ss:$0 sm:$0xff] }
 0x460   :  { %vm729_vm1 = vcmp.ge.f32.partialorder %v726_v58, 0.0  ;;  %v730_v60 = vmul.f32 0.01, %v726_v58 }
 0x462   :  { %v7586_v63 = vsel %vm729_vm1, %v726_v58, %v730_v60 }
 0x463   :  { %4644 = vmatmul.mubr.f32.vlgmr.msra.gmra.mrb[0].mxu1 %v7586_v63  ;;  %v1024_v2 = vmul.f32 %v3969_v62, %v7586_v63 }
 0x464   :  { %5303 = vmatpush3.bf16.xpose.msra.mxu1 %v5302_v61  ;;  %4725 = vmatprep.mubr.msk.f32.mxu1 %vm7071_vm0, %v8128_v1 }
 0x465   :  { %1025 = vadd.xlane.f32.xlu1 %v1024_v2  ;;  %5304 = vmatprep.subr.bf16.mxu1 %v8133_v0 }
 0x46c   :  { %5306 = vmatpush3.bf16.xpose.msra.mxu1 %v5305_v5 }
 0x46d   :  { %5307 = vmatprep.subr.bf16.mxu1 %v8133_v0 }
 0x474   :  { %5309 = vmatpush3.bf16.xpose.msra.mxu1 %v5308_v8 }
 0x475   :  { %5310 = vmatprep.subr.bf16.mxu1 %v8133_v0 }
 0x47c   :  { %5312 = vmatpush3.bf16.xpose.msra.mxu1 %v5311_v18 }
 0x47d   :  { %5313 = vmatprep.subr.bf16.mxu1 %v8133_v0 }
 0x484   :  { %5315 = vmatpush3.bf16.xpose.msra.mxu1 %v5314_v24  ;;  %v5325_v24 = vpack.c.bf16 %v1308_v23, %v1307_v22  ;;  %v1335_v22 = vld [vmem:[#allocation25 + $0x160] sm:$0xff] }
 0x485   :  { %5316 = vmatprep.subr.bf16.mxu1 %v8133_v0 }
 0x48c   :  { %5318 = vmatpush3.bf16.xpose.msra.mxu1 %v5317_v30  ;;  %v5329_v30 = vpack.c.bf16 %v1310_v29, %v1309_v28  ;;  %v5351_v28 = vpack.c.bf16 %v1304_v26, %v1303_v25  ;;  %v1321_v29 = vld [vmem:[#allocation25 + $0xf0] sm:$0xff]  ;;  %v1379_v26 = vld [vmem:[#allocation26 + $0x140] sm:$0xff] }
 0x48d   :  { %5319 = vmatprep.subr.bf16.mxu1 %v8133_v0 }
 0x494   :  { %5321 = vmatpush3.bf16.xpose.msra.mxu1 %v5320_v36  ;;  %v5333_v36 = vpack.c.bf16 %v1312_v35, %v1311_v34  ;;  %v1305_v34 = vld [vmem:[#allocation25 + $0x70] sm:$0xff]  ;;  %v1306_v35 = vld [vmem:[#allocation25 + $0x78] sm:$0xff] }
 0x495   :  { %5322 = vmatprep.subr.bf16.mxu1 %v8133_v0  ;;  %v5355_v37 = vpack.c.bf16 %v1306_v35, %v1305_v34  ;;  %v1381_v35 = vld [vmem:[#allocation26 + $0x150] sm:$0xff] }
 0x49c   :  { %5324 = vmatpush3.bf16.xpose.msra.mxu1 %v5323_v42  ;;  %v5337_v42 = vpack.c.bf16 %v1314_v41, %v1313_v40  ;;  %v3971_v41 = vld [vmem:[#allocation23] ss:$0 sm:$0xff] }
 0x49d   :  { %5326 = vmatprep.subr.bf16.mxu1 %v5325_v24  ;;  %v1336_v24 = vld [vmem:[#allocation25 + $0x168] sm:$0xff] }
 0x4a3   :  { %4726 = vmatmul.mubr.f32.vlgmr.msra.gmra.mrb[2].mxu1 %v7586_v63 }
 0x4a4   :  { %5328 = vmatpush3.bf16.xpose.msra.mxu1 %v5327_v27  ;;  %v5376_v27 = vpack.c.bf16 %v1336_v24, %v1335_v22  ;;  %v1364_v22 = vld [vmem:[#allocation26 + $0xc8] sm:$0xff] }
 0x4a5   :  { %5330 = vmatprep.subr.bf16.mxu1 %v5329_v30  ;;  %v1322_v30 = vld [vmem:[#allocation25 + $0xf8] sm:$0xff] }
 0x4a6   :  { %v5353_v32 = vpack.c.bf16 %v1322_v30, %v1321_v29  ;;  %v1348_v29 = vld [vmem:[#allocation26 + $0x48] sm:$0xff]  ;;  %v1365_v30 = vld [vmem:[#allocation26 + $0xd0] sm:$0xff] }
 0x4ac   :  { %5332 = vmatpush3.bf16.xpose.msra.mxu1 %v5331_v33  ;;  %v1338_v33 = vld [vmem:[#allocation25 + $0x178] sm:$0xff] }
 0x4ad   :  { %5334 = vmatprep.subr.bf16.mxu1 %v5333_v36  ;;  %v5379_v36 = vpack.c.bf16 %v1338_v33, %v1337_v31  ;;  %v1366_v31 = vld [vmem:[#allocation26 + $0xd8] sm:$0xff] }
 0x4ae   :  { %v5401_v34 = vpack.c.bf16 %v1366_v31, %v1365_v30 }
 0x4b4   :  { %5336 = vmatpush3.bf16.xpose.msra.mxu1 %v5335_v39  ;;  %v1356_v39 = vld [vmem:[#allocation26 + $0x88] sm:$0xff] }
 0x4b5   :  { %5338 = vmatprep.subr.bf16.mxu1 %v5337_v42  ;;  %v5381_v40 = vpack.c.bf16 %v1356_v39, %v1355_v38  ;;  %v1350_v38 = vld [vmem:[#allocation26 + $0x58] sm:$0xff]  ;;  %v1367_v39 = vld [vmem:[#allocation26 + $0xe0] sm:$0xff] }
 0x4bc   :  { %5340 = vmatpush3.bf16.xpose.msra.mxu1 %v5339_v45 }
 0x4f2   :  { %v1026_v7 = vpop.xlane.xlu1 %1025 }
 0x536   :  { %v816_v48 = vpop.f32.mrb[0].mxu1 }
 0x537   :  { %v4645_v50 = vpop.f32.mrb[1].mxu1  ;;  %4681 = vmatprep.subr.mxu0 %v816_v48 }
 0x538   :  { %4682 = vmatpush3.msra.mxu0 %v816_v48  ;;  %v1300_v50 = vld [vmem:[#allocation25 + $0x48] sm:$0xff] }
 0x539   :  { %4684 = vmatmul.mubr.msk.f32.vlgmr.msra.gmra.mrb[2].mxu0 %vm913_vm2, %v733_v49  ;;  %5298 = vmatprep.subr.bf16.mxu0 %v8133_v0 }
 0x53a   :  { %4690 = vmatprep.mubr.msk.f32.mxu0 %vm7071_vm0, %v8128_v1 }
 0x576   :  { %v1201_v51 = vpop.f32.mrb[2].mxu1 }
 0x577   :  { %v4727_v52 = vpop.f32.mrb[3].mxu1 }
 0x578   :  { %v1317_v52 = vld [vmem:[#allocation25 + $0xd0] sm:$0xff] }
 0x60c   :  { %v4685_v53 = vpop.f32.mrb[2].mxu0 }
 0x60d   :  { %v986_v54 = vpop.f32.mrb[3].mxu0  ;;  %v998_v56 = vmul.f32 0.01, %v4685_v53  ;;  %vm996_vm4 = vcmp.ge.f32.partialorder %v4685_v53, 0.0 }
 0x60e   :  { %v997_v57 = vmul.f32 0.01, %v986_v54  ;;  %vm995_vm3 = vcmp.ge.f32.partialorder %v986_v54, 0.0 }
 0x60f   :  { %v1000_v60 = vsel %vm996_vm4, %v4685_v53, %v998_v56  ;;  %v1318_v53 = vld [vmem:[#allocation25 + $0xd8] sm:$0xff] }
 0x610   :  { %v999_v58 = vsel %vm995_vm3, %v986_v54, %v997_v57  ;;  %v1009_v61 = vmul.f32 %v3968_v55, %v1000_v60  ;;  %v5345_v54 = vpack.c.bf16 %v1318_v53, %v1317_v52  ;;  %v1302_v56 = vld [vmem:[#allocation25 + $0x58] sm:$0xff]  ;;  %v1323_v60 = vld [vmem:[#allocation25 + $0x100] sm:$0xff]  ;;  %v1357_v52 = vld [vmem:[#allocation26 + $0x90] sm:$0xff] }
 0x611   :  { %v1008_v59 = vmul.f32 %v3968_v55, %v999_v58  ;;  %v1301_v55 = vld [vmem:[#allocation25 + $0x50] sm:$0xff]  ;;  %v1358_v53 = vld [vmem:[#allocation26 + $0x98] sm:$0xff] }
 0x612   :  { %v5347_v57 = vpack.c.bf16 %v1302_v56, %v1301_v55 }
 0x613   :  { %1010 = vadd.xlane.f32.xlu0 %v1008_v59 }
 0x617   :  { %1012 = vadd.xlane.f32.xlu0 %v1009_v61  ;;  %v1324_v61 = vld [vmem:[#allocation25 + $0x108] sm:$0xff] }
 0x6a0   :  { %v1011_v62 = vpop.xlane.xlu0 %1010 }
 0x6a1   :  { %v1015_v3 = vmul.f32 %v1011_v62, %v732_v47  ;;  %v1316_v47 = vld [vmem:[#allocation25 + $0xc8] sm:$0xff] }
 0x6a2   :  { %v5341_v48 = vpack.c.bf16 %v1316_v47, %v1315_v46  ;;  %v1371_v47 = vld [vmem:[#allocation26 + $0x100] sm:$0xff] }
 0x6a4   :  { %v1013_v2 = vpop.xlane.xlu0 %1012  ;;  %5342 = vmatprep.subr.bf16.mxu1 %v5341_v48  ;;  %v1372_v48 = vld [vmem:[#allocation26 + $0x108] sm:$0xff] }
 0x6a5   :  { %v1016_v4 = vmul.f32 %v1013_v2, %v733_v49  ;;  %v1299_v49 = vld [vmem:[#allocation25 + $0x40] sm:$0xff]  ;;  %v5358_v2 = vpack.c.bf16 %v1324_v61, %v1323_v60  ;;  %v5414_v55 = vpack.c.bf16 %v1372_v48, %v1371_v47  ;;  %v1374_v60 = vld [vmem:[#allocation26 + $0x118] sm:$0xff]  ;;  %v1341_v61 = vld [vmem:[#allocation26 + $0x10] sm:$0xff] }
 0x6a6   :  { %v1352_v47 = vld [vmem:[#allocation26 + $0x68] sm:$0xff]  ;;  %v1369_v48 = vld [vmem:[#allocation26 + $0xf0] sm:$0xff] }
 0x6a7   :  { %v5299_v5 = vpack.c.bf16 %v1016_v4, %v1015_v3  ;;  %v1325_v4 = vld [vmem:[#allocation25 + $0x110] sm:$0xff] }
 0x6a9   :  { %5300 = vmatpush3.bf16.msra.mxu0 %v5299_v5  ;;  %v1326_v5 = vld [vmem:[#allocation25 + $0x118] sm:$0xff] }
 0x6aa   :  { %4728 = vmatprep.subr.mxu0 %v8128_v1 }
 0x6ac   :  { %4691 = vmatmul.mubr.msk.f32.vlgmr.msra.gmra.mrb[4].mxu0 %vm1027_vm5, %v1014_v6  ;;  %v5361_v6 = vpack.c.bf16 %v1326_v5, %v1325_v4 }
 0x6ad   :  { %4729 = vmatpush3.msra.mxu0 %v1201_v51  ;;  %4730 = vmatprep.mubr.msk.f32.mxu0 %vm7071_vm0, %v8128_v1  ;;  %v5343_v51 = vpack.c.bf16 %v1300_v50, %v1299_v49  ;;  %v1339_v49 = vld [vmem:[#allocation26] sm:$0xff]  ;;  %v1340_v50 = vld [vmem:[#allocation26 + $0x8] sm:$0xff] }
 0x6ae   :  { %5357 = vmatprep.subr.bf16.mxu0 %v8133_v0  ;;  %v5383_v56 = vpack.c.bf16 %v1340_v50, %v1339_v49  ;;  %v1370_v49 = vld [vmem:[#allocation26 + $0xf8] sm:$0xff] }
 0x6af   :  { %5344 = vmatpush3.bf16.xpose.msra.mxu1 %v5343_v51 }
 0x6b0   :  { %5346 = vmatprep.subr.bf16.mxu1 %v5345_v54 }
 0x6b7   :  { %5348 = vmatpush3.bf16.xpose.msra.mxu1 %v5347_v57 }
 0x77f   :  { %v1097_v8 = vpop.f32.mrb[4].mxu0 }
 0x780   :  { %v1098_v10 = vadd.f32 %v1097_v8, %v1026_v7  ;;  %v4692_v11 = vpop.f32.mrb[5].mxu0  ;;  %v1327_v7 = vld [vmem:[#allocation25 + $0x120] sm:$0xff]  ;;  %v1328_v8 = vld [vmem:[#allocation25 + $0x128] sm:$0xff] }
 0x781   :  { %v1329_v11 = vld [vmem:[#allocation25 + $0x130] sm:$0xff] }
 0x782   :  { %v1102_v12 = vmul.f32 0.01, %v1098_v10  ;;  %vm1101_vm6 = vcmp.ge.f32.partialorder %v1098_v10, 0.0 }
 0x784   :  { %v1103_v13 = vsel %vm1101_vm6, %v1098_v10, %v1102_v12  ;;  %v5364_v10 = vpack.c.bf16 %v1328_v8, %v1327_v7  ;;  %v1330_v12 = vld [vmem:[#allocation25 + $0x138] sm:$0xff]  ;;  %v1375_v7 = vld [vmem:[#allocation26 + $0x120] sm:$0xff]  ;;  %v1376_v8 = vld [vmem:[#allocation26 + $0x128] sm:$0xff] }
 0x785   :  { %v1105_v14 = vsel %vm1104_vm7, %v1103_v13, -1e+30  ;;  %v5367_v13 = vpack.c.bf16 %v1330_v12, %v1329_v11  ;;  %v1344_v11 = vld [vmem:[#allocation26 + $0x28] sm:$0xff]  ;;  %v1361_v12 = vld [vmem:[#allocation26 + $0xb0] sm:$0xff] }
 0x786   :  { %v1106_v15 = vsel %vm913_vm2, %v1105_v14, -inf }
 0x787   :  { %1107 = vmax.xlane.f32.xlu1 %v1106_v15  ;;  %v1332_v15 = vld [vmem:[#allocation25 + $0x148] sm:$0xff] }
 0x814   :  { %v1108_v16 = vpop.xlane.xlu1 %1107 }
 0x815   :  { %v1109_v17 = vsub.f32 %v1105_v14, %v1108_v16  ;;  %v1331_v14 = vld [vmem:[#allocation25 + $0x140] sm:$0xff] }
 0x816   :  { %v5370_v16 = vpack.c.bf16 %v1332_v15, %v1331_v14  ;;  %v5420_v14 = vpack.c.bf16 %v1376_v8, %v1375_v7  ;;  %v1731_v7 = vld [vmem:[#allocation31 + $0x30] sm:$0xff]  ;;  %v1732_v8 = vld [vmem:[#allocation31 + $0x38] sm:$0xff] }
 0x817   :  { %v1110_v18 = vmul.f32 1.442695, %v1109_v17  ;;  %v1333_v17 = vld [vmem:[#allocation25 + $0x150] sm:$0xff] }
 0x819   :  { %6003 = vpow2.f32 %v1110_v18  ;;  %v1334_v18 = vld [vmem:[#allocation25 + $0x158] sm:$0xff] }
 0x823   :  { %v6004_v19 = vpop.eup %6003 }
 0x824   :  { %v1112_v20 = vmul.f32 %v6004_v19, %v7609_v9  ;;  %v5373_v19 = vpack.c.bf16 %v1334_v18, %v1333_v17  ;;  %v1377_v17 = vld [vmem:[#allocation26 + $0x130] sm:$0xff]  ;;  %v1378_v18 = vld [vmem:[#allocation26 + $0x138] sm:$0xff] }
 0x826   :  { %v1113_v21 = vsel %vm913_vm2, %v1112_v20, 0.0 }
 0x827   :  { %1114 = vadd.xlane.f32.xlu0 %v1113_v21  ;;  %v1320_v21 = vld [vmem:[#allocation25 + $0xe8] sm:$0xff] }
 0x8b4   :  { %v1115_v58 = vpop.xlane.xlu0 %1114 }
 0x8b5   :  { %v1116_v59 = vmax.f32 %v1115_v58, 1e-16  ;;  %v5385_v58 = vpack.c.bf16 %v1358_v53, %v1357_v52  ;;  %v5409_v52 = vpack.c.bf16 %v1370_v49, %v1369_v48  ;;  %v1385_v53 = vld [vmem:[#allocation26 + $0x170] sm:$0xff] }
 0x8b7   :  { %6005 = vrcp.f32 %v1116_v59  ;;  %v1373_v59 = vld [vmem:[#allocation26 + $0x110] sm:$0xff] }
 0x8b8   :  { %v5417_v4 = vpack.c.bf16 %v1374_v60, %v1373_v59  ;;  %v1725_v59 = vld [vmem:[#allocation31] sm:$0xff]  ;;  %v1726_v60 = vld [vmem:[#allocation31 + $0x8] sm:$0xff] }
 0x8c1   :  { %v6006_v62 = vpop.eup %6005 }
 0x8c2   :  { %v1118_v3 = vmul.f32 %v6006_v62, %v1112_v20  ;;  %v1319_v20 = vld [vmem:[#allocation25 + $0xe0] sm:$0xff]  ;;  %v1342_v62 = vld [vmem:[#allocation26 + $0x18] sm:$0xff] }
 0x8c3   :  { %v5349_v23 = vpack.c.bf16 %v1320_v21, %v1319_v20  ;;  %v5387_v5 = vpack.c.bf16 %v1342_v62, %v1341_v61  ;;  %v1346_v20 = vld [vmem:[#allocation26 + $0x38] sm:$0xff]  ;;  %v1363_v21 = vld [vmem:[#allocation26 + $0xc0] sm:$0xff]  ;;  %v5438_v61 = vpack.c.bf16 %v1726_v60, %v1725_v59 }
 0x8c4   :  { %4731 = vmatmul.mubr.msk.f32.vlgmr.msra.gmra.mrb[6].mxu0 %vm913_vm2, %v1118_v3  ;;  %v1360_v3 = vld [vmem:[#allocation26 + $0xa8] sm:$0xff]  ;;  %v5397_v25 = vpack.c.bf16 %v1364_v22, %v1363_v21  ;;  %v1727_v62 = vld [vmem:[#allocation31 + $0x10] sm:$0xff]  ;;  %v1740_v21 = vld [vmem:[#allocation31 + $0x78] sm:$0xff] }
 0x8c5   :  { %5359 = vmatpush3.bf16.xpose.msra.mxu0 %v5358_v2  ;;  %4765 = vmatprep.mubr.msk.f32.mxu0 %vm7071_vm0, %v8128_v1  ;;  %v1359_v2 = vld [vmem:[#allocation26 + $0xa0] sm:$0xff] }
 0x8c6   :  { %5360 = vmatprep.subr.bf16.mxu0 %v8133_v0  ;;  %5350 = vmatprep.subr.bf16.mxu1 %v5349_v23  ;;  %v5423_v23 = vpack.c.bf16 %v1378_v18, %v1377_v17  ;;  %v1737_v17 = vld [vmem:[#allocation31 + $0x60] sm:$0xff]  ;;  %v1738_v18 = vld [vmem:[#allocation31 + $0x68] sm:$0xff] }
 0x8c7   :  { %5352 = vmatpush3.bf16.xpose.msra.mxu1 %v5351_v28  ;;  %v1347_v28 = vld [vmem:[#allocation26 + $0x40] sm:$0xff] }
 0x8c8   :  { %5354 = vmatprep.subr.bf16.mxu1 %v5353_v32  ;;  %v5399_v33 = vpack.c.bf16 %v1348_v29, %v1347_v28  ;;  %v1388_v28 = vld [vmem:[#allocation29] sm:$0x7]  ;;  %v1387_v29 = vld [vmem:[#allocation28] sm:$0x7] }
 0x8cd   :  { %5362 = vmatpush3.bf16.xpose.msra.mxu0 %v5361_v6  ;;  %v5389_v6 = vpack.c.bf16 %v1360_v3, %v1359_v2  ;;  %v1728_v2 = vld [vmem:[#allocation31 + $0x18] sm:$0xff] }
 0x8ce   :  { %5363 = vmatprep.subr.bf16.mxu0 %v8133_v0  ;;  %v5441_v3 = vpack.c.bf16 %v1728_v2, %v1727_v62 }
 0x8cf   :  { %5356 = vmatpush3.bf16.xpose.msra.mxu1 %v5355_v37  ;;  %v1349_v37 = vld [vmem:[#allocation26 + $0x50] sm:$0xff] }
 0x8d0   :  { %5382 = vmatprep.subr.bf16.mxu1 %v5381_v40  ;;  %v1368_v40 = vld [vmem:[#allocation26 + $0xe8] sm:$0xff] }
 0x8d5   :  { %5365 = vmatpush3.bf16.xpose.msra.mxu0 %v5364_v10  ;;  %v1343_v10 = vld [vmem:[#allocation26 + $0x20] sm:$0xff] }
 0x8d6   :  { %5366 = vmatprep.subr.bf16.mxu0 %v8133_v0  ;;  %v5391_v15 = vpack.c.bf16 %v1344_v11, %v1343_v10  ;;  %v5447_v10 = vpack.c.bf16 %v1732_v8, %v1731_v7  ;;  %v1733_v11 = vld [vmem:[#allocation31 + $0x40] sm:$0xff] }
 0x8d7   :  { %v1811_v7 = vld [vmem:[#allocation32] sm:$0x1] }
 0x8dd   :  { %5368 = vmatpush3.bf16.xpose.msra.mxu0 %v5367_v13  ;;  %v1362_v13 = vld [vmem:[#allocation26 + $0xb8] sm:$0xff] }
 0x8de   :  { %5369 = vmatprep.subr.bf16.mxu0 %v8133_v0 }
 0x8e5   :  { %5371 = vmatpush3.bf16.xpose.msra.mxu0 %v5370_v16  ;;  %v5393_v16 = vpack.c.bf16 %v1362_v13, %v1361_v12  ;;  %v1734_v12 = vld [vmem:[#allocation31 + $0x48] sm:$0xff] }
 0x8e6   :  { %5372 = vmatprep.subr.bf16.mxu0 %v8133_v0  ;;  %v5450_v13 = vpack.c.bf16 %v1734_v12, %v1733_v11 }
 0x8ed   :  { %5374 = vmatpush3.bf16.xpose.msra.mxu0 %v5373_v19  ;;  %v1345_v19 = vld [vmem:[#allocation26 + $0x30] sm:$0xff] }
 0x8ee   :  { %5375 = vmatprep.subr.bf16.mxu0 %v8133_v0  ;;  %v5395_v24 = vpack.c.bf16 %v1346_v20, %v1345_v19  ;;  %v5456_v19 = vpack.c.bf16 %v1738_v18, %v1737_v17  ;;  %v1739_v20 = vld [vmem:[#allocation31 + $0x70] sm:$0xff] }
 0x8ef   :  { %v5459_v22 = vpack.c.bf16 %v1740_v21, %v1739_v20 }
 0x8f5   :  { %5377 = vmatpush3.bf16.xpose.msra.mxu0 %v5376_v27  ;;  %v1380_v27 = vld [vmem:[#allocation26 + $0x148] sm:$0xff] }
 0x8f6   :  { %5378 = vmatprep.subr.bf16.mxu0 %v8133_v0  ;;  %v5426_v32 = vpack.c.bf16 %v1380_v27, %v1379_v26 }
 0x8fd   :  { %5380 = vmatpush3.bf16.xpose.msra.mxu0 %v5379_v36  ;;  %v1382_v36 = vld [vmem:[#allocation26 + $0x158] sm:$0xff] }
 0x8fe   :  { %5413 = vmatprep.subr.bf16.mxu0 %v8133_v0 }
 0x997   :  { %v1281_v42 = vpop.f32.mrb[6].mxu0 }
 0x998   :  { %v1282_v43 = vadd.f32 %v3971_v41, %v1281_v42  ;;  %v4732_v44 = vpop.f32.mrb[7].mxu0  ;;  %v5429_v41 = vpack.c.bf16 %v1382_v36, %v1381_v35  ;;  %v5403_v42 = vpack.c.bf16 %v1350_v38, %v1349_v37 }
 0x999   :  { %v1383_v44 = vld [vmem:[#allocation26 + $0x160] sm:$0xff] }
 0x99a   :  { %v1286_v45 = vmin.f32 %v1282_v43, 0.0  ;;  %vm1285_vm8 = vcmp.gt.f32.partialorder %v1282_v43, 0.0 }
 0x99c   :  { %v1287_v46 = vmul.f32 1.442695, %v1286_v45  ;;  %v1384_v45 = vld [vmem:[#allocation26 + $0x168] sm:$0xff] }
 0x99d   :  { %v5432_v50 = vpack.c.bf16 %v1384_v45, %v1383_v44 }
 0x99e   :  { %6007 = vpow2.f32 %v1287_v46  ;;  %v1351_v46 = vld [vmem:[#allocation26 + $0x60] sm:$0xff] }
 0x9a8   :  { %v6008_v51 = vpop.eup %6007 }
 0x9a9   :  { %v3973_v54 = vadd.f32 -1.0, %v6008_v51  ;;  %v5407_v51 = vpack.c.bf16 %v1352_v47, %v1351_v46 }
 0x9ab   :  { %v1290_v57 = vsel %vm1285_vm8, %v1282_v43, %v3973_v54  ;;  %v5405_v43 = vpack.c.bf16 %v1368_v40, %v1367_v39  ;;  %v1386_v54 = vld [vmem:[#allocation26 + $0x178] sm:$0xff] }
 0x9ac   :  { %4103 = vmatprep.mubr.f32.mxu1 %v1290_v57  ;;  %4766 = vmatmul.mubr.f32.vlgmr.msra.gmra.mrb[8].mxu0 %v1290_v57 }
 0x9ad   :  { %5415 = vmatpush3.bf16.xpose.msra.mxu0 %v5414_v55  ;;  %4104 = vmatmul.mubr.f32.vlgmr.msra.gmra.mrb[4].mxu1 %v1290_v57  ;;  %v1353_v55 = vld [vmem:[#allocation26 + $0x70] sm:$0xff]  ;;  %v5435_v57 = vpack.c.bf16 %v1386_v54, %v1385_v53 }
 0x9ae   :  { %5384 = vmatpush3.bf16.xpose.msra.mxu1 %v5383_v56  ;;  %4154 = vmatprep.mubr.f32.mxu1 %v7586_v63  ;;  %v1354_v56 = vld [vmem:[#allocation26 + $0x78] sm:$0xff] }
 0x9af   :  { %5416 = vmatprep.subr.bf16.mxu0 %v8133_v0  ;;  %5386 = vmatprep.subr.bf16.mxu1 %v5385_v58  ;;  %v5411_v58 = vpack.c.bf16 %v1354_v56, %v1353_v55 }
 0x9b0   :  { %4800 = vmatprep.mubr.msk.f32.mxu0 %vm7071_vm0, %v8128_v1 }
 0x9b5   :  { %5418 = vmatpush3.bf16.xpose.msra.mxu0 %v5417_v4  ;;  %v1729_v4 = vld [vmem:[#allocation31 + $0x20] sm:$0xff] }
 0x9b6   :  { %5388 = vmatpush3.bf16.xpose.msra.mxu1 %v5387_v5  ;;  %5419 = vmatprep.subr.bf16.mxu0 %v8133_v0  ;;  %v1730_v5 = vld [vmem:[#allocation31 + $0x28] sm:$0xff] }
 0x9b7   :  { %5390 = vmatprep.subr.bf16.mxu1 %v5389_v6  ;;  %v5444_v6 = vpack.c.bf16 %v1730_v5, %v1729_v4 }
 0x9bd   :  { %5421 = vmatpush3.bf16.xpose.msra.mxu0 %v5420_v14  ;;  %v1735_v14 = vld [vmem:[#allocation31 + $0x50] sm:$0xff] }
 0x9be   :  { %5392 = vmatpush3.bf16.xpose.msra.mxu1 %v5391_v15  ;;  %5422 = vmatprep.subr.bf16.mxu0 %v8133_v0  ;;  %v1736_v15 = vld [vmem:[#allocation31 + $0x58] sm:$0xff] }
 0x9bf   :  { %5394 = vmatprep.subr.bf16.mxu1 %v5393_v16  ;;  %v5453_v16 = vpack.c.bf16 %v1736_v15, %v1735_v14 }
 0x9c5   :  { %5424 = vmatpush3.bf16.xpose.msra.mxu0 %v5423_v23 }
 0x9c6   :  { %5396 = vmatpush3.bf16.xpose.msra.mxu1 %v5395_v24  ;;  %5425 = vmatprep.subr.bf16.mxu0 %v8133_v0 }
 0x9c7   :  { %5398 = vmatprep.subr.bf16.mxu1 %v5397_v25  ;;  %v1390_v25 = vlaneseq }
 0x9c9   :  { %v1391_v26 = vshrl.u32 %v1390_v25, 7  ;;  %v2032_v25 = vld [vmem:[#allocation37 + $0x100] sm:$0xff] }
 0x9cb   :  { %v7654_v27 = vsub.s32 0, %v1391_v26  ;;  %v7656_v30 = vsub.s32 1, %v1391_v26  ;;  %v7662_v47 = vsub.s32 2, %v1391_v26 }
 0x9cd   :  { %5427 = vmatpush3.bf16.xpose.msra.mxu0 %v5426_v32  ;;  %v1393_v31 = vrot.slane %v1387_v29, %v7654_v27  ;;  %v1550_v32 = vrot.slane %v1388_v28, %v7654_v27  ;;  %v1558_v49 = vrot.slane %v1388_v28, %v7662_v47 }
 0x9ce   :  { %5400 = vmatpush3.bf16.xpose.msra.mxu1 %v5399_v33  ;;  %5428 = vmatprep.subr.bf16.mxu0 %v8133_v0  ;;  %v1397_v33 = vrot.slane %v1387_v29, %v7656_v30 }
 0x9cf   :  { %5402 = vmatprep.subr.bf16.mxu1 %v5401_v34  ;;  %v1554_v34 = vrot.slane %v1388_v28, %v7656_v30  ;;  %v5893_v35 = vadd.f32 %v1550_v32, %v1393_v31  ;;  %v2033_v28 = vld [vmem:[#allocation37 + $0x108] sm:$0xff]  ;;  %v2034_v31 = vld [vmem:[#allocation37 + $0x110] sm:$0xff]  ;;  %v2035_v32 = vld [vmem:[#allocation37 + $0x118] sm:$0xff] }
 0x9d1   :  { %v5895_v39 = vadd.f32 %v1554_v34, %v1397_v33  ;;  %v5497_v33 = vpack.c.bf16 %v2035_v32, %v2034_v31  ;;  %v2037_v34 = vld [vmem:[#allocation37 + $0x128] sm:$0xff] }
 0x9d2   :  { %v2013_v31 = vld [vmem:[#allocation37 + $0x68] sm:$0xff] }
 0x9d5   :  { %5430 = vmatpush3.bf16.xpose.msra.mxu0 %v5429_v41 }
 0x9d6   :  { %5404 = vmatpush3.bf16.xpose.msra.mxu1 %v5403_v42  ;;  %5431 = vmatprep.subr.bf16.mxu0 %v8133_v0 }
 0x9d7   :  { %5406 = vmatprep.subr.bf16.mxu1 %v5405_v43 }
 0x9dd   :  { %5433 = vmatpush3.bf16.xpose.msra.mxu0 %v5432_v50  ;;  %v1401_v50 = vrot.slane %v1387_v29, %v7662_v47  ;;  %v5494_v29 = vpack.c.bf16 %v2033_v28, %v2032_v25  ;;  %v2044_v25 = vld [vmem:[#allocation37 + $0x160] sm:$0xff]  ;;  %v2045_v28 = vld [vmem:[#allocation37 + $0x168] sm:$0xff] }
 0x9de   :  { %5408 = vmatpush3.bf16.xpose.msra.mxu1 %v5407_v51  ;;  %5434 = vmatprep.subr.bf16.mxu0 %v8133_v0  ;;  %v5512_v32 = vpack.c.bf16 %v2045_v28, %v2044_v25  ;;  %v2055_v25 = vld [vmem:[#allocation38 + $0x38] sm:$0xff]  ;;  %v2073_v28 = vld [vmem:[#allocation38 + $0xc8] sm:$0xff] }
 0x9df   :  { %5410 = vmatprep.subr.bf16.mxu1 %v5409_v52 }
 0x9e5   :  { %5436 = vmatpush3.bf16.xpose.msra.mxu0 %v5435_v57 }
 0x9e6   :  { %5412 = vmatpush3.bf16.xpose.msra.mxu1 %v5411_v58  ;;  %4838 = vmatprep.subr.mxu0 %v8128_v1 }
 0x9e7   :  { %5437 = vmatprep.subr.bf16.mxu1 %v8133_v0 }
 0x9ec   :  { %4801 = vmatmul.mubr.f32.vlgmr.msra.gmra.mrb[10].mxu0 %v7586_v63 }
 0x9ed   :  { %4155 = vmatmul.mubr.f32.vlgmr.msra.gmra.mrb[4].mxu1 %v7586_v63  ;;  %4840 = vmatprep.mubr.msk.f32.mxu0 %vm7071_vm0, %v8128_v1 }
 0x9ee   :  { %4835 = vmatprep.mubr.msk.f32.mxu1 %vm7071_vm0, %v8128_v1  ;;  %5439 = vmatpush3.bf16.xpose.msra.mxu1 %v5438_v61 }
 0x9ef   :  { %5440 = vmatprep.subr.bf16.mxu1 %v8133_v0 }
 0x9f6   :  { %5442 = vmatpush3.bf16.xpose.msra.mxu1 %v5441_v3  ;;  %v3976_v3 = vld [vmem:[#allocation34] ss:$0 sm:$0xff] }
 0x9f7   :  { %5443 = vmatprep.subr.bf16.mxu1 %v8133_v0 }
 0x9fe   :  { %5445 = vmatpush3.bf16.xpose.msra.mxu1 %v5444_v6 }
 0x9ff   :  { %5446 = vmatprep.subr.bf16.mxu1 %v8133_v0 }
 0xa06   :  { %5448 = vmatpush3.bf16.xpose.msra.mxu1 %v5447_v10 }
 0xa07   :  { %5449 = vmatprep.subr.bf16.mxu1 %v8133_v0 }
 0xa0e   :  { %5451 = vmatpush3.bf16.xpose.msra.mxu1 %v5450_v13 }
 0xa0f   :  { %5452 = vmatprep.subr.bf16.mxu1 %v8133_v0 }
 0xa16   :  { %5454 = vmatpush3.bf16.xpose.msra.mxu1 %v5453_v16 }
 0xa17   :  { %5455 = vmatprep.subr.bf16.mxu1 %v8133_v0 }
 0xa1e   :  { %5457 = vmatpush3.bf16.xpose.msra.mxu1 %v5456_v19 }
 0xa1f   :  { %5458 = vmatprep.subr.bf16.mxu1 %v8133_v0 }
 0xa26   :  { %5460 = vmatpush3.bf16.xpose.msra.mxu1 %v5459_v22 }
 0xa27   :  { %5493 = vmatprep.subr.bf16.mxu1 %v8133_v0 }
 0xa7f   :  { %v1542_v23 = vpop.f32.mrb[8].mxu0 }
 0xa80   :  { %v4767_v24 = vpop.f32.mrb[9].mxu0  ;;  %v1543_v54 = vadd.f32 %v1542_v23, %v1401_v50  ;;  %v2016_v23 = vld [vmem:[#allocation37 + $0x80] sm:$0xff]  ;;  %v2018_v50 = vld [vmem:[#allocation37 + $0x90] sm:$0xff] }
 0xa81   :  { %v2017_v24 = vld [vmem:[#allocation37 + $0x88] sm:$0xff] }
 0xa82   :  { %v5461_v26 = vpack.c.bf16 %v2017_v24, %v2016_v23  ;;  %v2028_v23 = vld [vmem:[#allocation37 + $0xe0] sm:$0xff]  ;;  %v2029_v24 = vld [vmem:[#allocation37 + $0xe8] sm:$0xff] }
 0xabf   :  { %v1699_v36 = vpop.f32.mrb[10].mxu0 }
 0xac0   :  { %v1628_v37 = vpop.f32.mrb[4].mxu1  ;;  %v4802_v38 = vpop.f32.mrb[11].mxu0  ;;  %v1700_v52 = vadd.f32 %v1699_v36, %v1558_v49  ;;  %v2038_v36 = vld [vmem:[#allocation37 + $0x130] sm:$0xff]  ;;  %v2001_v49 = vld [vmem:[#allocation37 + $0x8] sm:$0xff] }
 0xac1   :  { %v5894_v40 = vadd.f32 %v5893_v35, %v1628_v37  ;;  %v1630_v41 = vpop.f32.mrb[5].mxu1  ;;  %v2039_v37 = vld [vmem:[#allocation37 + $0x138] sm:$0xff] }
 0xac2   :  { %v5896_v43 = vadd.f32 %v5895_v39, %v1630_v41  ;;  %v5503_v38 = vpack.c.bf16 %v2039_v37, %v2038_v36  ;;  %v2040_v39 = vld [vmem:[#allocation37 + $0x140] sm:$0xff]  ;;  %v2047_v37 = vld [vmem:[#allocation37 + $0x178] sm:$0xff] }
 0xac3   :  { %v3974_v42 = vmul.f32 -1.442695, %v5894_v40  ;;  %v2041_v40 = vld [vmem:[#allocation37 + $0x148] sm:$0xff] }
 0xac4   :  { %v3975_v44 = vmul.f32 -1.442695, %v5896_v43  ;;  %v5506_v41 = vpack.c.bf16 %v2041_v40, %v2040_v39  ;;  %v2043_v43 = vld [vmem:[#allocation37 + $0x158] sm:$0xff] }
 0xac5   :  { %6009 = vpow2.f32 %v3974_v42  ;;  %v2042_v42 = vld [vmem:[#allocation37 + $0x150] sm:$0xff]  ;;  %v2015_v39 = vld [vmem:[#allocation37 + $0x78] sm:$0xff] }
 0xac6   :  { %6011 = vpow2.f32 %v3975_v44  ;;  %v5509_v44 = vpack.c.bf16 %v2043_v43, %v2042_v42  ;;  %v2064_v42 = vld [vmem:[#allocation38 + $0x80] sm:$0xff]  ;;  %v2065_v43 = vld [vmem:[#allocation38 + $0x88] sm:$0xff] }
 0xacf   :  { %v6010_v45 = vpop.eup %6009 }
 0xad0   :  { %v1707_v46 = vadd.f32 1.0, %v6010_v45  ;;  %v6012_v48 = vpop.eup %6011 }
 0xad1   :  { %v1714_v51 = vadd.f32 1.0, %v6012_v48  ;;  %v2000_v48 = vld [vmem:[#allocation37] sm:$0xff] }
 0xad2   :  { %6013 = vrcp.f32 %v1707_v46 }
 0xad3   :  { %6015 = vrcp.f32 %v1714_v51  ;;  %v2019_v51 = vld [vmem:[#allocation37 + $0x98] sm:$0xff] }
 0xadc   :  { %v6014_v53 = vpop.eup %6013 }
 0xadd   :  { %v1717_v55 = vmul.f32 %v6014_v53, %v1700_v52  ;;  %v6016_v57 = vpop.eup %6015  ;;  %v5463_v53 = vpack.c.bf16 %v2001_v49, %v2000_v48 }
 0xade   :  { %v1720_v58 = vsub.f32 1.0, %v6016_v57  ;;  %v1722_v61 = vmul.f32 %v6016_v57, %v7586_v63  ;;  %v2003_v57 = vld [vmem:[#allocation37 + $0x18] sm:$0xff] }
 0xadf   :  { %v1718_v56 = vadd.f32 %v1717_v55, %v1543_v54  ;;  %v5465_v55 = vpack.c.bf16 %v2019_v51, %v2018_v50 }
 0xae1   :  { %6017 = vtanh.f32 %v1718_v56  ;;  %v2002_v56 = vld [vmem:[#allocation37 + $0x10] sm:$0xff] }
 0xaeb   :  { %v6018_v59 = vpop.eup %6017 }
 0xaec   :  { %v1721_v60 = vmul.f32 %v6018_v59, %v1720_v58  ;;  %v2020_v58 = vld [vmem:[#allocation37 + $0xa0] sm:$0xff]  ;;  %v2021_v59 = vld [vmem:[#allocation37 + $0xa8] sm:$0xff] }
 0xaee   :  { %v1723_v62 = vadd.f32 %v1722_v61, %v1721_v60  ;;  %v5467_v60 = vpack.c.bf16 %v2003_v57, %v2002_v56  ;;  %v5469_v61 = vpack.c.bf16 %v2021_v59, %v2020_v58  ;;  %v2066_v57 = vld [vmem:[#allocation38 + $0x90] sm:$0xff]  ;;  %v2067_v58 = vld [vmem:[#allocation38 + $0x98] sm:$0xff] }
 0xaf0   :  { %v7667_v2 = vmax.f32 %v1723_v62, 0.0  ;;  %v2004_v62 = vld [vmem:[#allocation37 + $0x20] sm:$0xff] }
 0xaf2   :  { %4836 = vmatmul.mubr.f32.vlgmr.msra.gmra.mrb[6].mxu1 %v7667_v2 }
 0xaf3   :  { %4880 = vmatprep.mubr.msk.f32.mxu1 %vm7071_vm0, %v8128_v1  ;;  %5495 = vmatpush3.bf16.xpose.msra.mxu1 %v5494_v29  ;;  %v2012_v29 = vld [vmem:[#allocation37 + $0x60] sm:$0xff] }
 0xaf4   :  { %5496 = vmatprep.subr.bf16.mxu1 %v8133_v0 }
 0xafb   :  { %5498 = vmatpush3.bf16.xpose.msra.mxu1 %v5497_v33  ;;  %v5487_v33 = vpack.c.bf16 %v2013_v31, %v2012_v29 }
 0xafc   :  { %5499 = vmatprep.subr.bf16.mxu1 %v8133_v0 }
 0xbc5   :  { %v1807_v4 = vpop.f32.mrb[6].mxu1 }
 0xbc6   :  { %v4837_v5 = vpop.f32.mrb[7].mxu1  ;;  %4839 = vmatpush3.xpose.msra.mxu0 %v1807_v4  ;;  %v1890_v6 = vmul.f32 %v3976_v3, %v1807_v4  ;;  %v2005_v3 = vld [vmem:[#allocation37 + $0x28] sm:$0xff] }
 0xbc7   :  { %4843 = vmatprep.subr.mxu0 %v8128_v1  ;;  %v2023_v5 = vld [vmem:[#allocation37 + $0xb8] sm:$0xff] }
 0xbc8   :  { %1891 = vadd.xlane.f32.xlu1 %v1890_v6  ;;  %v5471_v6 = vpack.c.bf16 %v2005_v3, %v2004_v62  ;;  %v5521_v3 = vpack.c.bf16 %v2067_v58, %v2066_v57 }
 0xbc9   :  { %4841 = vmatmul.mubr.f32.vlgmr.msra.gmra.mrb[12].mxu0 %v1811_v7 }
 0xbca   :  { %4844 = vmatpush3.msra.mxu0 %v1807_v4  ;;  %4845 = vmatprep.mubr.msk.f32.mxu0 %vm7071_vm0, %v8128_v1  ;;  %v2022_v4 = vld [vmem:[#allocation37 + $0xb0] sm:$0xff] }
 0xbcb   :  { %5462 = vmatprep.subr.bf16.mxu0 %v5461_v26  ;;  %v5473_v7 = vpack.c.bf16 %v2023_v5, %v2022_v4  ;;  %v5485_v26 = vpack.c.bf16 %v2029_v24, %v2028_v23  ;;  %v2082_v4 = vld [vmem:[#allocation38 + $0x110] sm:$0xff]  ;;  %v2083_v5 = vld [vmem:[#allocation38 + $0x118] sm:$0xff] }
 0xbcc   :  { %v2087_v23 = vld [vmem:[#allocation38 + $0x138] sm:$0xff]  ;;  %v2054_v24 = vld [vmem:[#allocation38 + $0x30] sm:$0xff] }
 0xbcd   :  { %v5531_v31 = vpack.c.bf16 %v2055_v25, %v2054_v24  ;;  %v2520_v24 = vld [vmem:[#allocation43 + $0x60] sm:$0xff]  ;;  %v2521_v25 = vld [vmem:[#allocation43 + $0x68] sm:$0xff] }
 0xc55   :  { %v1892_v11 = vpop.xlane.xlu1 %1891 }
 0xc9c   :  { %v1880_v63 = vpop.f32.mrb[12].mxu0 }
 0xc9d   :  { %v1896_v8 = vrot.slane %v1880_v63, %v7654_v27  ;;  %v4842_v10 = vpop.f32.mrb[13].mxu0  ;;  %v2006_v63 = vld [vmem:[#allocation37 + $0x30] sm:$0xff] }
 0xc9e   :  { %v2024_v10 = vld [vmem:[#allocation37 + $0xc0] sm:$0xff] }
 0xc9f   :  { %v1897_v12 = vadd.f32 %v1896_v8, %v1892_v11  ;;  %v2007_v8 = vld [vmem:[#allocation37 + $0x38] sm:$0xff]  ;;  %v2025_v11 = vld [vmem:[#allocation37 + $0xc8] sm:$0xff] }
 0xca1   :  { %vm1898_vm9 = vcmp.ge.f32.partialorder %v1897_v12, 0.0  ;;  %v1899_v13 = vmul.f32 0.01, %v1897_v12 }
 0xca3   :  { %v1900_v14 = vsel %vm1898_vm9, %v1897_v12, %v1899_v13  ;;  %v5475_v12 = vpack.c.bf16 %v2007_v8, %v2006_v63  ;;  %v5477_v13 = vpack.c.bf16 %v2025_v11, %v2024_v10  ;;  %v2068_v63 = vld [vmem:[#allocation38 + $0xa0] sm:$0xff]  ;;  %v2069_v8 = vld [vmem:[#allocation38 + $0xa8] sm:$0xff]  ;;  %v5553_v10 = vpack.c.bf16 %v2083_v5, %v2082_v4 }
 0xca4   :  { %v1901_v15 = vsel %vm1104_vm7, %v1900_v14, -1e+30  ;;  %v2008_v14 = vld [vmem:[#allocation37 + $0x40] sm:$0xff] }
 0xca5   :  { %v1902_v16 = vsel %vm913_vm2, %v1901_v15, -inf }
 0xca6   :  { %1903 = vmax.xlane.f32.xlu0 %v1902_v16  ;;  %v2026_v16 = vld [vmem:[#allocation37 + $0xd0] sm:$0xff] }
 0xd33   :  { %v1904_v17 = vpop.xlane.xlu0 %1903 }
 0xd34   :  { %v1905_v18 = vsub.f32 %v1901_v15, %v1904_v17  ;;  %v2009_v15 = vld [vmem:[#allocation37 + $0x48] sm:$0xff]  ;;  %v2027_v17 = vld [vmem:[#allocation37 + $0xd8] sm:$0xff] }
 0xd36   :  { %v1906_v19 = vmul.f32 1.442695, %v1905_v18  ;;  %v5479_v18 = vpack.c.bf16 %v2009_v15, %v2008_v14  ;;  %v2085_v14 = vld [vmem:[#allocation38 + $0x128] sm:$0xff]  ;;  %v2052_v15 = vld [vmem:[#allocation38 + $0x20] sm:$0xff] }
 0xd38   :  { %6019 = vpow2.f32 %v1906_v19  ;;  %v5481_v19 = vpack.c.bf16 %v2027_v17, %v2026_v16  ;;  %v2053_v16 = vld [vmem:[#allocation38 + $0x28] sm:$0xff]  ;;  %v2070_v17 = vld [vmem:[#allocation38 + $0xb0] sm:$0xff] }
 0xd42   :  { %v6020_v20 = vpop.eup %6019 }
 0xd43   :  { %v1908_v21 = vmul.f32 %v6020_v20, %v7609_v9  ;;  %v2036_v9 = vld [vmem:[#allocation37 + $0x120] sm:$0xff]  ;;  %v2010_v20 = vld [vmem:[#allocation37 + $0x50] sm:$0xff] }
 0xd44   :  { %v5500_v35 = vpack.c.bf16 %v2037_v34, %v2036_v9  ;;  %v2030_v9 = vld [vmem:[#allocation37 + $0xf0] sm:$0xff]  ;;  %v2031_v34 = vld [vmem:[#allocation37 + $0xf8] sm:$0xff] }
 0xd45   :  { %v1909_v22 = vsel %vm913_vm2, %v1908_v21, 0.0  ;;  %v5489_v36 = vpack.c.bf16 %v2031_v34, %v2030_v9  ;;  %v2089_v9 = vld [vmem:[#allocation38 + $0x148] sm:$0xff]  ;;  %v2056_v34 = vld [vmem:[#allocation38 + $0x40] sm:$0xff] }
 0xd46   :  { %1910 = vadd.xlane.f32.xlu1 %v1909_v22  ;;  %5501 = vmatpush3.bf16.xpose.msra.mxu1 %v5500_v35  ;;  %v2046_v35 = vld [vmem:[#allocation37 + $0x170] sm:$0xff] }
 0xd47   :  { %5502 = vmatprep.subr.bf16.mxu1 %v8133_v0  ;;  %v5515_v40 = vpack.c.bf16 %v2047_v37, %v2046_v35  ;;  %v2057_v35 = vld [vmem:[#allocation38 + $0x48] sm:$0xff]  ;;  %v2075_v37 = vld [vmem:[#allocation38 + $0xd8] sm:$0xff] }
 0xd4e   :  { %5504 = vmatpush3.bf16.xpose.msra.mxu1 %v5503_v38  ;;  %v2014_v38 = vld [vmem:[#allocation37 + $0x70] sm:$0xff] }
 0xd4f   :  { %5505 = vmatprep.subr.bf16.mxu1 %v8133_v0 }
 0xd56   :  { %5507 = vmatpush3.bf16.xpose.msra.mxu1 %v5506_v41  ;;  %v5491_v41 = vpack.c.bf16 %v2015_v39, %v2014_v38  ;;  %v5535_v39 = vpack.c.bf16 %v2057_v35, %v2056_v34  ;;  %v2097_v34 = vld [vmem:[#allocation41] sm:$0x7]  ;;  %v2096_v35 = vld [vmem:[#allocation40] sm:$0x7] }
 0xd57   :  { %5508 = vmatprep.subr.bf16.mxu1 %v8133_v0 }
 0xd5e   :  { %5510 = vmatpush3.bf16.xpose.msra.mxu1 %v5509_v44  ;;  %v5517_v44 = vpack.c.bf16 %v2065_v43, %v2064_v42  ;;  %v2091_v42 = vld [vmem:[#allocation38 + $0x158] sm:$0xff]  ;;  %v2058_v43 = vld [vmem:[#allocation38 + $0x50] sm:$0xff] }
 0xd5f   :  { %5511 = vmatprep.subr.bf16.mxu1 %v8133_v0 }
 0xd66   :  { %5513 = vmatpush3.bf16.xpose.msra.mxu1 %v5512_v32 }
 0xd67   :  { %5514 = vmatprep.subr.bf16.mxu1 %v8133_v0 }
 0xd6e   :  { %5516 = vmatpush3.bf16.xpose.msra.mxu1 %v5515_v40 }
 0xd6f   :  { %5549 = vmatprep.subr.bf16.mxu1 %v8133_v0 }
 0xdd3   :  { %v1911_v45 = vpop.xlane.xlu1 %1910 }
 0xdd4   :  { %v1912_v46 = vmax.f32 %v1911_v45, 1e-16  ;;  %v3977_v45 = vld [vmem:[#allocation35] ss:$0 sm:$0xff] }
 0xdd6   :  { %6021 = vrcp.f32 %v1912_v46 }
 0xde0   :  { %v6022_v52 = vpop.eup %6021 }
 0xde1   :  { %v1914_v54 = vmul.f32 %v6022_v52, %v1908_v21  ;;  %v2011_v21 = vld [vmem:[#allocation37 + $0x58] sm:$0xff]  ;;  %v2080_v52 = vld [vmem:[#allocation38 + $0x100] sm:$0xff] }
 0xde2   :  { %v5483_v22 = vpack.c.bf16 %v2011_v21, %v2010_v20  ;;  %v5527_v20 = vpack.c.bf16 %v2053_v16, %v2052_v15  ;;  %v2514_v15 = vld [vmem:[#allocation43 + $0x30] sm:$0xff]  ;;  %v2515_v16 = vld [vmem:[#allocation43 + $0x38] sm:$0xff] }
 0xde3   :  { %4846 = vmatmul.mubr.msk.f32.vlgmr.msra.gmra.mrb[14].mxu0 %vm913_vm2, %v1914_v54  ;;  %v2048_v54 = vld [vmem:[#allocation38] sm:$0xff] }
 0xde4   :  { %5464 = vmatpush3.bf16.xpose.msra.mxu0 %v5463_v53  ;;  %v2081_v53 = vld [vmem:[#allocation38 + $0x108] sm:$0xff] }
 0xde5   :  { %5466 = vmatprep.subr.bf16.mxu0 %v5465_v55  ;;  %v2049_v55 = vld [vmem:[#allocation38 + $0x8] sm:$0xff] }
 0xdec   :  { %5468 = vmatpush3.bf16.xpose.msra.mxu0 %v5467_v60  ;;  %v5550_v60 = vpack.c.bf16 %v2081_v53, %v2080_v52  ;;  %v2093_v52 = vld [vmem:[#allocation38 + $0x168] sm:$0xff]  ;;  %v2060_v53 = vld [vmem:[#allocation38 + $0x60] sm:$0xff] }
 0xded   :  { %5470 = vmatprep.subr.bf16.mxu0 %v5469_v61  ;;  %v5519_v61 = vpack.c.bf16 %v2049_v55, %v2048_v54  ;;  %v2061_v54 = vld [vmem:[#allocation38 + $0x68] sm:$0xff]  ;;  %v2078_v55 = vld [vmem:[#allocation38 + $0xf0] sm:$0xff] }
 0xdee   :  { %v5543_v58 = vpack.c.bf16 %v2061_v54, %v2060_v53  ;;  %v2267_v54 = vrot.slane %v2097_v34, %v7662_v47 }
 0xdf4   :  { %5472 = vmatpush3.bf16.xpose.msra.mxu0 %v5471_v6  ;;  %v2050_v6 = vld [vmem:[#allocation38 + $0x10] sm:$0xff] }
 0xdf5   :  { %5474 = vmatprep.subr.bf16.mxu0 %v5473_v7  ;;  %v2051_v7 = vld [vmem:[#allocation38 + $0x18] sm:$0xff] }
 0xdf6   :  { %v5523_v11 = vpack.c.bf16 %v2051_v7, %v2050_v6  ;;  %v2508_v6 = vld [vmem:[#allocation43] sm:$0xff]  ;;  %v2509_v7 = vld [vmem:[#allocation43 + $0x8] sm:$0xff] }
 0xdfc   :  { %5476 = vmatpush3.bf16.xpose.msra.mxu0 %v5475_v12  ;;  %v5525_v12 = vpack.c.bf16 %v2069_v8, %v2068_v63  ;;  %v7708_v63 = vpack.c.bf16 %v2509_v7, %v2508_v6  ;;  %v2510_v8 = vld [vmem:[#allocation43 + $0x10] sm:$0xff] }
 0xdfd   :  { %5478 = vmatprep.subr.bf16.mxu0 %v5477_v13  ;;  %v2084_v13 = vld [vmem:[#allocation38 + $0x120] sm:$0xff] }
 0xe04   :  { %5480 = vmatpush3.bf16.xpose.msra.mxu0 %v5479_v18  ;;  %v2071_v18 = vld [vmem:[#allocation38 + $0xb8] sm:$0xff] }
 0xe05   :  { %5482 = vmatprep.subr.bf16.mxu0 %v5481_v19  ;;  %v5556_v19 = vpack.c.bf16 %v2085_v14, %v2084_v13  ;;  %v5529_v21 = vpack.c.bf16 %v2071_v18, %v2070_v17  ;;  %v2513_v13 = vld [vmem:[#allocation43 + $0x28] sm:$0xff]  ;;  %v7720_v17 = vpack.c.bf16 %v2515_v16, %v2514_v15  ;;  %v2516_v18 = vld [vmem:[#allocation43 + $0x40] sm:$0xff] }
 0xe0c   :  { %5484 = vmatpush3.bf16.xpose.msra.mxu0 %v5483_v22  ;;  %v2086_v22 = vld [vmem:[#allocation38 + $0x130] sm:$0xff] }
 0xe0d   :  { %5486 = vmatprep.subr.bf16.mxu0 %v5485_v26  ;;  %v2072_v26 = vld [vmem:[#allocation38 + $0xc0] sm:$0xff]  ;;  %v5559_v29 = vpack.c.bf16 %v2087_v23, %v2086_v22 }
 0xe0e   :  { %v5533_v32 = vpack.c.bf16 %v2073_v28, %v2072_v26  ;;  %v2519_v22 = vld [vmem:[#allocation43 + $0x58] sm:$0xff]  ;;  %v7732_v26 = vpack.c.bf16 %v2521_v25, %v2520_v24  ;;  %v2522_v28 = vld [vmem:[#allocation43 + $0x70] sm:$0xff] }
 0xe14   :  { %5488 = vmatpush3.bf16.xpose.msra.mxu0 %v5487_v33  ;;  %v2088_v33 = vld [vmem:[#allocation38 + $0x140] sm:$0xff] }
 0xe15   :  { %5490 = vmatprep.subr.bf16.mxu0 %v5489_v36  ;;  %v2074_v36 = vld [vmem:[#allocation38 + $0xd0] sm:$0xff]  ;;  %v5562_v38 = vpack.c.bf16 %v2089_v9, %v2088_v33 }
 0xe16   :  { %v5537_v40 = vpack.c.bf16 %v2075_v37, %v2074_v36  ;;  %v2102_v36 = vrot.slane %v2096_v35, %v7654_v27  ;;  %v2259_v37 = vrot.slane %v2097_v34, %v7654_v27 }
 0xe1c   :  { %5492 = vmatpush3.bf16.xpose.msra.mxu0 %v5491_v41  ;;  %v2090_v41 = vld [vmem:[#allocation38 + $0x150] sm:$0xff] }
 0xe1d   :  { %5518 = vmatprep.subr.bf16.mxu0 %v5517_v44  ;;  %v2059_v44 = vld [vmem:[#allocation38 + $0x58] sm:$0xff] }
 0xeb6   :  { %v1990_v46 = vpop.f32.mrb[14].mxu0 }
 0xeb7   :  { %v1991_v48 = vadd.f32 %v3977_v45, %v1990_v46  ;;  %v4847_v49 = vpop.f32.mrb[15].mxu0  ;;  %v2076_v45 = vld [vmem:[#allocation38 + $0xe0] sm:$0xff]  ;;  %v2077_v46 = vld [vmem:[#allocation38 + $0xe8] sm:$0xff] }
 0xeb8   :  { %v5539_v49 = vpack.c.bf16 %v2059_v44, %v2058_v43 }
 0xeb9   :  { %v1995_v50 = vmin.f32 %v1991_v48, 0.0  ;;  %vm1994_vm10 = vcmp.gt.f32.partialorder %v1991_v48, 0.0 }
 0xebb   :  { %v1996_v51 = vmul.f32 1.442695, %v1995_v50  ;;  %v5541_v50 = vpack.c.bf16 %v2077_v46, %v2076_v45 }
 0xebd   :  { %6023 = vpow2.f32 %v1996_v51  ;;  %v2092_v51 = vld [vmem:[#allocation38 + $0x160] sm:$0xff] }
 0xebe   :  { %v5568_v57 = vpack.c.bf16 %v2093_v52, %v2092_v51 }
 0xec7   :  { %v6024_v56 = vpop.eup %6023 }
 0xec8   :  { %v3979_v59 = vadd.f32 -1.0, %v6024_v56  ;;  %v2079_v56 = vld [vmem:[#allocation38 + $0xf8] sm:$0xff] }
 0xeca   :  { %v1999_v62 = vsel %vm1994_vm10, %v1991_v48, %v3979_v59  ;;  %v5565_v48 = vpack.c.bf16 %v2091_v42, %v2090_v41  ;;  %v5545_v59 = vpack.c.bf16 %v2079_v56, %v2078_v55  ;;  %v2110_v55 = vrot.slane %v2096_v35, %v7662_v47 }
 0xecb   :  { %4226 = vmatprep.mubr.f32.mxu0 %v1999_v62  ;;  %4881 = vmatmul.mubr.f32.vlgmr.msra.gmra.mrb[8].mxu1 %v1999_v62 }
 0xecc   :  { %5551 = vmatpush3.bf16.xpose.msra.mxu1 %v5550_v60  ;;  %4227 = vmatmul.mubr.f32.vlgmr.msra.gmra.mrb[16].mxu0 %v1999_v62  ;;  %v2094_v60 = vld [vmem:[#allocation38 + $0x170] sm:$0xff] }
 0xecd   :  { %5520 = vmatpush3.bf16.xpose.msra.mxu0 %v5519_v61  ;;  %4277 = vmatprep.mubr.f32.mxu0 %v7667_v2  ;;  %v2095_v61 = vld [vmem:[#allocation38 + $0x178] sm:$0xff]  ;;  %v2062_v62 = vld [vmem:[#allocation38 + $0x70] sm:$0xff] }
 0xece   :  { %5552 = vmatprep.subr.bf16.mxu1 %v8133_v0  ;;  %5522 = vmatprep.subr.bf16.mxu0 %v5521_v3  ;;  %v2063_v3 = vld [vmem:[#allocation38 + $0x78] sm:$0xff]  ;;  %v5571_v4 = vpack.c.bf16 %v2095_v61, %v2094_v60 }
 0xecf   :  { %4915 = vmatprep.mubr.msk.f32.mxu1 %vm7071_vm0, %v8128_v1  ;;  %v5547_v5 = vpack.c.bf16 %v2063_v3, %v2062_v62 }
 0xed4   :  { %5554 = vmatpush3.bf16.xpose.msra.mxu1 %v5553_v10  ;;  %v2511_v10 = vld [vmem:[#allocation43 + $0x18] sm:$0xff] }
 0xed5   :  { %5524 = vmatpush3.bf16.xpose.msra.mxu0 %v5523_v11  ;;  %5555 = vmatprep.subr.bf16.mxu1 %v8133_v0  ;;  %v7712_v11 = vpack.c.bf16 %v2511_v10, %v2510_v8  ;;  %v7749_v10 = vld [vmem:[#allocation11] sm:$0xff] }
 0xed6   :  { %5526 = vmatprep.subr.bf16.mxu0 %v5525_v12  ;;  %v2512_v12 = vld [vmem:[#allocation43 + $0x20] sm:$0xff]  ;;  %vm2850_vm12 = vcmp.gt.f32.partialorder %v7749_v10, 0.0 }
 0xed7   :  { %v7716_v14 = vpack.c.bf16 %v2513_v13, %v2512_v12 }
 0xedc   :  { %5557 = vmatpush3.bf16.xpose.msra.mxu1 %v5556_v19  ;;  %v2517_v19 = vld [vmem:[#allocation43 + $0x48] sm:$0xff] }
 0xedd   :  { %5528 = vmatpush3.bf16.xpose.msra.mxu0 %v5527_v20  ;;  %5558 = vmatprep.subr.bf16.mxu1 %v8133_v0  ;;  %v7724_v20 = vpack.c.bf16 %v2517_v19, %v2516_v18  ;;  %v2594_v18 = vld [vmem:[#allocation44] sm:$0x1] }
 0xede   :  { %5530 = vmatprep.subr.bf16.mxu0 %v5529_v21  ;;  %v2518_v21 = vld [vmem:[#allocation43 + $0x50] sm:$0xff] }
 0xedf   :  { %v7728_v23 = vpack.c.bf16 %v2519_v22, %v2518_v21 }
 0xee4   :  { %5560 = vmatpush3.bf16.xpose.msra.mxu1 %v5559_v29  ;;  %v2523_v29 = vld [vmem:[#allocation43 + $0x78] sm:$0xff] }
 0xee5   :  { %5532 = vmatpush3.bf16.xpose.msra.mxu0 %v5531_v31  ;;  %5561 = vmatprep.subr.bf16.mxu1 %v8133_v0  ;;  %v7736_v31 = vpack.c.bf16 %v2523_v29, %v2522_v28 }
 0xee6   :  { %5534 = vmatprep.subr.bf16.mxu0 %v5533_v32  ;;  %v2665_v32 = vld [vmem:[#allocation46] sm:$0x1] }
 0xeec   :  { %5563 = vmatpush3.bf16.xpose.msra.mxu1 %v5562_v38  ;;  %v2106_v38 = vrot.slane %v2096_v35, %v7656_v30  ;;  %v2753_v35 = vld [vmem:[#allocation49 + $0x80] sm:$0xff] }
 0xeed   :  { %5536 = vmatpush3.bf16.xpose.msra.mxu0 %v5535_v39  ;;  %5564 = vmatprep.subr.bf16.mxu1 %v8133_v0  ;;  %v2263_v39 = vrot.slane %v2097_v34, %v7656_v30 }
 0xeee   :  { %5538 = vmatprep.subr.bf16.mxu0 %v5537_v40  ;;  %v5897_v40 = vadd.f32 %v2259_v37, %v2102_v36  ;;  %v2754_v36 = vld [vmem:[#allocation49 + $0x88] sm:$0xff]  ;;  %v2769_v37 = vld [vmem:[#allocation49 + $0x100] sm:$0xff] }
 0xeef   :  { %v5899_v44 = vadd.f32 %v2263_v39, %v2106_v38  ;;  %v7798_v38 = vpack.c.bf16 %v2754_v36, %v2753_v35  ;;  %v2770_v39 = vld [vmem:[#allocation49 + $0x108] sm:$0xff]  ;;  %v2747_v36 = vld [vmem:[#allocation49 + $0x50] sm:$0xff] }
 0xef4   :  { %5566 = vmatpush3.bf16.xpose.msra.mxu1 %v5565_v48 }
 0xef5   :  { %5540 = vmatpush3.bf16.xpose.msra.mxu0 %v5539_v49  ;;  %5567 = vmatprep.subr.bf16.mxu1 %v8133_v0 }
 0xef6   :  { %5542 = vmatprep.subr.bf16.mxu0 %v5541_v50 }
 0xefc   :  { %5569 = vmatpush3.bf16.xpose.msra.mxu1 %v5568_v57 }
 0xefd   :  { %5544 = vmatpush3.bf16.xpose.msra.mxu0 %v5543_v58  ;;  %5570 = vmatprep.subr.bf16.mxu1 %v8133_v0 }
 0xefe   :  { %5546 = vmatprep.subr.bf16.mxu0 %v5545_v59 }
 0xf04   :  { %5572 = vmatpush3.bf16.xpose.msra.mxu1 %v5571_v4 }
 0xf05   :  { %5548 = vmatpush3.bf16.xpose.msra.mxu0 %v5547_v5  ;;  %5597 = vmatprep.subr.bf16.mxu1 %v8133_v0 }
 0xf06   :  { %4918 = vmatprep.subr.mxu0 %v8128_v1 }
 0xf0b   :  { %4916 = vmatmul.mubr.f32.vlgmr.msra.gmra.mrb[10].mxu1 %v7667_v2 }
 0xf0c   :  { %4278 = vmatmul.mubr.f32.vlgmr.msra.gmra.mrb[16].mxu0 %v7667_v2  ;;  %4995 = vmatprep.mubr.msk.f32.mxu1 %vm7071_vm0, %v8128_v1 }
 0xf0d   :  { %4920 = vmatprep.mubr.msk.f32.mxu0 %vm7071_vm0, %v8128_v1  ;;  %5599 = vmatpush3.bf16.xpose.msra.mxu1 %v7708_v63 }
 0xf0e   :  { %5600 = vmatprep.subr.bf16.mxu1 %v8133_v0 }
 0xf15   :  { %5602 = vmatpush3.bf16.xpose.msra.mxu1 %v7712_v11 }
 0xf16   :  { %5603 = vmatprep.subr.bf16.mxu1 %v8133_v0 }
 0xf1d   :  { %5605 = vmatpush3.bf16.xpose.msra.mxu1 %v7716_v14 }
 0xf1e   :  { %5606 = vmatprep.subr.bf16.mxu1 %v8133_v0 }
 0xf25   :  { %5608 = vmatpush3.bf16.xpose.msra.mxu1 %v7720_v17 }
 0xf26   :  { %5609 = vmatprep.subr.bf16.mxu1 %v8133_v0 }
 0xf2d   :  { %5611 = vmatpush3.bf16.xpose.msra.mxu1 %v7724_v20 }
 0xf2e   :  { %5612 = vmatprep.subr.bf16.mxu1 %v8133_v0 }
 0xf35   :  { %5614 = vmatpush3.bf16.xpose.msra.mxu1 %v7728_v23 }
 0xf36   :  { %5615 = vmatprep.subr.bf16.mxu1 %v8133_v0 }
 0xf3d   :  { %5617 = vmatpush3.bf16.xpose.msra.mxu1 %v7732_v26 }
 0xf3e   :  { %5618 = vmatprep.subr.bf16.mxu1 %v8133_v0 }
 0xf45   :  { %5620 = vmatpush3.bf16.xpose.msra.mxu1 %v7736_v31 }
 0xf46   :  { %5653 = vmatprep.subr.bf16.mxu1 %v8133_v0 }
 0xf4c   :  { %4996 = vmatmul.mubr.f32.vlgmr.msra.gmra.mrb[12].mxu1 %v2665_v32 }
 0xf4d   :  { %5035 = vmatprep.mubr.msk.f32.mxu1 %vm7071_vm0, %v8128_v1 }
 0xf9e   :  { %v2251_v33 = vpop.f32.mrb[8].mxu1 }
 0xf9f   :  { %v4882_v9 = vpop.f32.mrb[9].mxu1  ;;  %v2252_v59 = vadd.f32 %v2251_v33, %v2110_v55  ;;  %v2780_v55 = vld [vmem:[#allocation49 + $0x158] sm:$0xff] }
 0xfde   :  { %v2408_v41 = vpop.f32.mrb[10].mxu1 }
 0xfdf   :  { %v2337_v42 = vpop.f32.mrb[16].mxu0  ;;  %v4917_v43 = vpop.f32.mrb[11].mxu1  ;;  %v2409_v57 = vadd.f32 %v2408_v41, %v2267_v54  ;;  %v2771_v41 = vld [vmem:[#allocation49 + $0x110] sm:$0xff] }
 0xfe0   :  { %v5898_v45 = vadd.f32 %v5897_v40, %v2337_v42  ;;  %v2339_v46 = vpop.f32.mrb[17].mxu0  ;;  %v7800_v40 = vpack.c.bf16 %v2770_v39, %v2769_v37  ;;  %v2772_v42 = vld [vmem:[#allocation49 + $0x118] sm:$0xff]  ;;  %v2779_v54 = vld [vmem:[#allocation49 + $0x150] sm:$0xff] }
 0xfe1   :  { %v5900_v49 = vadd.f32 %v5899_v44, %v2339_v46  ;;  %v7805_v43 = vpack.c.bf16 %v2772_v42, %v2771_v41  ;;  %v2773_v44 = vld [vmem:[#allocation49 + $0x120] sm:$0xff]  ;;  %v2748_v37 = vld [vmem:[#allocation49 + $0x58] sm:$0xff]  ;;  %v2766_v42 = vld [vmem:[#allocation49 + $0xe8] sm:$0xff] }
 0xfe2   :  { %v3980_v48 = vmul.f32 -1.442695, %v5898_v45  ;;  %5655 = vmatpush3.bf16.xpose.msra.mxu1 %v7800_v40  ;;  %v2774_v45 = vld [vmem:[#allocation49 + $0x128] sm:$0xff]  ;;  %v7856_v39 = vpack.c.bf16 %v2748_v37, %v2747_v36  ;;  %v2765_v41 = vld [vmem:[#allocation49 + $0xe0] sm:$0xff] }
 0xfe3   :  { %v3981_v50 = vmul.f32 -1.442695, %v5900_v49  ;;  %5656 = vmatprep.subr.bf16.mxu1 %v8133_v0  ;;  %v7809_v46 = vpack.c.bf16 %v2774_v45, %v2773_v44  ;;  %v2776_v49 = vld [vmem:[#allocation49 + $0x138] sm:$0xff]  ;;  %v2781_v44 = vld [vmem:[#allocation49 + $0x160] sm:$0xff]  ;;  %v7859_v45 = vpack.c.bf16 %v2766_v42, %v2765_v41 }
 0xfe4   :  { %6025 = vpow2.f32 %v3980_v48  ;;  %v2775_v48 = vld [vmem:[#allocation49 + $0x130] sm:$0xff] }
 0xfe5   :  { %6027 = vpow2.f32 %v3981_v50  ;;  %v7813_v50 = vpack.c.bf16 %v2776_v49, %v2775_v48  ;;  %v2782_v48 = vld [vmem:[#allocation49 + $0x168] sm:$0xff]  ;;  %v2749_v49 = vld [vmem:[#allocation49 + $0x60] sm:$0xff] }
 0xfea   :  { %5658 = vmatpush3.bf16.xpose.msra.mxu1 %v7805_v43 }
 0xfeb   :  { %5659 = vmatprep.subr.bf16.mxu1 %v8133_v0 }
 0xfee   :  { %v6026_v51 = vpop.eup %6025 }
 0xfef   :  { %v2416_v52 = vadd.f32 1.0, %v6026_v51  ;;  %v6028_v53 = vpop.eup %6027  ;;  %v2777_v51 = vld [vmem:[#allocation49 + $0x140] sm:$0xff] }
 0xff0   :  { %v2423_v56 = vadd.f32 1.0, %v6028_v53 }
 0xff1   :  { %6029 = vrcp.f32 %v2416_v52  ;;  %v2778_v52 = vld [vmem:[#allocation49 + $0x148] sm:$0xff] }
 0xff2   :  { %6031 = vrcp.f32 %v2423_v56  ;;  %5661 = vmatpush3.bf16.xpose.msra.mxu1 %v7809_v46  ;;  %v7817_v53 = vpack.c.bf16 %v2778_v52, %v2777_v51  ;;  %v7821_v56 = vpack.c.bf16 %v2780_v55, %v2779_v54  ;;  %v2750_v51 = vld [vmem:[#allocation49 + $0x68] sm:$0xff]  ;;  %v7861_v52 = vpack.c.bf16 %v2782_v48, %v2781_v44  ;;  %v2767_v55 = vld [vmem:[#allocation49 + $0xf0] sm:$0xff] }
 0xff3   :  { %5662 = vmatprep.subr.bf16.mxu1 %v8133_v0  ;;  %v7863_v54 = vpack.c.bf16 %v2750_v51, %v2749_v49  ;;  %v2819_v48 = vld [vmem:[#allocation50 + $0x110] sm:$0xff]  ;;  %v2820_v49 = vld [vmem:[#allocation50 + $0x118] sm:$0xff] }
 0xff4   :  { %v2787_v51 = vld [vmem:[#allocation50 + $0x10] sm:$0xff] }
 0xffa   :  { %5664 = vmatpush3.bf16.xpose.msra.mxu1 %v7813_v50 }
 0xffb   :  { %v6030_v58 = vpop.eup %6029  ;;  %5665 = vmatprep.subr.bf16.mxu1 %v8133_v0 }
 0xffc   :  { %v2426_v60 = vmul.f32 %v6030_v58, %v2409_v57  ;;  %v6032_v62 = vpop.eup %6031 }
 0xffd   :  { %v2429_v3 = vsub.f32 1.0, %v6032_v62  ;;  %v2431_v6 = vmul.f32 %v6032_v62, %v7667_v2  ;;  %v2756_v62 = vld [vmem:[#allocation49 + $0x98] sm:$0xff] }
 0xffe   :  { %v2427_v61 = vadd.f32 %v2426_v60, %v2252_v59  ;;  %v2737_v59 = vld [vmem:[#allocation49] sm:$0xff]  ;;  %v2738_v60 = vld [vmem:[#allocation49 + $0x8] sm:$0xff] }
0x1000   :  { %6033 = vtanh.f32 %v2427_v61  ;;  %v2755_v61 = vld [vmem:[#allocation49 + $0x90] sm:$0xff] }
0x1002   :  { %5667 = vmatpush3.bf16.xpose.msra.mxu1 %v7817_v53 }
0x1003   :  { %5668 = vmatprep.subr.bf16.mxu1 %v8133_v0 }
0x100a   :  { %v6034_v4 = vpop.eup %6033  ;;  %5670 = vmatpush3.bf16.xpose.msra.mxu1 %v7821_v56 }
0x100b   :  { %v2430_v5 = vmul.f32 %v6034_v4, %v2429_v3  ;;  %5671 = vmatprep.subr.bf16.mxu1 %v8133_v0  ;;  %v7825_v4 = vpack.c.bf16 %v2738_v60, %v2737_v59  ;;  %v2784_v60 = vld [vmem:[#allocation49 + $0x178] sm:$0xff] }
0x100d   :  { %v2432_v7 = vadd.f32 %v2431_v6, %v2430_v5  ;;  %v7827_v6 = vpack.c.bf16 %v2756_v62, %v2755_v61  ;;  %v2751_v61 = vld [vmem:[#allocation49 + $0x70] sm:$0xff]  ;;  %v2752_v62 = vld [vmem:[#allocation49 + $0x78] sm:$0xff] }
0x100f   :  { %v2433_v8 = vmax.f32 %v2432_v7, 0.0  ;;  %v2739_v7 = vld [vmem:[#allocation49 + $0x10] sm:$0xff] }
0x1011   :  { %4919 = vmatpush3.msra.mxu0 %v2433_v8 }
0x1012   :  { %5573 = vmatprep.subr.bf16.mxu0 %v8133_v0  ;;  %4921 = vmatmul.mubr.msk.f32.vlgmr.msra.gmra.mrb[18].mxu0 %vm913_vm2, %v7749_v10 }
0x1013   :  { %4955 = vmatprep.mubr.msk.f32.mxu0 %vm7071_vm0, %v8128_v1  ;;  %5673 = vmatpush3.bf16.xpose.msra.mxu1 %v7861_v52 }
0x1014   :  { %5674 = vmatprep.subr.bf16.mxu1 %v8133_v0 }
0x1018   :  { %5575 = vmatpush3.bf16.xpose.msra.mxu0 %v7708_v63 }
0x1019   :  { %5576 = vmatprep.subr.bf16.mxu0 %v8133_v0 }
0x101f   :  { %v2732_v2 = vpop.f32.mrb[12].mxu1 }
0x1020   :  { %5578 = vmatpush3.bf16.xpose.msra.mxu0 %v7712_v11  ;;  %v4997_v63 = vpop.f32.mrb[13].mxu1  ;;  %v7775_v11 = vrot.slane %v2732_v2, %v7654_v27  ;;  %v2757_v2 = vld [vmem:[#allocation49 + $0xa0] sm:$0xff] }
0x1021   :  { %5579 = vmatprep.subr.bf16.mxu0 %v8133_v0  ;;  %v2758_v63 = vld [vmem:[#allocation49 + $0xa8] sm:$0xff] }
0x1028   :  { %5581 = vmatpush3.bf16.xpose.msra.mxu0 %v7716_v14 }
0x1029   :  { %5582 = vmatprep.subr.bf16.mxu0 %v8133_v0 }
0x1030   :  { %5584 = vmatpush3.bf16.xpose.msra.mxu0 %v7720_v17 }
0x1031   :  { %5585 = vmatprep.subr.bf16.mxu0 %v8133_v0 }
0x1038   :  { %5587 = vmatpush3.bf16.xpose.msra.mxu0 %v7724_v20 }
0x1039   :  { %5588 = vmatprep.subr.bf16.mxu0 %v8133_v0 }
0x1040   :  { %5590 = vmatpush3.bf16.xpose.msra.mxu0 %v7728_v23 }
0x1041   :  { %5591 = vmatprep.subr.bf16.mxu0 %v8133_v0 }
0x1048   :  { %5593 = vmatpush3.bf16.xpose.msra.mxu0 %v7732_v26 }
0x1049   :  { %5594 = vmatprep.subr.bf16.mxu0 %v8133_v0 }
0x1050   :  { %5596 = vmatpush3.bf16.xpose.msra.mxu0 %v7736_v31 }
0x1051   :  { %4958 = vmatprep.subr.mxu0 %v8128_v1 }
0x1057   :  { %4956 = vmatmul.mubr.f32.vlgmr.msra.gmra.mrb[20].mxu0 %v2433_v8  ;;  %v2740_v8 = vld [vmem:[#allocation49 + $0x18] sm:$0xff] }
0x1058   :  { %4960 = vmatprep.mubr.msk.f32.mxu0 %vm7071_vm0, %v8128_v1 }
0x10e5   :  { %v2503_v12 = vpop.f32.mrb[18].mxu0 }
0x10e6   :  { %v7777_v13 = vmax.f32 %v2503_v12, 0.0  ;;  %v4922_v14 = vpop.f32.mrb[19].mxu0  ;;  %v7832_v12 = vpack.c.bf16 %v2740_v8, %v2739_v7  ;;  %v2801_v7 = vld [vmem:[#allocation50 + $0x80] sm:$0xff]  ;;  %v2802_v8 = vld [vmem:[#allocation50 + $0x88] sm:$0xff] }
0x10e7   :  { %v7834_v14 = vpack.c.bf16 %v2758_v63, %v2757_v2  ;;  %v7879_v2 = vpack.c.bf16 %v2802_v8, %v2801_v7  ;;  %v7882_v63 = vld [vmem:[#allocation47] ss:$0 sm:$0xff]  ;;  %v2821_v7 = vld [vmem:[#allocation50 + $0x120] sm:$0xff]  ;;  %v2822_v8 = vld [vmem:[#allocation50 + $0x128] sm:$0xff] }
0x10e8   :  { %v2839_v15 = vmul.f32 %v7775_v11, %v7777_v13 }
0x10ea   :  { %2840 = vadd.xlane.f32.xlu0 %v2839_v15  ;;  %v2741_v15 = vld [vmem:[#allocation49 + $0x20] sm:$0xff] }
0x112a   :  { %v7781_v16 = vpop.f32.mrb[20].mxu0 }
0x112b   :  { %v4957_v17 = vpop.f32.mrb[21].mxu0  ;;  %4959 = vmatpush3.xpose.msra.mxu0 %v7781_v16 }
0x112c   :  { %4998 = vmatprep.subr.mxu0 %v8128_v1  ;;  %v2742_v17 = vld [vmem:[#allocation49 + $0x28] sm:$0xff] }
0x112e   :  { %4961 = vmatmul.mubr.f32.vlgmr.msra.gmra.mrb[22].mxu0 %v2594_v18  ;;  %v2759_v18 = vld [vmem:[#allocation49 + $0xb0] sm:$0xff] }
0x112f   :  { %4999 = vmatpush3.msra.mxu0 %v7781_v16  ;;  %5000 = vmatprep.mubr.msk.f32.mxu0 %vm7071_vm0, %v8128_v1 }
0x1130   :  { %5622 = vmatprep.subr.bf16.mxu0 %v7798_v38 }
0x1177   :  { %v2841_v22 = vpop.xlane.xlu0 %2840 }
0x1201   :  { %v2661_v19 = vpop.f32.mrb[22].mxu0 }
0x1202   :  { %v7789_v20 = vrot.slane %v2661_v19, %v7654_v27  ;;  %v4962_v21 = vpop.f32.mrb[23].mxu0  ;;  %v2760_v19 = vld [vmem:[#allocation49 + $0xb8] sm:$0xff] }
0x1203   :  { %v7838_v21 = vpack.c.bf16 %v2742_v17, %v2741_v15 }
0x1204   :  { %v2846_v23 = vadd.f32 %v7789_v20, %v2841_v22  ;;  %v7840_v22 = vpack.c.bf16 %v2760_v19, %v2759_v18 }
0x1206   :  { %vm2847_vm11 = vcmp.ge.f32.partialorder %v2846_v23, 0.0  ;;  %v2848_v24 = vmul.f32 0.01, %v2846_v23 }
0x1208   :  { %v2849_v25 = vsel %vm2847_vm11, %v2846_v23, %v2848_v24  ;;  %v2743_v23 = vld [vmem:[#allocation49 + $0x30] sm:$0xff]  ;;  %v2744_v24 = vld [vmem:[#allocation49 + $0x38] sm:$0xff] }
0x1209   :  { %v2851_v26 = vsel %vm2850_vm12, %v2849_v25, -1e+30  ;;  %v2761_v25 = vld [vmem:[#allocation49 + $0xc0] sm:$0xff] }
0x120a   :  { %v2852_v28 = vsel %vm913_vm2, %v2851_v26, -inf }
0x120b   :  { %2853 = vmax.xlane.f32.xlu1 %v2852_v28  ;;  %v7844_v28 = vpack.c.bf16 %v2744_v24, %v2743_v23  ;;  %v2817_v24 = vld [vmem:[#allocation50 + $0x100] sm:$0xff] }
0x1298   :  { %v2854_v29 = vpop.xlane.xlu1 %2853 }
0x1299   :  { %v2855_v31 = vsub.f32 %v2851_v26, %v2854_v29  ;;  %v2762_v26 = vld [vmem:[#allocation49 + $0xc8] sm:$0xff] }
0x129a   :  { %v7846_v29 = vpack.c.bf16 %v2762_v26, %v2761_v25  ;;  %v2818_v25 = vld [vmem:[#allocation50 + $0x108] sm:$0xff]  ;;  %v2785_v26 = vld [vmem:[#allocation50] sm:$0xff] }
0x129b   :  { %v2856_v32 = vmul.f32 1.442695, %v2855_v31  ;;  %v2745_v31 = vld [vmem:[#allocation49 + $0x40] sm:$0xff]  ;;  %v7885_v37 = vpack.c.bf16 %v2818_v25, %v2817_v24 }
0x129d   :  { %6035 = vpow2.f32 %v2856_v32  ;;  %v2746_v32 = vld [vmem:[#allocation49 + $0x48] sm:$0xff] }
0x12a7   :  { %v6036_v33 = vpop.eup %6035 }
0x12a8   :  { %v2858_v9 = vmul.f32 %v6036_v33, %v7749_v10  ;;  %v2763_v33 = vld [vmem:[#allocation49 + $0xd0] sm:$0xff] }
0x12aa   :  { %v2859_v34 = vsel %vm913_vm2, %v2858_v9, 0.0 }
0x12ab   :  { %2860 = vadd.xlane.f32.xlu0 %v2859_v34  ;;  %v7850_v34 = vpack.c.bf16 %v2746_v32, %v2745_v31  ;;  %v2786_v31 = vld [vmem:[#allocation50 + $0x8] sm:$0xff] }
0x12ac   :  { %v7887_v41 = vpack.c.bf16 %v2786_v31, %v2785_v26  ;;  %v2823_v26 = vld [vmem:[#allocation50 + $0x130] sm:$0xff]  ;;  %v2824_v31 = vld [vmem:[#allocation50 + $0x138] sm:$0xff] }
0x1338   :  { %v2861_v57 = vpop.xlane.xlu0 %2860 }
0x1339   :  { %v2862_v58 = vmax.f32 %v2861_v57, 1e-16  ;;  %v2768_v57 = vld [vmem:[#allocation49 + $0xf8] sm:$0xff] }
0x133a   :  { %v7869_v59 = vpack.c.bf16 %v2768_v57, %v2767_v55  ;;  %v2788_v55 = vld [vmem:[#allocation50 + $0x18] sm:$0xff]  ;;  %v2805_v57 = vld [vmem:[#allocation50 + $0xa0] sm:$0xff] }
0x133b   :  { %6037 = vrcp.f32 %v2862_v58  ;;  %v2783_v58 = vld [vmem:[#allocation49 + $0x170] sm:$0xff] }
0x1345   :  { %v6038_v3 = vpop.eup %6037 }
0x1346   :  { %v2864_v5 = vmul.f32 %v6038_v3, %v2858_v9  ;;  %v2764_v9 = vld [vmem:[#allocation49 + $0xd8] sm:$0xff]  ;;  %v7872_v3 = vpack.c.bf16 %v2784_v60, %v2783_v58  ;;  %v2806_v58 = vld [vmem:[#allocation50 + $0xa8] sm:$0xff]  ;;  %v7898_v60 = vpack.c.bf16 %v2820_v49, %v2819_v48 }
0x1347   :  { %v7852_v35 = vpack.c.bf16 %v2764_v9, %v2763_v33  ;;  %v2803_v33 = vld [vmem:[#allocation50 + $0x90] sm:$0xff]  ;;  %v2804_v9 = vld [vmem:[#allocation50 + $0x98] sm:$0xff] }
0x1348   :  { %5001 = vmatmul.mubr.msk.f32.vlgmr.msra.gmra.mrb[24].mxu0 %vm913_vm2, %v2864_v5  ;;  %v7874_v5 = vpack.c.bf16 %v2752_v62, %v2751_v61  ;;  %5676 = vmatpush3.bf16.xpose.msra.mxu1 %v7872_v3  ;;  %v7889_v44 = vpack.c.bf16 %v2804_v9, %v2803_v33  ;;  %v7900_v61 = vpack.c.bf16 %v2788_v55, %v2787_v51  ;;  %v2792_v33 = vld [vmem:[#allocation50 + $0x38] sm:$0xff]  ;;  %v2809_v9 = vld [vmem:[#allocation50 + $0xc0] sm:$0xff]  ;;  %v2826_v55 = vld [vmem:[#allocation50 + $0x148] sm:$0xff] }
0x1349   :  { %5624 = vmatpush3.bf16.xpose.msra.mxu0 %v7825_v4  ;;  %5709 = vmatprep.subr.bf16.mxu1 %v8133_v0  ;;  %v7902_v62 = vpack.c.bf16 %v2806_v58, %v2805_v57  ;;  %v2825_v51 = vld [vmem:[#allocation50 + $0x140] sm:$0xff]  ;;  %v2794_v58 = vld [vmem:[#allocation50 + $0x48] sm:$0xff] }
0x134a   :  { %5626 = vmatprep.subr.bf16.mxu0 %v7827_v6  ;;  %v2793_v57 = vld [vmem:[#allocation50 + $0x40] sm:$0xff] }
0x1351   :  { %5628 = vmatpush3.bf16.xpose.msra.mxu0 %v7832_v12 }
0x1352   :  { %5630 = vmatprep.subr.bf16.mxu0 %v7834_v14 }
0x1359   :  { %5632 = vmatpush3.bf16.xpose.msra.mxu0 %v7838_v21 }
0x135a   :  { %5634 = vmatprep.subr.bf16.mxu0 %v7840_v22 }
0x1361   :  { %5636 = vmatpush3.bf16.xpose.msra.mxu0 %v7844_v28 }
0x1362   :  { %5638 = vmatprep.subr.bf16.mxu0 %v7846_v29 }
0x1369   :  { %5640 = vmatpush3.bf16.xpose.msra.mxu0 %v7850_v34 }
0x136a   :  { %5642 = vmatprep.subr.bf16.mxu0 %v7852_v35 }
0x1371   :  { %5644 = vmatpush3.bf16.xpose.msra.mxu0 %v7856_v39 }
0x1372   :  { %5646 = vmatprep.subr.bf16.mxu0 %v7859_v45 }
0x1379   :  { %5648 = vmatpush3.bf16.xpose.msra.mxu0 %v7863_v54 }
0x137a   :  { %5650 = vmatprep.subr.bf16.mxu0 %v7869_v59 }
0x1381   :  { %5652 = vmatpush3.bf16.xpose.msra.mxu0 %v7874_v5 }
0x1382   :  { %5678 = vmatprep.subr.bf16.mxu0 %v7879_v2 }
0x141b   :  { %v2940_v15 = vpop.f32.mrb[24].mxu0 }
0x141c   :  { %v2941_v17 = vadd.f32 %v7882_v63, %v2940_v15  ;;  %v5002_v18 = vpop.f32.mrb[25].mxu0  ;;  %v2789_v15 = vld [vmem:[#allocation50 + $0x20] sm:$0xff] }
0x141d   :  { %v2807_v18 = vld [vmem:[#allocation50 + $0xb0] sm:$0xff] }
0x141e   :  { %v2945_v19 = vmin.f32 %v2941_v17, 0.0  ;;  %vm2944_vm13 = vcmp.gt.f32.partialorder %v2941_v17, 0.0 }
0x1420   :  { %v2946_v23 = vmul.f32 1.442695, %v2945_v19  ;;  %v2808_v19 = vld [vmem:[#allocation50 + $0xb8] sm:$0xff] }
0x1421   :  { %v7912_v25 = vpack.c.bf16 %v2808_v19, %v2807_v18  ;;  %v2827_v19 = vld [vmem:[#allocation50 + $0x150] sm:$0xff] }
0x1422   :  { %6039 = vpow2.f32 %v2946_v23  ;;  %v7908_v23 = vpack.c.bf16 %v2822_v8, %v2821_v7  ;;  %v2811_v7 = vld [vmem:[#allocation50 + $0xd0] sm:$0xff]  ;;  %v2812_v8 = vld [vmem:[#allocation50 + $0xd8] sm:$0xff] }
0x1423   :  { %v7932_v18 = vpack.c.bf16 %v2812_v8, %v2811_v7  ;;  %v2797_v7 = vld [vmem:[#allocation50 + $0x60] sm:$0xff]  ;;  %v2798_v8 = vld [vmem:[#allocation50 + $0x68] sm:$0xff] }
0x1425   :  { %8179 = vst [vmem:[#allocation108_spill] sm:$0xff] %v7932_v18 }
0x142c   :  { %v6040_v32 = vpop.eup %6039 }
0x142d   :  { %v3985_v36 = vadd.f32 -1.0, %v6040_v32  ;;  %v2791_v32 = vld [vmem:[#allocation50 + $0x30] sm:$0xff] }
0x142e   :  { %v7920_v48 = vpack.c.bf16 %v2792_v33, %v2791_v32  ;;  %v2796_v32 = vld [vmem:[#allocation50 + $0x58] sm:$0xff]  ;;  %v2813_v33 = vld [vmem:[#allocation50 + $0xe0] sm:$0xff] }
0x142f   :  { %v2949_v42 = vsel %vm2944_vm13, %v2941_v17, %v3985_v36  ;;  %v2790_v17 = vld [vmem:[#allocation50 + $0x28] sm:$0xff] }
0x1430   :  { %4368 = vmatprep.mubr.f32.mxu0 %v2949_v42  ;;  %5036 = vmatmul.mubr.f32.vlgmr.msra.gmra.mrb[14].mxu1 %v2949_v42  ;;  %v7910_v24 = vpack.c.bf16 %v2790_v17, %v2789_v15  ;;  %v2810_v36 = vld [vmem:[#allocation50 + $0xc8] sm:$0xff]  ;;  %v7928_v15 = vpack.c.bf16 %v2826_v55, %v2825_v51  ;;  %v7930_v17 = vpack.c.bf16 %v2794_v58, %v2793_v57  ;;  %v2829_v57 = vld [vmem:[#allocation50 + $0x160] sm:$0xff] }
0x1431   :  { %5711 = vmatpush3.bf16.xpose.msra.mxu1 %v7885_v37  ;;  %4369 = vmatmul.mubr.f32.vlgmr.msra.gmra.mrb[26].mxu0 %v2949_v42  ;;  %v7918_v42 = vpack.c.bf16 %v2824_v31, %v2823_v26  ;;  %v7922_v49 = vpack.c.bf16 %v2810_v36, %v2809_v9  ;;  %v2828_v26 = vld [vmem:[#allocation50 + $0x158] sm:$0xff]  ;;  %v2795_v31 = vld [vmem:[#allocation50 + $0x50] sm:$0xff]  ;;  %v2814_v9 = vld [vmem:[#allocation50 + $0xe8] sm:$0xff] }
0x1432   :  { %5680 = vmatpush3.bf16.xpose.msra.mxu0 %v7887_v41  ;;  %4419 = vmatprep.mubr.f32.mxu0 %v7777_v13  ;;  %v7938_v36 = vpack.c.bf16 %v2828_v26, %v2827_v19  ;;  %v7940_v51 = vpack.c.bf16 %v2796_v32, %v2795_v31  ;;  %v7942_v55 = vpack.c.bf16 %v2814_v9, %v2813_v33  ;;  %v2830_v58 = vld [vmem:[#allocation50 + $0x168] sm:$0xff]  ;;  %v2831_v32 = vld [vmem:[#allocation50 + $0x170] sm:$0xff]  ;;  %v2832_v33 = vld [vmem:[#allocation50 + $0x178] sm:$0xff] }
0x1433   :  { %5712 = vmatprep.subr.bf16.mxu1 %v8133_v0  ;;  %5682 = vmatprep.subr.bf16.mxu0 %v7889_v44  ;;  %v7948_v19 = vpack.c.bf16 %v2830_v58, %v2829_v57  ;;  %v7950_v26 = vpack.c.bf16 %v2798_v8, %v2797_v7  ;;  %v2799_v9 = vld [vmem:[#allocation50 + $0x70] sm:$0xff] }
0x1434   :  { %5070 = vmatprep.mubr.msk.f32.mxu1 %vm7071_vm0, %v8128_v1  ;;  %8180 = vst [vmem:[#allocation109_spill] sm:$0xff] %v7940_v51  ;;  %8181 = vst [vmem:[#allocation110_spill] sm:$0xff] %v7942_v55  ;;  %v2815_v1 = vld [vmem:[#allocation50 + $0xf0] sm:$0xff] }
0x1439   :  { %5714 = vmatpush3.bf16.xpose.msra.mxu1 %v7898_v60 }
0x143a   :  { %5684 = vmatpush3.bf16.xpose.msra.mxu0 %v7900_v61  ;;  %5715 = vmatprep.subr.bf16.mxu1 %v8133_v0 }
0x143b   :  { %5686 = vmatprep.subr.bf16.mxu0 %v7902_v62 }
0x1441   :  { %5717 = vmatpush3.bf16.xpose.msra.mxu1 %v7908_v23 }
0x1442   :  { %5688 = vmatpush3.bf16.xpose.msra.mxu0 %v7910_v24  ;;  %5718 = vmatprep.subr.bf16.mxu1 %v8133_v0 }
0x1443   :  { %5690 = vmatprep.subr.bf16.mxu0 %v7912_v25 }
0x1449   :  { %5720 = vmatpush3.bf16.xpose.msra.mxu1 %v7918_v42 }
0x144a   :  { %5692 = vmatpush3.bf16.xpose.msra.mxu0 %v7920_v48  ;;  %5721 = vmatprep.subr.bf16.mxu1 %v8133_v0 }
0x144b   :  { %5694 = vmatprep.subr.bf16.mxu0 %v7922_v49 }
0x1451   :  { %5723 = vmatpush3.bf16.xpose.msra.mxu1 %v7928_v15 }
0x1452   :  { %5696 = vmatpush3.bf16.xpose.msra.mxu0 %v7930_v17  ;;  %5724 = vmatprep.subr.bf16.mxu1 %v8133_v0 }
0x1453   :  { %5698 = vmatprep.subr.bf16.mxu0 %v7932_v18  ;;  %v2816_v18 = vld [vmem:[#allocation50 + $0xf8] sm:$0xff] }
0x1454   :  { %v7952_v31 = vpack.c.bf16 %v2816_v18, %v2815_v1  ;;  %v8182_v1 = vmov 0.0  }
0x1459   :  { %5726 = vmatpush3.bf16.xpose.msra.mxu1 %v7938_v36 }
0x145a   :  { %5700 = vmatpush3.bf16.xpose.msra.mxu0 %v7940_v51  ;;  %5727 = vmatprep.subr.bf16.mxu1 %v8133_v0  ;;  %v7958_v51 = vpack.c.bf16 %v2832_v33, %v2831_v32 }
0x145b   :  { %5702 = vmatprep.subr.bf16.mxu0 %v7942_v55  ;;  %v2800_v55 = vld [vmem:[#allocation50 + $0x78] sm:$0xff] }
0x145c   :  { %v7960_v57 = vpack.c.bf16 %v2800_v55, %v2799_v9 }
0x1461   :  { %5729 = vmatpush3.bf16.xpose.msra.mxu1 %v7948_v19 }
0x1462   :  { %5704 = vmatpush3.bf16.xpose.msra.mxu0 %v7950_v26  ;;  %5730 = vmatprep.subr.bf16.mxu1 %v8133_v0 }
0x1463   :  { %5706 = vmatprep.subr.bf16.mxu0 %v7952_v31 }
0x1469   :  { %5732 = vmatpush3.bf16.xpose.msra.mxu1 %v7958_v51 }
0x146a   :  { %5708 = vmatpush3.bf16.xpose.msra.mxu0 %v7960_v57  ;;  %5765 = vmatprep.subr.bf16.mxu1 %v8133_v0 }
0x146b   :  { %5073 = vmatprep.subr.mxu0 %v8182_v1 }
0x1470   :  { %5071 = vmatmul.mubr.f32.vlgmr.msra.gmra.mrb[16].mxu1 %v7777_v13 }
0x1471   :  { %4420 = vmatmul.mubr.f32.vlgmr.msra.gmra.mrb[26].mxu0 %v7777_v13  ;;  %5767 = vmatpush3.bf16.xpose.msra.mxu1 %v7800_v40  ;;  %v2834_v40 = vld [vmem:[#allocation53] sm:$0x7] }
0x1472   :  { %5074 = vmatpush3.msra.mxu0 %v7781_v16  ;;  %5075 = vmatprep.mubr.msk.f32.mxu0 %vm7071_vm0, %v8182_v1 }
0x1473   :  { %5734 = vmatprep.subr.bf16.mxu0 %v7798_v38  ;;  %5768 = vmatprep.subr.bf16.mxu1 %v8133_v0 }
0x1474   :  { %5110 = vmatprep.mubr.msk.f32.mxu1 %vm7071_vm0, %v8182_v1 }
0x1479   :  { %5770 = vmatpush3.bf16.xpose.msra.mxu1 %v7805_v43  ;;  %v2833_v43 = vld [vmem:[#allocation52] sm:$0x7] }
0x147a   :  { %5771 = vmatprep.subr.bf16.mxu1 %v8133_v0 }
0x1481   :  { %5773 = vmatpush3.bf16.xpose.msra.mxu1 %v7809_v46  ;;  %v2954_v46 = vrot.slane %v2833_v43, %v7654_v27 }
0x1482   :  { %5774 = vmatprep.subr.bf16.mxu1 %v8133_v0 }
0x1489   :  { %5776 = vmatpush3.bf16.xpose.msra.mxu1 %v7813_v50  ;;  %v3111_v50 = vrot.slane %v2834_v40, %v7654_v27 }
0x148a   :  { %5777 = vmatprep.subr.bf16.mxu1 %v8133_v0 }
0x148b   :  { %v7994_v18 = vadd.f32 %v3111_v50, %v2954_v46  ;;  %v8001_v46 = vrot.slane %v2834_v40, %v7662_v47  ;;  %v8004_v50 = vrot.slane %v2833_v43, %v7662_v47 }
0x1491   :  { %5779 = vmatpush3.bf16.xpose.msra.mxu1 %v7817_v53  ;;  %v2958_v53 = vrot.slane %v2833_v43, %v7656_v30 }
0x1492   :  { %5780 = vmatprep.subr.bf16.mxu1 %v8133_v0 }
0x1499   :  { %5782 = vmatpush3.bf16.xpose.msra.mxu1 %v7821_v56  ;;  %v3115_v56 = vrot.slane %v2834_v40, %v7656_v30 }
0x149a   :  { %5783 = vmatprep.subr.bf16.mxu1 %v8133_v0 }
0x14a1   :  { %5785 = vmatpush3.bf16.xpose.msra.mxu1 %v7861_v52 }
0x14a2   :  { %5786 = vmatprep.subr.bf16.mxu1 %v8133_v0 }
0x14a9   :  { %5788 = vmatpush3.bf16.xpose.msra.mxu1 %v7872_v3  ;;  %v7996_v3 = vadd.f32 %v3115_v56, %v2958_v53 }
0x14aa   :  { %5821 = vmatprep.subr.bf16.mxu1 %v8133_v0 }
0x1503   :  { %v3103_v16 = vpop.f32.mrb[14].mxu1 }
0x1504   :  { %v5037_v38 = vpop.f32.mrb[15].mxu1 }
0x1543   :  { %v3260_v52 = vpop.f32.mrb[16].mxu1 }
0x1544   :  { %v3189_v55 = vpop.f32.mrb[26].mxu0  ;;  %v5072_v58 = vpop.f32.mrb[17].mxu1  ;;  %v3261_v56 = vadd.f32 %v3260_v52, %v8001_v46 }
0x1545   :  { %v5902_v7 = vadd.f32 %v7994_v18, %v3189_v55  ;;  %v3191_v8 = vpop.f32.mrb[27].mxu0  ;;  %v3104_v58 = vadd.f32 %v3103_v16, %v8004_v50 }
0x1546   :  { %v5904_v33 = vadd.f32 %v7996_v3, %v3191_v8 }
0x1547   :  { %v3986_v32 = vmul.f32 -1.442695, %v5902_v7 }
0x1548   :  { %v3987_v9 = vmul.f32 -1.442695, %v5904_v33 }
0x1549   :  { %6041 = vpow2.f32 %v3986_v32 }
0x154a   :  { %6043 = vpow2.f32 %v3987_v9 }
0x1553   :  { %v6042_v27 = vpop.eup %6041 }
0x1554   :  { %v3268_v38 = vadd.f32 1.0, %v6042_v27  ;;  %v6044_v30 = vpop.eup %6043 }
0x1555   :  { %v3275_v53 = vadd.f32 1.0, %v6044_v30 }
0x1556   :  { %6045 = vrcp.f32 %v3268_v38 }
0x1557   :  { %6047 = vrcp.f32 %v3275_v53 }
0x1560   :  { %v6046_v55 = vpop.eup %6045 }
0x1561   :  { %v3278_v7 = vmul.f32 %v6046_v55, %v3261_v56  ;;  %v6048_v32 = vpop.eup %6047 }
0x1562   :  { %v3281_v33 = vsub.f32 1.0, %v6048_v32  ;;  %v3283_v27 = vmul.f32 %v6048_v32, %v7777_v13 }
0x1563   :  { %v3279_v8 = vadd.f32 %v3278_v7, %v3104_v58 }
0x1565   :  { %6049 = vtanh.f32 %v3279_v8 }
0x156f   :  { %v6050_v9 = vpop.eup %6049 }
0x1570   :  { %v3282_v40 = vmul.f32 %v6050_v9, %v3281_v33 }
0x1572   :  { %v3284_v38 = vadd.f32 %v3283_v27, %v3282_v40  ;;  %v3793_v40 = vld [vmem:[#allocation58 + $0x48] sm:$0xff] }
0x1574   :  { %v8009_v0 = vmax.f32 %v3284_v38, 0.0 }
0x1576   :  { %v3286_v47 = vmul.f32 %v8009_v0, %v7775_v11 }
0x1578   :  { %3287 = vadd.xlane.f32.xlu1 %v3286_v47  ;;  %v3700_v47 = vld [vmem:[#allocation55 + $0x50] sm:$0xff] }
0x1605   :  { %v3288_v43 = vpop.xlane.xlu1 %3287 }
0x1606   :  { %v3289_v16 = vadd.f32 %v3288_v43, %v7789_v20  ;;  %v3701_v43 = vld [vmem:[#allocation55 + $0x58] sm:$0xff] }
0x1608   :  { %v3291_v52 = vmul.f32 0.01, %v3289_v16  ;;  %vm3290_vm14 = vcmp.ge.f32.partialorder %v3289_v16, 0.0 }
0x160a   :  { %v3292_v30 = vsel %vm3290_vm14, %v3289_v16, %v3291_v52  ;;  %v3794_v16 = vld [vmem:[#allocation58 + $0x50] sm:$0xff]  ;;  %v5861_v52 = vpack.c.bf16 %v3701_v43, %v3700_v47 }
0x160b   :  { %v3293_v53 = vsel %vm2850_vm12, %v3292_v30, -1e+30  ;;  %v3795_v30 = vld [vmem:[#allocation58 + $0x58] sm:$0xff] }
0x160c   :  { %v3294_v56 = vsel %vm913_vm2, %v3293_v53, -inf }
0x160d   :  { %3295 = vmax.xlane.f32.xlu0 %v3294_v56  ;;  %v3702_v56 = vld [vmem:[#allocation55 + $0x60] sm:$0xff] }
0x169a   :  { %v3296_v13 = vpop.xlane.xlu0 %3295 }
0x169b   :  { %v3297_v55 = vsub.f32 %v3293_v53, %v3296_v13  ;;  %v5885_v53 = vpack.c.bf16 %v3795_v30, %v3794_v16  ;;  %v3703_v13 = vld [vmem:[#allocation55 + $0x68] sm:$0xff] }
0x169d   :  { %v3298_v58 = vmul.f32 1.442695, %v3297_v55  ;;  %v3796_v55 = vld [vmem:[#allocation58 + $0x60] sm:$0xff] }
0x169f   :  { %6051 = vpow2.f32 %v3298_v58  ;;  %v5864_v58 = vpack.c.bf16 %v3703_v13, %v3702_v56 }
0x16a9   :  { %v6052_v7 = vpop.eup %6051 }
0x16aa   :  { %v3300_v11 = vmul.f32 %v6052_v7, %v7749_v10  ;;  %v3797_v7 = vld [vmem:[#allocation58 + $0x68] sm:$0xff] }
0x16ac   :  { %v3301_v8 = vsel %vm913_vm2, %v3300_v11, 0.0 }
0x16ad   :  { %3302 = vadd.xlane.f32.xlu1 %v3301_v8  ;;  %v3704_v8 = vld [vmem:[#allocation55 + $0x70] sm:$0xff] }
0x173a   :  { %v3303_v20 = vpop.xlane.xlu1 %3302 }
0x173b   :  { %v3304_v32 = vmax.f32 %v3303_v20, 1e-16  ;;  %v3705_v20 = vld [vmem:[#allocation55 + $0x78] sm:$0xff] }
0x173d   :  { %6053 = vrcp.f32 %v3304_v32  ;;  %v3798_v32 = vld [vmem:[#allocation58 + $0x70] sm:$0xff] }
0x1747   :  { %v6054_v33 = vpop.eup %6053 }
0x1748   :  { %v3306_v9 = vmul.f32 %v6054_v33, %v3300_v11  ;;  %v5888_v11 = vpack.c.bf16 %v3797_v7, %v3796_v55  ;;  %v3799_v33 = vld [vmem:[#allocation58 + $0x78] sm:$0xff] }
0x174a   :  { %5076 = vmatmul.mubr.msk.f32.vlgmr.msra.gmra.mrb[28].mxu0 %vm913_vm2, %v3306_v9  ;;  %v5867_v9 = vpack.c.bf16 %v3705_v20, %v3704_v8 }
0x174b   :  { %5736 = vmatpush3.bf16.xpose.msra.mxu0 %v7825_v4 }
0x174c   :  { %5738 = vmatprep.subr.bf16.mxu0 %v7827_v6 }
0x1753   :  { %5740 = vmatpush3.bf16.xpose.msra.mxu0 %v7832_v12 }
0x1754   :  { %5742 = vmatprep.subr.bf16.mxu0 %v7834_v14 }
0x175b   :  { %5744 = vmatpush3.bf16.xpose.msra.mxu0 %v7838_v21 }
0x175c   :  { %5746 = vmatprep.subr.bf16.mxu0 %v7840_v22 }
0x1763   :  { %5748 = vmatpush3.bf16.xpose.msra.mxu0 %v7844_v28 }
0x1764   :  { %5750 = vmatprep.subr.bf16.mxu0 %v7846_v29  ;;  %v8183_v29 = vmov 0.0|0.0  }
0x176b   :  { %5752 = vmatpush3.bf16.xpose.msra.mxu0 %v7850_v34  ;;  %v8184_v34 = vld [vmem:[#allocation108_spill] sm:$0xff] }
0x176c   :  { %5754 = vmatprep.subr.bf16.mxu0 %v7852_v35  ;;  %v8185_v35 = vld [vmem:[#allocation109_spill] sm:$0xff] }
0x1773   :  { %5756 = vmatpush3.bf16.xpose.msra.mxu0 %v7856_v39  ;;  %v8186_v39 = vld [vmem:[#allocation110_spill] sm:$0xff] }
0x1774   :  { %5758 = vmatprep.subr.bf16.mxu0 %v7859_v45  ;;  %v3690_v45 = vld [vmem:[#allocation55] sm:$0xff] }
0x177b   :  { %5760 = vmatpush3.bf16.xpose.msra.mxu0 %v7863_v54  ;;  %v3691_v54 = vld [vmem:[#allocation55 + $0x8] sm:$0xff] }
0x177c   :  { %5762 = vmatprep.subr.bf16.mxu0 %v7869_v59  ;;  %v3784_v59 = vld [vmem:[#allocation58] sm:$0xff] }
0x1783   :  { %5764 = vmatpush3.bf16.xpose.msra.mxu0 %v7874_v5  ;;  %v5846_v5 = vpack.c.bf16 %v3691_v54, %v3690_v45 }
0x1784   :  { %5790 = vmatprep.subr.bf16.mxu0 %v7879_v2  ;;  %v3785_v2 = vld [vmem:[#allocation58 + $0x8] sm:$0xff] }
0x181d   :  { %v3376_v10 = vpop.f32.mrb[28].mxu0 }
0x181e   :  { %v3377_v4 = vadd.f32 %v7882_v63, %v3376_v10  ;;  %v5077_v6 = vpop.f32.mrb[29].mxu0  ;;  %v5870_v63 = vpack.c.bf16 %v3785_v2, %v3784_v59  ;;  %v5891_v10 = vpack.c.bf16 %v3799_v33, %v3798_v32 }
0x1820   :  { %v3381_v12 = vmin.f32 %v3377_v4, 0.0  ;;  %vm3380_vm15 = vcmp.gt.f32.partialorder %v3377_v4, 0.0 }
0x1822   :  { %v3382_v14 = vmul.f32 1.442695, %v3381_v12 }
0x1824   :  { %6055 = vpow2.f32 %v3382_v14 }
0x182e   :  { %v6056_v21 = vpop.eup %6055 }
0x182f   :  { %v3989_v22 = vadd.f32 -1.0, %v6056_v21 }
0x1831   :  { %v3385_v28 = vsel %vm3380_vm15, %v3377_v4, %v3989_v22 }
0x1832   :  { %4472 = vmatprep.mubr.f32.mxu0 %v3385_v28  ;;  %5111 = vmatmul.mubr.f32.vlgmr.msra.gmra.mrb[18].mxu1 %v3385_v28 }
0x1833   :  { %5823 = vmatpush3.bf16.xpose.msra.mxu1 %v7885_v37  ;;  %4473 = vmatmul.mubr.f32.vlgmr.msra.gmra.mrb[30].mxu0 %v3385_v28  ;;  %v3692_v37 = vld [vmem:[#allocation55 + $0x10] sm:$0xff] }
0x1834   :  { %5792 = vmatpush3.bf16.xpose.msra.mxu0 %v7887_v41  ;;  %4523 = vmatprep.mubr.f32.mxu0 %v8009_v0  ;;  %v3693_v41 = vld [vmem:[#allocation55 + $0x18] sm:$0xff] }
0x1835   :  { %5824 = vmatprep.subr.bf16.mxu1 %v8183_v29  ;;  %5794 = vmatprep.subr.bf16.mxu0 %v7889_v44  ;;  %v3786_v44 = vld [vmem:[#allocation58 + $0x10] sm:$0xff] }
0x1836   :  { %5145 = vmatprep.mubr.msk.f32.mxu1 %vm7071_vm0, %v8182_v1 }
0x183b   :  { %5826 = vmatpush3.bf16.xpose.msra.mxu1 %v7898_v60  ;;  %v3787_v60 = vld [vmem:[#allocation58 + $0x18] sm:$0xff] }
0x183c   :  { %5796 = vmatpush3.bf16.xpose.msra.mxu0 %v7900_v61  ;;  %5827 = vmatprep.subr.bf16.mxu1 %v8183_v29  ;;  %v5849_v61 = vpack.c.bf16 %v3693_v41, %v3692_v37 }
0x183d   :  { %5798 = vmatprep.subr.bf16.mxu0 %v7902_v62  ;;  %v5873_v62 = vpack.c.bf16 %v3787_v60, %v3786_v44 }
0x1843   :  { %5829 = vmatpush3.bf16.xpose.msra.mxu1 %v7908_v23  ;;  %v3694_v23 = vld [vmem:[#allocation55 + $0x20] sm:$0xff] }
0x1844   :  { %5800 = vmatpush3.bf16.xpose.msra.mxu0 %v7910_v24  ;;  %5830 = vmatprep.subr.bf16.mxu1 %v8183_v29  ;;  %v3695_v24 = vld [vmem:[#allocation55 + $0x28] sm:$0xff] }
0x1845   :  { %5802 = vmatprep.subr.bf16.mxu0 %v7912_v25  ;;  %v3788_v25 = vld [vmem:[#allocation58 + $0x20] sm:$0xff] }
0x184b   :  { %5832 = vmatpush3.bf16.xpose.msra.mxu1 %v7918_v42  ;;  %v5852_v42 = vpack.c.bf16 %v3695_v24, %v3694_v23  ;;  %v3992_v24 = vld [vmem:[#allocation56] ss:$0 sm:$0xff] }
0x184c   :  { %5804 = vmatpush3.bf16.xpose.msra.mxu0 %v7920_v48  ;;  %5833 = vmatprep.subr.bf16.mxu1 %v8183_v29  ;;  %v3789_v48 = vld [vmem:[#allocation58 + $0x28] sm:$0xff] }
0x184d   :  { %5806 = vmatprep.subr.bf16.mxu0 %v7922_v49  ;;  %v5876_v49 = vpack.c.bf16 %v3789_v48, %v3788_v25  ;;  %v3993_v25 = vld [vmem:[#allocation59] ss:$0 sm:$0xff] }
0x1853   :  { %5835 = vmatpush3.bf16.xpose.msra.mxu1 %v7928_v15  ;;  %v3696_v15 = vld [vmem:[#allocation55 + $0x30] sm:$0xff] }
0x1854   :  { %5808 = vmatpush3.bf16.xpose.msra.mxu0 %v7930_v17  ;;  %5836 = vmatprep.subr.bf16.mxu1 %v8183_v29  ;;  %v3697_v17 = vld [vmem:[#allocation55 + $0x38] sm:$0xff] }
0x1855   :  { %5810 = vmatprep.subr.bf16.mxu0 %v8184_v34 }
0x185b   :  { %5838 = vmatpush3.bf16.xpose.msra.mxu1 %v7938_v36  ;;  %v3790_v36 = vld [vmem:[#allocation58 + $0x30] sm:$0xff] }
0x185c   :  { %5812 = vmatpush3.bf16.xpose.msra.mxu0 %v8185_v35  ;;  %5839 = vmatprep.subr.bf16.mxu1 %v8183_v29 }
0x185d   :  { %5814 = vmatprep.subr.bf16.mxu0 %v8186_v39 }
0x1863   :  { %5841 = vmatpush3.bf16.xpose.msra.mxu1 %v7948_v19  ;;  %v3791_v19 = vld [vmem:[#allocation58 + $0x38] sm:$0xff] }
0x1864   :  { %5816 = vmatpush3.bf16.xpose.msra.mxu0 %v7950_v26  ;;  %5842 = vmatprep.subr.bf16.mxu1 %v8183_v29  ;;  %v5879_v26 = vpack.c.bf16 %v3791_v19, %v3790_v36 }
0x1865   :  { %5818 = vmatprep.subr.bf16.mxu0 %v7952_v31  ;;  %v3698_v31 = vld [vmem:[#allocation55 + $0x40] sm:$0xff] }
0x186b   :  { %5844 = vmatpush3.bf16.xpose.msra.mxu1 %v7958_v51  ;;  %v5855_v51 = vpack.c.bf16 %v3697_v17, %v3696_v15 }
0x186c   :  { %5820 = vmatpush3.bf16.xpose.msra.mxu0 %v7960_v57  ;;  %5869 = vmatprep.subr.bf16.mxu1 %v8183_v29  ;;  %v3699_v57 = vld [vmem:[#allocation55 + $0x48] sm:$0xff] }
0x186d   :  { %5845 = vmatprep.subr.bf16.mxu0 %v8183_v29  ;;  %v5858_v27 = vpack.c.bf16 %v3699_v57, %v3698_v31 }
0x1872   :  { %5146 = vmatmul.mubr.f32.vlgmr.msra.gmra.mrb[20].mxu1 %v8009_v0 }
0x1873   :  { %4524 = vmatmul.mubr.f32.vlgmr.msra.gmra.mrb[30].mxu0 %v8009_v0  ;;  %5215 = vmatprep.mubr.msk.f32.mxu1 %vm7071_vm0, %v8182_v1 }
0x1874   :  { %5180 = vmatprep.mubr.msk.f32.mxu0 %vm7071_vm0, %v8182_v1  ;;  %5847 = vmatpush3.bf16.xpose.msra.mxu0 %v5846_v5  ;;  %v3792_v1 = vld [vmem:[#allocation58 + $0x40] sm:$0xff] }
0x1875   :  { %5871 = vmatpush3.bf16.xpose.msra.mxu1 %v5870_v63  ;;  %5848 = vmatprep.subr.bf16.mxu0 %v8183_v29  ;;  %v5882_v38 = vpack.c.bf16 %v3793_v40, %v3792_v1 }
0x1876   :  { %5872 = vmatprep.subr.bf16.mxu1 %v8183_v29 }
0x187c   :  { %5850 = vmatpush3.bf16.xpose.msra.mxu0 %v5849_v61 }
0x187d   :  { %5874 = vmatpush3.bf16.xpose.msra.mxu1 %v5873_v62  ;;  %5851 = vmatprep.subr.bf16.mxu0 %v8183_v29 }
0x187e   :  { %5875 = vmatprep.subr.bf16.mxu1 %v8183_v29 }
0x1884   :  { %5853 = vmatpush3.bf16.xpose.msra.mxu0 %v5852_v42 }
0x1885   :  { %5877 = vmatpush3.bf16.xpose.msra.mxu1 %v5876_v49  ;;  %5854 = vmatprep.subr.bf16.mxu0 %v8183_v29 }
0x1886   :  { %5878 = vmatprep.subr.bf16.mxu1 %v8183_v29 }
0x188c   :  { %5856 = vmatpush3.bf16.xpose.msra.mxu0 %v5855_v51 }
0x188d   :  { %5880 = vmatpush3.bf16.xpose.msra.mxu1 %v5879_v26  ;;  %5857 = vmatprep.subr.bf16.mxu0 %v8183_v29 }
0x188e   :  { %5881 = vmatprep.subr.bf16.mxu1 %v8183_v29 }
0x1894   :  { %5859 = vmatpush3.bf16.xpose.msra.mxu0 %v5858_v27 }
0x1895   :  { %5883 = vmatpush3.bf16.xpose.msra.mxu1 %v5882_v38  ;;  %5860 = vmatprep.subr.bf16.mxu0 %v8183_v29 }
0x1896   :  { %5884 = vmatprep.subr.bf16.mxu1 %v8183_v29 }
0x189c   :  { %5862 = vmatpush3.bf16.xpose.msra.mxu0 %v5861_v52 }
0x189d   :  { %5886 = vmatpush3.bf16.xpose.msra.mxu1 %v5885_v53  ;;  %5863 = vmatprep.subr.bf16.mxu0 %v8183_v29 }
0x189e   :  { %5887 = vmatprep.subr.bf16.mxu1 %v8183_v29 }
0x18a4   :  { %5865 = vmatpush3.bf16.xpose.msra.mxu0 %v5864_v58 }
0x18a5   :  { %5889 = vmatpush3.bf16.xpose.msra.mxu1 %v5888_v11  ;;  %5866 = vmatprep.subr.bf16.mxu0 %v8183_v29 }
0x18a6   :  { %5890 = vmatprep.subr.bf16.mxu1 %v8183_v29 }
0x18ac   :  { %5868 = vmatpush3.bf16.xpose.msra.mxu0 %v5867_v9 }
0x18ad   :  { %5892 = vmatpush3.bf16.xpose.msra.mxu1 %v5891_v10 }
0x1905   :  { %v3523_v4 = vpop.f32.mrb[18].mxu1 }
0x1906   :  { %v5112_v6 = vpop.f32.mrb[19].mxu1  ;;  %v3524_v63 = vadd.f32 %v3523_v4, %v8004_v50 }
0x1945   :  { %v3664_v12 = vpop.f32.mrb[20].mxu1 }
0x1946   :  { %v3593_v14 = vpop.f32.mrb[30].mxu0  ;;  %v5147_v21 = vpop.f32.mrb[21].mxu1  ;;  %v3665_v5 = vadd.f32 %v3664_v12, %v8001_v46 }
0x1947   :  { %v5906_v22 = vadd.f32 %v7994_v18, %v3593_v14  ;;  %v3595_v28 = vpop.f32.mrb[31].mxu0 }
0x1948   :  { %v5908_v35 = vadd.f32 %v7996_v3, %v3595_v28 }
0x1949   :  { %v3990_v34 = vmul.f32 -1.442695, %v5906_v22 }
0x194a   :  { %v3991_v39 = vmul.f32 -1.442695, %v5908_v35 }
0x194b   :  { %6057 = vpow2.f32 %v3990_v34 }
0x194c   :  { %6059 = vpow2.f32 %v3991_v39 }
0x1955   :  { %v6058_v29 = vpop.eup %6057 }
0x1956   :  { %v3672_v45 = vadd.f32 1.0, %v6058_v29  ;;  %v6060_v54 = vpop.eup %6059 }
0x1957   :  { %v3679_v59 = vadd.f32 1.0, %v6060_v54 }
0x1958   :  { %6061 = vrcp.f32 %v3672_v45 }
0x1959   :  { %6063 = vrcp.f32 %v3679_v59 }
0x1962   :  { %v6062_v2 = vpop.eup %6061 }
0x1963   :  { %v3682_v37 = vmul.f32 %v6062_v2, %v3665_v5  ;;  %v6064_v41 = vpop.eup %6063 }
0x1964   :  { %v3685_v44 = vsub.f32 1.0, %v6064_v41  ;;  %v3687_v61 = vmul.f32 %v6064_v41, %v8009_v0 }
0x1965   :  { %v3683_v18 = vadd.f32 %v3682_v37, %v3524_v63 }
0x1967   :  { %6065 = vtanh.f32 %v3683_v18 }
0x1971   :  { %v6066_v3 = vpop.eup %6065 }
0x1972   :  { %v3686_v60 = vmul.f32 %v6066_v3, %v3685_v44 }
0x1974   :  { %v3688_v62 = vadd.f32 %v3687_v61, %v3686_v60 }
0x1976   :  { %v3689_v23 = vmax.f32 %v3688_v62, 0.0 }
0x1978   :  { %5181 = vmatmul.mubr.f32.vlgmr.msra.gmra.mrb[32].mxu0 %v3689_v23  ;;  %5216 = vmatmul.mubr.f32.vlgmr.msra.gmra.mrb[22].mxu1 %v3689_v23 }
0x1a4b   :  { %v3779_v46 = vpop.f32.mrb[32].mxu0  ;;  %v3873_v50 = vpop.f32.mrb[22].mxu1 }
0x1a4c   :  { %v3780_v42 = vadd.f32 %v3992_v24, %v3779_v46  ;;  %v3874_v48 = vadd.f32 %v3993_v25, %v3873_v50  ;;  %v5182_v49 = vpop.f32.mrb[33].mxu0  ;;  %v5217_v15 = vpop.f32.mrb[23].mxu1 }
0x1a4e   :  { %3783 = vst [vmem:[#allocation61] sm:$0xff] %v3780_v42  ;;  %3877 = vst [vmem:[#allocation62] sm:$0xff] %v3874_v48 }
0x1a4f   :  { %6914 = shalt.err (!%p6911_p0)
}
0x1a50   :  { %s6915_s9 = scalar_lea.hbm %s7273_s12, 128 }
0x1a51   :  { %p6916_p1 = scmp.ne.s32.totalorder %s7273_s12, %s6915_s9  ;;  %p6919_p2 = scmp.lt.u32.totalorder %s6915_s9, %s7273_s12 }
0x1a53   :  { %p6921_p3 = pnand %p6919_p2, %p6916_p1 }
0x1a55   :  { %6924 = shalt.err (!%p6921_p3)
}
0x1a56   :  { %3887 = dma.vmem_to_hbm [thread:$0]  %s3885_s27, 128, %s7273_s12, [#allocation4]  }
0x1a57   :  { %s6925_s14 = scalar_lea.vmem %s3895_s7, 128  ;;  %p6930_p5 = scmp.lt.s32.totalorder %s3895_s7, %s3895_s7 }
0x1a58   :  { %p6926_p4 = scmp.ne.s32.totalorder %s3895_s7, %s6925_s14  ;;  %p6931_p6 = scmp.lt.s32.totalorder %s6925_s14, %s6925_s14 }
0x1a5a   :  { %p6932_p7 = por %p6931_p6, %p6930_p5 }
0x1a5c   :  { %p6933_p8 = pnand %p6932_p7, %p6926_p4 }
0x1a5e   :  { %6936 = shalt.err (!%p6933_p8)
}
0x1a5f   :  { %s6937_s4 = scalar_lea.hbm %s7278_s5, 128 }
0x1a60   :  { %p6938_p9 = scmp.ne.s32.totalorder %s7278_s5, %s6937_s4  ;;  %p6941_p10 = scmp.lt.u32.totalorder %s6937_s4, %s7278_s5 }
0x1a62   :  { %p6943_p11 = pnand %p6941_p10, %p6938_p9 }
0x1a64   :  { %6946 = shalt.err (!%p6943_p11)
}
0x1a65   :  { %3897 = dma.vmem_to_hbm [thread:$0]  %s3895_s7, 128, %s7278_s5, [#allocation63]  }
0x1a66   :  { %6987 = dma.done.wait [#allocation4], 128  }
0x1a67   :  { %6988 = vsyncadd [#allocation4], 4294967168 }
0x1a68   :  { %6989 = dma.done.wait [#allocation63], 128  }
0x1a69   :  { %6990 = vsyncadd [#allocation63], 4294967168 }
0x1a6a   :  { %3904 = vsyncpa [#allocation3], 1 }
0x1a6b   :  { %3905 = vsyncpa [#allocation6], 1 }
0x1a6c   :  { %3906 = vsyncpa [#allocation9], 1 }
0x1a6d   :  { %3907 = vsyncpa [#allocation12], 1 }
0x1a6e   :  { %3908 = vsyncpa [#allocation15], 1 }
0x1a6f   :  { %3909 = vsyncpa [#allocation18], 1 }
0x1a70   :  { %3910 = vsyncpa [#allocation21], 1 }
0x1a71   :  { %3911 = vsyncpa [#allocation24], 1 }
0x1a72   :  { %3912 = vsyncpa [#allocation27], 1 }
0x1a73   :  { %3913 = vsyncpa [#allocation30], 1 }
0x1a74   :  { %3914 = vsyncpa [#allocation33], 1 }
0x1a75   :  { %3915 = vsyncpa [#allocation36], 1 }
0x1a76   :  { %3916 = vsyncpa [#allocation39], 1 }
0x1a77   :  { %3917 = vsyncpa [#allocation42], 1 }
0x1a78   :  { %3918 = vsyncpa [#allocation45], 1 }
0x1a79   :  { %3919 = vsyncpa [#allocation48], 1 }
0x1a7a   :  { %3920 = vsyncpa [#allocation51], 1 }
0x1a7b   :  { %3921 = vsyncpa [#allocation54], 1 }
0x1a7c   :  { %3922 = vsyncpa [#allocation57], 1 }
0x1a7d   :  { %3923 = vsyncpa [#allocation60], 1 }
0x1a7e   :  { %3924 = vsyncpa [#allocation4], 1 }
0x1a7f   :  { %3925 = vsyncpa [#allocation63], 1 }

</bundles_post_ra>
